<compile_context>
chip_gen: v7x
topology: tpu7x:2x2x1
jax: 0.10.0
libtpu: 0.0.40
codegen_flags: <defaults>
</compile_context>

<pallas_src>
import functools

import jax
import jax.numpy as jnp
import numpy as np
from jax.experimental import pallas as pl
from jax.experimental.pallas import tpu as pltpu

KSIZE = 5
STRIDE = 2


def conv2d_size_out(size, kernel_size=KSIZE, stride=STRIDE):
    return (size - (kernel_size - 1) - 1) // stride + 1


# ----------------------------------------------------------------------------
# The single fused Pallas kernel (grid-less: one invocation for the whole net)
# ----------------------------------------------------------------------------
def _dqn_fused_kernel(
    # --- inputs resident in VMEM ---
    x_ref,        # (H*B, W*Cin)           bf16, rows even/odd grouped, batch-interleaved
    band1_ref,    # (5, W*Cin, OW1*C1)     bf16 banded conv1 weights (BN scale folded)
    shift1_ref,   # (1, OW1*C1)            f32 folded conv-bias + BN shift (tiled over OW)
    peo2_ref,     # (OH1*B, OH1*B)         bf16 even/odd row permutation (0/1 matrix)
    shift2_ref,   # (1, OW2*C2)            f32
    peo3_ref,     # (OH2*B, OH2*B)         bf16
    shift3_ref,   # (1, OW3*C3)            f32
    head_w_ref,   # (OH3, OW3*C3, outputs) bf16 (columns pre-permuted to NCHW flatten order)
    head_b_ref,   # (1, outputs)           f32
    # --- inputs left in HBM (manually DMA'd so the fetch overlaps layer-1 compute) ---
    band2_hbm,    # (5, OW1*C1, OW2*C2)    bf16
    band3_hbm,    # (5, OW2*C2, OW3*C3)    bf16
    # --- output ---
    out_ref,      # (B, outputs)           f32
    # --- scratch ---
    band2_vmem, band3_vmem, dma_sems,
    *,
    dims, batch,
):
    (he1, oh1), (he2, oh2), (he3, oh3) = dims
    B = batch

    # Kick off the layer-2 / layer-3 weight fetches now; they complete under the
    # layer-1 matmul chain instead of serializing before any compute.
    cp2 = pltpu.make_async_copy(band2_hbm, band2_vmem, dma_sems.at[0])
    cp3 = pltpu.make_async_copy(band3_hbm, band3_vmem, dma_sems.at[1])
    cp2.start()
    cp3.start()

    def conv_layer(x_eo, band_ref, shift_ref, he, oh):
        # x_eo: (Hin*B, Win*Cin) bf16; rows ordered [even input rows ..., odd input
        # rows ...], batch-interleaved within each group (row = group*B + b).
        # Output row m (per batch) uses input rows {2m+i, i=0..4}; after the even/odd
        # grouping every tap i is a *contiguous* slice of B*OH rows, and the stride-2
        # column selection is folded into the banded weight matrix, so each tap is a
        # single dense MXU matmul with the whole batch folded into M.
        acc = None
        for i in range(KSIZE):
            start = ((i // 2) + (he if i % 2 else 0)) * B
            lhs = x_eo[start:start + oh * B, :]                    # (B*OH, Win*Cin) bf16
            part = jnp.dot(lhs, band_ref[i],
                           preferred_element_type=jnp.float32)     # f32 accumulate
            acc = part if acc is None else acc + part
        # folded conv-bias + BN shift, then ReLU (f32 epilogue: v5e-friendly)
        return jnp.maximum(acc + shift_ref[...], 0.0)              # (B*OH, OW*Cout) f32

    def eo_permute(peo_ref, y):
        # Exact 0/1 row permutation via one tiny MXU matmul (rows -> [even m..., odd m...]).
        return jnp.dot(peo_ref[...], y.astype(jnp.bfloat16),
                       preferred_element_type=jnp.float32).astype(jnp.bfloat16)

    y1 = conv_layer(x_ref[...], band1_ref, shift1_ref, he1, oh1)   # (B*OH1, OW1*C1)

    cp2.wait()                                                     # band2 now in VMEM
    y2 = conv_layer(eo_permute(peo2_ref, y1), band2_vmem, shift2_ref, he2, oh2)

    cp3.wait()                                                     # band3 now in VMEM
    y3 = conv_layer(eo_permute(peo3_ref, y2), band3_vmem, shift3_ref, he3, oh3)

    # Linear head.  y3 row (m*B + b), col (w*C3 + c) is the NHWC activation; head_w
    # was pre-permuted so this reproduces PyTorch's x.view(B, -1) on NCHW exactly.
    y3b = y3.astype(jnp.bfloat16)                                  # (B*OH3, OW3*C3)
    acc = None
    for h in range(oh3):
        part = jnp.dot(y3b[h * B:(h + 1) * B, :], head_w_ref[h],
                       preferred_element_type=jnp.float32)         # (B, outputs)
        acc = part if acc is None else acc + part
    out_ref[...] = acc + head_b_ref[...]


# ----------------------------------------------------------------------------
# One-time host-side parameter preparation (hoisted OUT of the forward path)
# ----------------------------------------------------------------------------
def _even_odd_perm(n):
    return np.concatenate([np.arange(0, n, 2), np.arange(1, n, 2)])


def _eo_perm_matrix(n_rows, batch, dtype):
    """0/1 matrix reordering a batch-interleaved (n_rows*batch)-row matrix
    (row = m*batch + b) into [even m ..., odd m ...] order (batch kept interleaved)."""
    m_order = _even_odd_perm(n_rows)
    perm = (m_order[:, None] * batch + np.arange(batch)[None, :]).reshape(-1)
    return jnp.asarray(np.eye(n_rows * batch, dtype=np.float32)[perm], dtype=dtype)


def _make_bands(w_eff, win, ow):
    """Banded matrices M_i with M_i[w*Cin+c, ow*Cout+d] = w_eff[i, w-2*ow, c, d]."""
    kh, kw, cin, cout = w_eff.shape
    w_pos = np.arange(win)[None, :, None]
    ow_pos = np.arange(ow)[None, None, :]
    j_pos = np.arange(kw)[:, None, None]
    sel = (w_pos == STRIDE * ow_pos + j_pos).astype(np.float32)      # (KW, Win, OW)
    band = jnp.einsum("jwo,ijcd->iwcod", jnp.asarray(sel), w_eff)    # (KH,Win,Cin,OW,Cout)
    return band.reshape(kh, win * cin, ow * cout).astype(jnp.bfloat16)


def _prep_conv_layer(layer, hin, win, eps=1e-5):
    w = layer["w"]                                   # torch layout (Cout, Cin, KH, KW)
    cout = w.shape[0]
    inv_std = 1.0 / jnp.sqrt(layer["bn_var"] + eps)
    scale = layer["bn_gamma"] * inv_std
    shift = layer["bn_beta"] + scale * (layer["b"] - layer["bn_mean"])
    w_eff = jnp.transpose(w, (2, 3, 1, 0)) * scale                   # (KH,KW,Cin,Cout)
    oh, ow = conv2d_size_out(hin), conv2d_size_out(win)
    band = _make_bands(w_eff, win, ow)
    shift_tiled = jnp.tile(shift, ow).reshape(1, ow * cout).astype(jnp.float32)
    return band, shift_tiled, oh, ow, cout


def prepare_dqn(params, h, w, batch):
    """Build all kernel-side weights ONCE.  Re-run only if params/shape/batch change."""
    assert STRIDE == 2 and KSIZE % 2 == 1, "even/odd tap layout assumes stride 2, odd K"
    band1, shift1, oh1, ow1, _ = _prep_conv_layer(params["layer1"], h, w)
    band2, shift2, oh2, ow2, _ = _prep_conv_layer(params["layer2"], oh1, ow1)
    band3, shift3, oh3, ow3, c3 = _prep_conv_layer(params["layer3"], oh2, ow2)
    assert min(oh1, ow1, oh2, ow2, oh3, ow3) >= 1

    outputs = params["head_w"].shape[0]
    # Head weight columns follow torch NCHW flatten order c*(H*W)+h*W+w;
    # re-pack to per-h (w*C3 + c, outputs) so no runtime transpose is needed.
    hw = params["head_w"].reshape(outputs, c3, oh3, ow3)             # (o, c, h, w)
    head_w = jnp.transpose(hw, (2, 3, 1, 0)).reshape(
        oh3, ow3 * c3, outputs).astype(jnp.bfloat16)
    head_b = params["head_b"].reshape(1, outputs).astype(jnp.float32)

    return {
        "band1": band1, "shift1": shift1,
        "band2": band2, "shift2": shift2,
        "band3": band3, "shift3": shift3,
        "peo2": _eo_perm_matrix(oh1, batch, jnp.bfloat16),
        "peo3": _eo_perm_matrix(oh2, batch, jnp.bfloat16),
        "head_w": head_w, "head_b": head_b,
    }


# ----------------------------------------------------------------------------
# Forward pass: tiny input re-layout + ONE pallas_call for the whole network
# ----------------------------------------------------------------------------
def dqn_forward(prepared, x_nchw):
    B, cin, H, W = x_nchw.shape
    oh1, ow1 = conv2d_size_out(H), conv2d_size_out(W)
    oh2, ow2 = conv2d_size_out(oh1), conv2d_size_out(ow1)
    oh3 = conv2d_size_out(oh2)
    outputs = prepared["head_b"].shape[1]

    # Static consistency checks between prepared weights and this input.
    assert prepared["band1"].shape[1] == W * cin
    assert prepared["peo2"].shape[0] == oh1 * B
    assert prepared["peo3"].shape[0] == oh2 * B
    assert prepared["head_w"].shape[0] == oh3

    # Input prep: NCHW -> (H, B, W*Cin) -> even/odd row grouping -> (H*B, W*Cin) bf16.
    xh = jnp.transpose(x_nchw, (2, 0, 3, 1)).reshape(H, B, W * cin)
    x_prep = xh[_even_odd_perm(H)].reshape(H * B, W * cin).astype(jnp.bfloat16)

    dims = (((H + 1) // 2, oh1), ((oh1 + 1) // 2, oh2), ((oh2 + 1) // 2, oh3))
    kern = functools.partial(_dqn_fused_kernel, dims=dims, batch=B)

    vmem = pl.BlockSpec(memory_space=pltpu.MemorySpace.VMEM)
    hbm = pl.BlockSpec(memory_space=pl.ANY)

    return pl.pallas_call(
        kern,
        out_shape=jax.ShapeDtypeStruct((B, outputs), jnp.float32),
        in_specs=[vmem] * 9 + [hbm, hbm],
        out_specs=vmem,
        scratch_shapes=[
            pltpu.VMEM(prepared["band2"].shape, jnp.bfloat16),
            pltpu.VMEM(prepared["band3"].shape, jnp.bfloat16),
            pltpu.SemaphoreType.DMA((2,)),
        ],
    )(x_prep,
      prepared["band1"], prepared["shift1"],
      prepared["peo2"], prepared["shift2"],
      prepared["peo3"], prepared["shift3"],
      prepared["head_w"], prepared["head_b"],
      prepared["band2"], prepared["band3"])


# ----------------------------------------------------------------------------
# Pure-JAX reference (mirrors the PyTorch module exactly) for validation
# ----------------------------------------------------------------------------
def dqn_reference(params, x, eps=1e-5):
    def conv_bn_relu(x, layer):
        y = jax.lax.conv_general_dilated(
            x, layer["w"], window_strides=(STRIDE, STRIDE), padding="VALID",
            dimension_numbers=("NCHW", "OIHW", "NCHW"))
        y = y + layer["b"][None, :, None, None]
        y = (y - layer["bn_mean"][None, :, None, None]) / jnp.sqrt(
            layer["bn_var"][None, :, None, None] + eps)
        y = y * layer["bn_gamma"][None, :, None, None] + layer["bn_beta"][None, :, None, None]
        return jnp.maximum(y, 0.0)

    y = conv_bn_relu(x, params["layer1"])
    y = conv_bn_relu(y, params["layer2"])
    y = conv_bn_relu(y, params["layer3"])
    y = y.reshape(y.shape[0], -1)
    return y @ params["head_w"].T + params["head_b"]


# ----------------------------------------------------------------------------
# Deterministic parameter construction (shapes per the module __init__)
# ----------------------------------------------------------------------------
def init_params(key, h, w, outputs):
    def conv_layer(key, cout, cin, k):
        kw_, kb_ = jax.random.split(key)
        fan_in = cin * k * k
        bound = 1.0 / jnp.sqrt(fan_in)
        return {
            "w": jax.random.uniform(kw_, (cout, cin, k, k), jnp.float32, -bound, bound),
            "b": jax.random.uniform(kb_, (cout,), jnp.float32, -bound, bound),
            # fresh BatchNorm2d running stats / affine params (inference mode)
            "bn_gamma": jnp.ones((cout,), jnp.float32),
            "bn_beta": jnp.zeros((cout,), jnp.float32),
            "bn_mean": jnp.zeros((cout,), jnp.float32),
            "bn_var": jnp.ones((cout,), jnp.float32),
        }

    k1, k2, k3, k4, k5 = jax.random.split(key, 5)
    convw = conv2d_size_out(conv2d_size_out(conv2d_size_out(w)))
    convh = conv2d_size_out(conv2d_size_out(conv2d_size_out(h)))
    linear_input_size = convw * convh * 32
    bound = 1.0 / jnp.sqrt(linear_input_size)
    return {
        "layer1": conv_layer(k1, 16, 3, 5),
        "layer2": conv_layer(k2, 32, 16, 5),
        "layer3": conv_layer(k3, 32, 32, 5),
        "head_w": jax.random.uniform(
            k4, (outputs, linear_input_size), jnp.float32, -bound, bound
        ),
        "head_b": jax.random.uniform(k5, (outputs,), jnp.float32, -bound, bound),
    }


if __name__ == "__main__":
    H, W, OUTPUTS, BATCH = 40, 40, 4, 2  # 40x40 -> 18 -> 7 -> 2 spatial

    key = jax.random.PRNGKey(0)
    kp, kx = jax.random.split(key)
    params = init_params(kp, H, W, OUTPUTS)
    x = jax.random.normal(kx, (BATCH, 3, H, W), dtype=jnp.float32)  # NCHW input

    # One-time weight preparation (hoisted out of the per-call path).
    prepared = prepare_dqn(params, H, W, BATCH)

    fwd = jax.jit(dqn_forward)
    out = jax.block_until_ready(fwd(prepared, x))
    assert out.shape == (BATCH, OUTPUTS), out.shape
    assert out.dtype == jnp.float32

    # Validate against the f32 XLA reference (bf16 MXU operands => loose tol).
    ref = jax.block_until_ready(jax.jit(dqn_reference)(params, x))
    max_err = float(jnp.max(jnp.abs(out - ref)))
    tol = 2e-2 * (1.0 + float(jnp.max(jnp.abs(ref))))
    assert max_err <= tol, (max_err, tol)

    print("KERNEL_OK")
</pallas_src>

<mosaic_0001>
module attributes {stable_mosaic.version = 11 : i64} {
  func.func @_dqn_fused_kernel(%arg0: memref<80x120xbf16, #tpu.memory_space<vmem>>, %arg1: memref<5x120x288xbf16, #tpu.memory_space<vmem>>, %arg2: memref<1x288xf32, #tpu.memory_space<vmem>>, %arg3: memref<36x36xbf16, #tpu.memory_space<vmem>>, %arg4: memref<1x224xf32, #tpu.memory_space<vmem>>, %arg5: memref<14x14xbf16, #tpu.memory_space<vmem>>, %arg6: memref<1x64xf32, #tpu.memory_space<vmem>>, %arg7: memref<2x64x4xbf16, #tpu.memory_space<vmem>>, %arg8: memref<1x4xf32, #tpu.memory_space<vmem>>, %arg9: memref<5x288x224xbf16, #tpu.memory_space<any>>, %arg10: memref<5x224x64xbf16, #tpu.memory_space<any>>, %arg11: memref<2x4xf32, #tpu.memory_space<vmem>>, %arg12: memref<5x288x224xbf16, #tpu.memory_space<vmem>>, %arg13: memref<5x224x64xbf16, #tpu.memory_space<vmem>>, %arg14: memref<2x!tpu.dma_semaphore, #tpu.memory_space<semaphore_mem>>) attributes {dimension_semantics = [], scalar_prefetch = 0 : i64, scratch_operands = 3 : i64, tpu.core_type = #tpu.core_type<tc>} {
    %c0_i32 = arith.constant 0 : i32
    %0 = tpu.memref_slice %arg14[%c0_i32] : memref<2x!tpu.dma_semaphore, #tpu.memory_space<semaphore_mem>> -> memref<1x!tpu.dma_semaphore, #tpu.memory_space<semaphore_mem>>
    %1 = tpu.memref_squeeze %0 : memref<1x!tpu.dma_semaphore, #tpu.memory_space<semaphore_mem>> -> memref<!tpu.dma_semaphore, #tpu.memory_space<semaphore_mem>>
    tpu.enqueue_dma source(%arg9 : memref<5x288x224xbf16, #tpu.memory_space<any>>) target(%arg12 : memref<5x288x224xbf16, #tpu.memory_space<vmem>>) target_semaphore(%1 : memref<!tpu.dma_semaphore, #tpu.memory_space<semaphore_mem>>)
    %c1_i32 = arith.constant 1 : i32
    %2 = tpu.memref_slice %arg14[%c1_i32] : memref<2x!tpu.dma_semaphore, #tpu.memory_space<semaphore_mem>> -> memref<1x!tpu.dma_semaphore, #tpu.memory_space<semaphore_mem>>
    %3 = tpu.memref_squeeze %2 : memref<1x!tpu.dma_semaphore, #tpu.memory_space<semaphore_mem>> -> memref<!tpu.dma_semaphore, #tpu.memory_space<semaphore_mem>>
    tpu.enqueue_dma source(%arg10 : memref<5x224x64xbf16, #tpu.memory_space<any>>) target(%arg13 : memref<5x224x64xbf16, #tpu.memory_space<vmem>>) target_semaphore(%3 : memref<!tpu.dma_semaphore, #tpu.memory_space<semaphore_mem>>)
    %c0 = arith.constant 0 : index
    %c0_0 = arith.constant 0 : index
    %4 = vector.load %arg0[%c0, %c0_0] : memref<80x120xbf16, #tpu.memory_space<vmem>>, vector<80x120xbf16>
    %5 = vector.extract_strided_slice %4 {offsets = [0, 0], sizes = [36, 120], strides = [1, 1]} : vector<80x120xbf16> to vector<36x120xbf16>
    %c0_1 = arith.constant 0 : index
    %c0_2 = arith.constant 0 : index
    %c0_3 = arith.constant 0 : index
    %6 = vector.load %arg1[%c0_1, %c0_2, %c0_3] : memref<5x120x288xbf16, #tpu.memory_space<vmem>>, vector<1x120x288xbf16>
    %7 = vector.shape_cast %6 : vector<1x120x288xbf16> to vector<120x288xbf16>
    %cst = arith.constant dense<0.000000e+00> : vector<36x288xf32>
    %8 = tpu.matmul %5, %7, %cst {dimension_numbers = #tpu.dot_dimension_numbers<[1], [0], [0], [1], [0, 0, 1, 1], [], []>} : vector<36x120xbf16>, vector<120x288xbf16>, vector<36x288xf32> -> vector<36x288xf32>
    %9 = vector.extract_strided_slice %4 {offsets = [40, 0], sizes = [36, 120], strides = [1, 1]} : vector<80x120xbf16> to vector<36x120xbf16>
    %c1 = arith.constant 1 : index
    %c0_4 = arith.constant 0 : index
    %c0_5 = arith.constant 0 : index
    %10 = vector.load %arg1[%c1, %c0_4, %c0_5] : memref<5x120x288xbf16, #tpu.memory_space<vmem>>, vector<1x120x288xbf16>
    %11 = vector.shape_cast %10 : vector<1x120x288xbf16> to vector<120x288xbf16>
    %cst_6 = arith.constant dense<0.000000e+00> : vector<36x288xf32>
    %12 = tpu.matmul %9, %11, %cst_6 {dimension_numbers = #tpu.dot_dimension_numbers<[1], [0], [0], [1], [0, 0, 1, 1], [], []>} : vector<36x120xbf16>, vector<120x288xbf16>, vector<36x288xf32> -> vector<36x288xf32>
    %13 = arith.addf %8, %12 : vector<36x288xf32>
    %14 = vector.extract_strided_slice %4 {offsets = [2, 0], sizes = [36, 120], strides = [1, 1]} : vector<80x120xbf16> to vector<36x120xbf16>
    %c2 = arith.constant 2 : index
    %c0_7 = arith.constant 0 : index
    %c0_8 = arith.constant 0 : index
    %15 = vector.load %arg1[%c2, %c0_7, %c0_8] : memref<5x120x288xbf16, #tpu.memory_space<vmem>>, vector<1x120x288xbf16>
    %16 = vector.shape_cast %15 : vector<1x120x288xbf16> to vector<120x288xbf16>
    %cst_9 = arith.constant dense<0.000000e+00> : vector<36x288xf32>
    %17 = tpu.matmul %14, %16, %cst_9 {dimension_numbers = #tpu.dot_dimension_numbers<[1], [0], [0], [1], [0, 0, 1, 1], [], []>} : vector<36x120xbf16>, vector<120x288xbf16>, vector<36x288xf32> -> vector<36x288xf32>
    %18 = arith.addf %13, %17 : vector<36x288xf32>
    %19 = vector.extract_strided_slice %4 {offsets = [42, 0], sizes = [36, 120], strides = [1, 1]} : vector<80x120xbf16> to vector<36x120xbf16>
    %c3 = arith.constant 3 : index
    %c0_10 = arith.constant 0 : index
    %c0_11 = arith.constant 0 : index
    %20 = vector.load %arg1[%c3, %c0_10, %c0_11] : memref<5x120x288xbf16, #tpu.memory_space<vmem>>, vector<1x120x288xbf16>
    %21 = vector.shape_cast %20 : vector<1x120x288xbf16> to vector<120x288xbf16>
    %cst_12 = arith.constant dense<0.000000e+00> : vector<36x288xf32>
    %22 = tpu.matmul %19, %21, %cst_12 {dimension_numbers = #tpu.dot_dimension_numbers<[1], [0], [0], [1], [0, 0, 1, 1], [], []>} : vector<36x120xbf16>, vector<120x288xbf16>, vector<36x288xf32> -> vector<36x288xf32>
    %23 = arith.addf %18, %22 : vector<36x288xf32>
    %24 = vector.extract_strided_slice %4 {offsets = [4, 0], sizes = [36, 120], strides = [1, 1]} : vector<80x120xbf16> to vector<36x120xbf16>
    %c4 = arith.constant 4 : index
    %c0_13 = arith.constant 0 : index
    %c0_14 = arith.constant 0 : index
    %25 = vector.load %arg1[%c4, %c0_13, %c0_14] : memref<5x120x288xbf16, #tpu.memory_space<vmem>>, vector<1x120x288xbf16>
    %26 = vector.shape_cast %25 : vector<1x120x288xbf16> to vector<120x288xbf16>
    %cst_15 = arith.constant dense<0.000000e+00> : vector<36x288xf32>
    %27 = tpu.matmul %24, %26, %cst_15 {dimension_numbers = #tpu.dot_dimension_numbers<[1], [0], [0], [1], [0, 0, 1, 1], [], []>} : vector<36x120xbf16>, vector<120x288xbf16>, vector<36x288xf32> -> vector<36x288xf32>
    %28 = arith.addf %23, %27 : vector<36x288xf32>
    %c0_16 = arith.constant 0 : index
    %c0_17 = arith.constant 0 : index
    %29 = vector.load %arg2[%c0_16, %c0_17] : memref<1x288xf32, #tpu.memory_space<vmem>>, vector<1x288xf32>
    %30 = vector.broadcast %29 : vector<1x288xf32> to vector<36x288xf32>
    %31 = arith.addf %28, %30 : vector<36x288xf32>
    %cst_18 = arith.constant 0.000000e+00 : f32
    %32 = vector.broadcast %cst_18 : f32 to vector<36x288xf32>
    %33 = arith.maximumf %31, %32 : vector<36x288xf32>
    %c0_i32_19 = arith.constant 0 : i32
    %34 = tpu.memref_slice %arg14[%c0_i32_19] : memref<2x!tpu.dma_semaphore, #tpu.memory_space<semaphore_mem>> -> memref<1x!tpu.dma_semaphore, #tpu.memory_space<semaphore_mem>>
    %35 = tpu.memref_squeeze %34 : memref<1x!tpu.dma_semaphore, #tpu.memory_space<semaphore_mem>> -> memref<!tpu.dma_semaphore, #tpu.memory_space<semaphore_mem>>
    tpu.wait_dma2 semaphore(%35 : memref<!tpu.dma_semaphore, #tpu.memory_space<semaphore_mem>>) src(%arg9 : memref<5x288x224xbf16, #tpu.memory_space<any>>) dst(%arg12 : memref<5x288x224xbf16, #tpu.memory_space<vmem>>)
    %c0_20 = arith.constant 0 : index
    %c0_21 = arith.constant 0 : index
    %36 = vector.load %arg3[%c0_20, %c0_21] : memref<36x36xbf16, #tpu.memory_space<vmem>>, vector<36x36xbf16>
    %37 = arith.truncf %33 : vector<36x288xf32> to vector<36x288xbf16>
    %cst_22 = arith.constant dense<0.000000e+00> : vector<36x288xf32>
    %38 = tpu.matmul %36, %37, %cst_22 {dimension_numbers = #tpu.dot_dimension_numbers<[1], [0], [0], [1], [0, 0, 1, 1], [], []>} : vector<36x36xbf16>, vector<36x288xbf16>, vector<36x288xf32> -> vector<36x288xf32>
    %39 = arith.truncf %38 : vector<36x288xf32> to vector<36x288xbf16>
    %40 = vector.extract_strided_slice %39 {offsets = [0, 0], sizes = [14, 288], strides = [1, 1]} : vector<36x288xbf16> to vector<14x288xbf16>
    %c0_23 = arith.constant 0 : index
    %c0_24 = arith.constant 0 : index
    %c0_25 = arith.constant 0 : index
    %41 = vector.load %arg12[%c0_23, %c0_24, %c0_25] : memref<5x288x224xbf16, #tpu.memory_space<vmem>>, vector<1x288x224xbf16>
    %42 = vector.shape_cast %41 : vector<1x288x224xbf16> to vector<288x224xbf16>
    %cst_26 = arith.constant dense<0.000000e+00> : vector<14x224xf32>
    %43 = tpu.matmul %40, %42, %cst_26 {dimension_numbers = #tpu.dot_dimension_numbers<[1], [0], [0], [1], [0, 0, 1, 1], [], []>} : vector<14x288xbf16>, vector<288x224xbf16>, vector<14x224xf32> -> vector<14x224xf32>
    %44 = vector.extract_strided_slice %39 {offsets = [18, 0], sizes = [14, 288], strides = [1, 1]} : vector<36x288xbf16> to vector<14x288xbf16>
    %c1_27 = arith.constant 1 : index
    %c0_28 = arith.constant 0 : index
    %c0_29 = arith.constant 0 : index
    %45 = vector.load %arg12[%c1_27, %c0_28, %c0_29] : memref<5x288x224xbf16, #tpu.memory_space<vmem>>, vector<1x288x224xbf16>
    %46 = vector.shape_cast %45 : vector<1x288x224xbf16> to vector<288x224xbf16>
    %cst_30 = arith.constant dense<0.000000e+00> : vector<14x224xf32>
    %47 = tpu.matmul %44, %46, %cst_30 {dimension_numbers = #tpu.dot_dimension_numbers<[1], [0], [0], [1], [0, 0, 1, 1], [], []>} : vector<14x288xbf16>, vector<288x224xbf16>, vector<14x224xf32> -> vector<14x224xf32>
    %48 = arith.addf %43, %47 : vector<14x224xf32>
    %49 = vector.extract_strided_slice %39 {offsets = [2, 0], sizes = [14, 288], strides = [1, 1]} : vector<36x288xbf16> to vector<14x288xbf16>
    %c2_31 = arith.constant 2 : index
    %c0_32 = arith.constant 0 : index
    %c0_33 = arith.constant 0 : index
    %50 = vector.load %arg12[%c2_31, %c0_32, %c0_33] : memref<5x288x224xbf16, #tpu.memory_space<vmem>>, vector<1x288x224xbf16>
    %51 = vector.shape_cast %50 : vector<1x288x224xbf16> to vector<288x224xbf16>
    %cst_34 = arith.constant dense<0.000000e+00> : vector<14x224xf32>
    %52 = tpu.matmul %49, %51, %cst_34 {dimension_numbers = #tpu.dot_dimension_numbers<[1], [0], [0], [1], [0, 0, 1, 1], [], []>} : vector<14x288xbf16>, vector<288x224xbf16>, vector<14x224xf32> -> vector<14x224xf32>
    %53 = arith.addf %48, %52 : vector<14x224xf32>
    %54 = vector.extract_strided_slice %39 {offsets = [20, 0], sizes = [14, 288], strides = [1, 1]} : vector<36x288xbf16> to vector<14x288xbf16>
    %c3_35 = arith.constant 3 : index
    %c0_36 = arith.constant 0 : index
    %c0_37 = arith.constant 0 : index
    %55 = vector.load %arg12[%c3_35, %c0_36, %c0_37] : memref<5x288x224xbf16, #tpu.memory_space<vmem>>, vector<1x288x224xbf16>
    %56 = vector.shape_cast %55 : vector<1x288x224xbf16> to vector<288x224xbf16>
    %cst_38 = arith.constant dense<0.000000e+00> : vector<14x224xf32>
    %57 = tpu.matmul %54, %56, %cst_38 {dimension_numbers = #tpu.dot_dimension_numbers<[1], [0], [0], [1], [0, 0, 1, 1], [], []>} : vector<14x288xbf16>, vector<288x224xbf16>, vector<14x224xf32> -> vector<14x224xf32>
    %58 = arith.addf %53, %57 : vector<14x224xf32>
    %59 = vector.extract_strided_slice %39 {offsets = [4, 0], sizes = [14, 288], strides = [1, 1]} : vector<36x288xbf16> to vector<14x288xbf16>
    %c4_39 = arith.constant 4 : index
    %c0_40 = arith.constant 0 : index
    %c0_41 = arith.constant 0 : index
    %60 = vector.load %arg12[%c4_39, %c0_40, %c0_41] : memref<5x288x224xbf16, #tpu.memory_space<vmem>>, vector<1x288x224xbf16>
    %61 = vector.shape_cast %60 : vector<1x288x224xbf16> to vector<288x224xbf16>
    %cst_42 = arith.constant dense<0.000000e+00> : vector<14x224xf32>
    %62 = tpu.matmul %59, %61, %cst_42 {dimension_numbers = #tpu.dot_dimension_numbers<[1], [0], [0], [1], [0, 0, 1, 1], [], []>} : vector<14x288xbf16>, vector<288x224xbf16>, vector<14x224xf32> -> vector<14x224xf32>
    %63 = arith.addf %58, %62 : vector<14x224xf32>
    %c0_43 = arith.constant 0 : index
    %c0_44 = arith.constant 0 : index
    %64 = vector.load %arg4[%c0_43, %c0_44] : memref<1x224xf32, #tpu.memory_space<vmem>>, vector<1x224xf32>
    %65 = vector.broadcast %64 : vector<1x224xf32> to vector<14x224xf32>
    %66 = arith.addf %63, %65 : vector<14x224xf32>
    %cst_45 = arith.constant 0.000000e+00 : f32
    %67 = vector.broadcast %cst_45 : f32 to vector<14x224xf32>
    %68 = arith.maximumf %66, %67 : vector<14x224xf32>
    %c1_i32_46 = arith.constant 1 : i32
    %69 = tpu.memref_slice %arg14[%c1_i32_46] : memref<2x!tpu.dma_semaphore, #tpu.memory_space<semaphore_mem>> -> memref<1x!tpu.dma_semaphore, #tpu.memory_space<semaphore_mem>>
    %70 = tpu.memref_squeeze %69 : memref<1x!tpu.dma_semaphore, #tpu.memory_space<semaphore_mem>> -> memref<!tpu.dma_semaphore, #tpu.memory_space<semaphore_mem>>
    tpu.wait_dma2 semaphore(%70 : memref<!tpu.dma_semaphore, #tpu.memory_space<semaphore_mem>>) src(%arg10 : memref<5x224x64xbf16, #tpu.memory_space<any>>) dst(%arg13 : memref<5x224x64xbf16, #tpu.memory_space<vmem>>)
    %c0_47 = arith.constant 0 : index
    %c0_48 = arith.constant 0 : index
    %71 = vector.load %arg5[%c0_47, %c0_48] : memref<14x14xbf16, #tpu.memory_space<vmem>>, vector<14x14xbf16>
    %72 = arith.truncf %68 : vector<14x224xf32> to vector<14x224xbf16>
    %cst_49 = arith.constant dense<0.000000e+00> : vector<14x224xf32>
    %73 = tpu.matmul %71, %72, %cst_49 {dimension_numbers = #tpu.dot_dimension_numbers<[1], [0], [0], [1], [0, 0, 1, 1], [], []>} : vector<14x14xbf16>, vector<14x224xbf16>, vector<14x224xf32> -> vector<14x224xf32>
    %74 = arith.truncf %73 : vector<14x224xf32> to vector<14x224xbf16>
    %75 = vector.extract_strided_slice %74 {offsets = [0, 0], sizes = [4, 224], strides = [1, 1]} : vector<14x224xbf16> to vector<4x224xbf16>
    %c0_50 = arith.constant 0 : index
    %c0_51 = arith.constant 0 : index
    %c0_52 = arith.constant 0 : index
    %76 = vector.load %arg13[%c0_50, %c0_51, %c0_52] : memref<5x224x64xbf16, #tpu.memory_space<vmem>>, vector<1x224x64xbf16>
    %77 = vector.shape_cast %76 : vector<1x224x64xbf16> to vector<224x64xbf16>
    %cst_53 = arith.constant dense<0.000000e+00> : vector<4x64xf32>
    %78 = tpu.matmul %75, %77, %cst_53 {dimension_numbers = #tpu.dot_dimension_numbers<[1], [0], [0], [1], [0, 0, 1, 1], [], []>} : vector<4x224xbf16>, vector<224x64xbf16>, vector<4x64xf32> -> vector<4x64xf32>
    %79 = vector.extract_strided_slice %74 {offsets = [8, 0], sizes = [4, 224], strides = [1, 1]} : vector<14x224xbf16> to vector<4x224xbf16>
    %c1_54 = arith.constant 1 : index
    %c0_55 = arith.constant 0 : index
    %c0_56 = arith.constant 0 : index
    %80 = vector.load %arg13[%c1_54, %c0_55, %c0_56] : memref<5x224x64xbf16, #tpu.memory_space<vmem>>, vector<1x224x64xbf16>
    %81 = vector.shape_cast %80 : vector<1x224x64xbf16> to vector<224x64xbf16>
    %cst_57 = arith.constant dense<0.000000e+00> : vector<4x64xf32>
    %82 = tpu.matmul %79, %81, %cst_57 {dimension_numbers = #tpu.dot_dimension_numbers<[1], [0], [0], [1], [0, 0, 1, 1], [], []>} : vector<4x224xbf16>, vector<224x64xbf16>, vector<4x64xf32> -> vector<4x64xf32>
    %83 = arith.addf %78, %82 : vector<4x64xf32>
    %84 = vector.extract_strided_slice %74 {offsets = [2, 0], sizes = [4, 224], strides = [1, 1]} : vector<14x224xbf16> to vector<4x224xbf16>
    %c2_58 = arith.constant 2 : index
    %c0_59 = arith.constant 0 : index
    %c0_60 = arith.constant 0 : index
    %85 = vector.load %arg13[%c2_58, %c0_59, %c0_60] : memref<5x224x64xbf16, #tpu.memory_space<vmem>>, vector<1x224x64xbf16>
    %86 = vector.shape_cast %85 : vector<1x224x64xbf16> to vector<224x64xbf16>
    %cst_61 = arith.constant dense<0.000000e+00> : vector<4x64xf32>
    %87 = tpu.matmul %84, %86, %cst_61 {dimension_numbers = #tpu.dot_dimension_numbers<[1], [0], [0], [1], [0, 0, 1, 1], [], []>} : vector<4x224xbf16>, vector<224x64xbf16>, vector<4x64xf32> -> vector<4x64xf32>
    %88 = arith.addf %83, %87 : vector<4x64xf32>
    %89 = vector.extract_strided_slice %74 {offsets = [10, 0], sizes = [4, 224], strides = [1, 1]} : vector<14x224xbf16> to vector<4x224xbf16>
    %c3_62 = arith.constant 3 : index
    %c0_63 = arith.constant 0 : index
    %c0_64 = arith.constant 0 : index
    %90 = vector.load %arg13[%c3_62, %c0_63, %c0_64] : memref<5x224x64xbf16, #tpu.memory_space<vmem>>, vector<1x224x64xbf16>
    %91 = vector.shape_cast %90 : vector<1x224x64xbf16> to vector<224x64xbf16>
    %cst_65 = arith.constant dense<0.000000e+00> : vector<4x64xf32>
    %92 = tpu.matmul %89, %91, %cst_65 {dimension_numbers = #tpu.dot_dimension_numbers<[1], [0], [0], [1], [0, 0, 1, 1], [], []>} : vector<4x224xbf16>, vector<224x64xbf16>, vector<4x64xf32> -> vector<4x64xf32>
    %93 = arith.addf %88, %92 : vector<4x64xf32>
    %94 = vector.extract_strided_slice %74 {offsets = [4, 0], sizes = [4, 224], strides = [1, 1]} : vector<14x224xbf16> to vector<4x224xbf16>
    %c4_66 = arith.constant 4 : index
    %c0_67 = arith.constant 0 : index
    %c0_68 = arith.constant 0 : index
    %95 = vector.load %arg13[%c4_66, %c0_67, %c0_68] : memref<5x224x64xbf16, #tpu.memory_space<vmem>>, vector<1x224x64xbf16>
    %96 = vector.shape_cast %95 : vector<1x224x64xbf16> to vector<224x64xbf16>
    %cst_69 = arith.constant dense<0.000000e+00> : vector<4x64xf32>
    %97 = tpu.matmul %94, %96, %cst_69 {dimension_numbers = #tpu.dot_dimension_numbers<[1], [0], [0], [1], [0, 0, 1, 1], [], []>} : vector<4x224xbf16>, vector<224x64xbf16>, vector<4x64xf32> -> vector<4x64xf32>
    %98 = arith.addf %93, %97 : vector<4x64xf32>
    %c0_70 = arith.constant 0 : index
    %c0_71 = arith.constant 0 : index
    %99 = vector.load %arg6[%c0_70, %c0_71] : memref<1x64xf32, #tpu.memory_space<vmem>>, vector<1x64xf32>
    %100 = vector.broadcast %99 : vector<1x64xf32> to vector<4x64xf32>
    %101 = arith.addf %98, %100 : vector<4x64xf32>
    %cst_72 = arith.constant 0.000000e+00 : f32
    %102 = vector.broadcast %cst_72 : f32 to vector<4x64xf32>
    %103 = arith.maximumf %101, %102 : vector<4x64xf32>
    %104 = arith.truncf %103 : vector<4x64xf32> to vector<4x64xbf16>
    %105 = vector.extract_strided_slice %104 {offsets = [0, 0], sizes = [2, 64], strides = [1, 1]} : vector<4x64xbf16> to vector<2x64xbf16>
    %c0_73 = arith.constant 0 : index
    %c0_74 = arith.constant 0 : index
    %c0_75 = arith.constant 0 : index
    %106 = vector.load %arg7[%c0_73, %c0_74, %c0_75] : memref<2x64x4xbf16, #tpu.memory_space<vmem>>, vector<1x64x4xbf16>
    %107 = vector.shape_cast %106 : vector<1x64x4xbf16> to vector<64x4xbf16>
    %cst_76 = arith.constant dense<0.000000e+00> : vector<2x4xf32>
    %108 = tpu.matmul %105, %107, %cst_76 {dimension_numbers = #tpu.dot_dimension_numbers<[1], [0], [0], [1], [0, 0, 1, 1], [], []>} : vector<2x64xbf16>, vector<64x4xbf16>, vector<2x4xf32> -> vector<2x4xf32>
    %109 = vector.extract_strided_slice %104 {offsets = [2, 0], sizes = [2, 64], strides = [1, 1]} : vector<4x64xbf16> to vector<2x64xbf16>
    %c1_77 = arith.constant 1 : index
    %c0_78 = arith.constant 0 : index
    %c0_79 = arith.constant 0 : index
    %110 = vector.load %arg7[%c1_77, %c0_78, %c0_79] : memref<2x64x4xbf16, #tpu.memory_space<vmem>>, vector<1x64x4xbf16>
    %111 = vector.shape_cast %110 : vector<1x64x4xbf16> to vector<64x4xbf16>
    %cst_80 = arith.constant dense<0.000000e+00> : vector<2x4xf32>
    %112 = tpu.matmul %109, %111, %cst_80 {dimension_numbers = #tpu.dot_dimension_numbers<[1], [0], [0], [1], [0, 0, 1, 1], [], []>} : vector<2x64xbf16>, vector<64x4xbf16>, vector<2x4xf32> -> vector<2x4xf32>
    %113 = arith.addf %108, %112 : vector<2x4xf32>
    %c0_81 = arith.constant 0 : index
    %c0_82 = arith.constant 0 : index
    %114 = vector.load %arg8[%c0_81, %c0_82] : memref<1x4xf32, #tpu.memory_space<vmem>>, vector<1x4xf32>
    %115 = vector.broadcast %114 : vector<1x4xf32> to vector<2x4xf32>
    %116 = arith.addf %113, %115 : vector<2x4xf32>
    %c0_83 = arith.constant 0 : index
    %c0_84 = arith.constant 0 : index
    %117 = vector.load %arg11[%c0_83, %c0_84] : memref<2x4xf32, #tpu.memory_space<vmem>>, vector<2x4xf32>
    tpu.vector_store %arg11[%c0_83, %c0_84], %116 {strides = array<i32>} : memref<2x4xf32, #tpu.memory_space<vmem>>, vector<2x4xf32>,
    return
  }
}

</mosaic_0001>

<bundles_post_ra>
// kernel: dqn_forward.1
= control target key start
LH: loop header
LB: loop body
LE: loop exit
PB: predicated region body
PF: predicated region fallthrough
CT: control target
= control target key end

     0   :  { %16 = vsyncpa [#allocation6], 0  ;;  %s7726_s0 = inlined_call_operand.vmem [shape: bf16[80,120], index: 0, kind: input, shape index: {}]   ;;  %s7727_s1 = inlined_call_operand.vmem [shape: bf16[5,120,288], index: 1, kind: input, shape index: {}]   ;;  %s7728_s2 = inlined_call_operand.vmem [shape: f32[1,288], index: 2, kind: input, shape index: {}]   ;;  %s7729_s3 = inlined_call_operand.vmem [shape: bf16[36,36], index: 3, kind: input, shape index: {}]   ;;  %s7730_s4 = inlined_call_operand.vmem [shape: f32[1,224], index: 4, kind: input, shape index: {}]   ;;  %s7731_s5 = inlined_call_operand.vmem [shape: bf16[14,14], index: 5, kind: input, shape index: {}]   ;;  %s7732_s6 = inlined_call_operand.vmem [shape: f32[1,64], index: 6, kind: input, shape index: {}]   ;;  %s7733_s7 = inlined_call_operand.vmem [shape: bf16[2,64,4], index: 7, kind: input, shape index: {}]   ;;  %s7734_s8 = inlined_call_operand.vmem [shape: f32[1,4], index: 8, kind: input, shape index: {}]   ;;  %s7735_s9 = inlined_call_operand.vmem [shape: bf16[5,288,224], index: 9, kind: input, shape index: {}]   ;;  %s7736_s10 = inlined_call_operand.vmem [shape: bf16[5,224,64], index: 10, kind: input, shape index: {}]   ;;  %s7737_s11 = inlined_call_operand.hbm [shape: f32[2,4], index: 11, kind: output, shape index: {}]  }
   0x1   :  { %v53_v0 = vld [vmem:[%s7735_s9] sm:$0xf]  ;;  %v55_v1 = vld [vmem:[%s7735_s9 + $0x8] sm:$0xf]  ;;  %v57_v2 = vld [vmem:[%s7735_s9 + $0x4] sm:$0xf] }
   0x2   :  { %54 = vst [vmem:[#allocation2] sm:$0xf] %v53_v0  ;;  %56 = vst [vmem:[#allocation2 + $0x4] sm:$0xf] %v55_v1  ;;  %v59_v3 = vld [vmem:[%s7735_s9 + $0xc] sm:$0xff]   ;;  %v67_v6 = vld [vmem:[%s7735_s9 + $0x1c] sm:$0xff]  }
   0x3   :  { %v63_v4 = vld [vmem:[%s7735_s9 + $0x18] sm:$0xf]  ;;  %58 = vst [vmem:[#allocation2 + $0x8] sm:$0xf] %v57_v2  ;;  %60 = vst [vmem:[#allocation2 + $0xc] sm:$0xff] %v59_v3   ;;  %v75_v9 = vld [vmem:[%s7735_s9 + $0x2c] sm:$0xff]  }
   0x4   :  { %64 = vst [vmem:[#allocation2 + $0x14] sm:$0xf] %v63_v4  ;;  %v65_v5 = vld [vmem:[%s7735_s9 + $0x14] sm:$0xf]  ;;  %v71_v7 = vld [vmem:[%s7735_s9 + $0x28] sm:$0xf] }
   0x5   :  { %66 = vst [vmem:[#allocation2 + $0x18] sm:$0xf] %v65_v5  ;;  %68 = vst [vmem:[#allocation2 + $0x1c] sm:$0xff] %v67_v6   ;;  %v73_v8 = vld [vmem:[%s7735_s9 + $0x24] sm:$0xf]  ;;  %v83_v12 = vld [vmem:[%s7735_s9 + $0x3c] sm:$0xff]  }
   0x6   :  { %72 = vst [vmem:[#allocation2 + $0x24] sm:$0xf] %v71_v7  ;;  %v79_v10 = vld [vmem:[%s7735_s9 + $0x38] sm:$0xf]  ;;  %74 = vst [vmem:[#allocation2 + $0x28] sm:$0xf] %v73_v8 }
   0x7   :  { %76 = vst [vmem:[#allocation2 + $0x2c] sm:$0xff] %v75_v9   ;;  %80 = vst [vmem:[#allocation2 + $0x34] sm:$0xf] %v79_v10  ;;  %v81_v11 = vld [vmem:[%s7735_s9 + $0x34] sm:$0xf]  ;;  %v91_v15 = vld [vmem:[%s7735_s9 + $0x4c] sm:$0xff]  }
   0x8   :  { %v87_v13 = vld [vmem:[%s7735_s9 + $0x48] sm:$0xf]  ;;  %82 = vst [vmem:[#allocation2 + $0x38] sm:$0xf] %v81_v11  ;;  %84 = vst [vmem:[#allocation2 + $0x3c] sm:$0xff] %v83_v12   ;;  %v99_v18 = vld [vmem:[%s7735_s9 + $0x5c] sm:$0xff]  }
   0x9   :  { %88 = vst [vmem:[#allocation2 + $0x44] sm:$0xf] %v87_v13  ;;  %v89_v14 = vld [vmem:[%s7735_s9 + $0x44] sm:$0xf]  ;;  %v95_v16 = vld [vmem:[%s7735_s9 + $0x58] sm:$0xf] }
   0xa   :  { %90 = vst [vmem:[#allocation2 + $0x48] sm:$0xf] %v89_v14  ;;  %92 = vst [vmem:[#allocation2 + $0x4c] sm:$0xff] %v91_v15   ;;  %v97_v17 = vld [vmem:[%s7735_s9 + $0x54] sm:$0xf]  ;;  %v107_v21 = vld [vmem:[%s7735_s9 + $0x6c] sm:$0xff]  }
   0xb   :  { %96 = vst [vmem:[#allocation2 + $0x54] sm:$0xf] %v95_v16  ;;  %v103_v19 = vld [vmem:[%s7735_s9 + $0x68] sm:$0xf]  ;;  %98 = vst [vmem:[#allocation2 + $0x58] sm:$0xf] %v97_v17 }
   0xc   :  { %100 = vst [vmem:[#allocation2 + $0x5c] sm:$0xff] %v99_v18   ;;  %104 = vst [vmem:[#allocation2 + $0x64] sm:$0xf] %v103_v19  ;;  %v105_v20 = vld [vmem:[%s7735_s9 + $0x64] sm:$0xf]  ;;  %v115_v24 = vld [vmem:[%s7735_s9 + $0x7c] sm:$0xff]  }
   0xd   :  { %v111_v22 = vld [vmem:[%s7735_s9 + $0x78] sm:$0xf]  ;;  %106 = vst [vmem:[#allocation2 + $0x68] sm:$0xf] %v105_v20  ;;  %108 = vst [vmem:[#allocation2 + $0x6c] sm:$0xff] %v107_v21   ;;  %v123_v27 = vld [vmem:[%s7735_s9 + $0x8c] sm:$0xff]  }
   0xe   :  { %112 = vst [vmem:[#allocation2 + $0x74] sm:$0xf] %v111_v22  ;;  %v113_v23 = vld [vmem:[%s7735_s9 + $0x74] sm:$0xf]  ;;  %v119_v25 = vld [vmem:[%s7735_s9 + $0x88] sm:$0xf] }
   0xf   :  { %114 = vst [vmem:[#allocation2 + $0x78] sm:$0xf] %v113_v23  ;;  %116 = vst [vmem:[#allocation2 + $0x7c] sm:$0xff] %v115_v24   ;;  %v121_v26 = vld [vmem:[%s7735_s9 + $0x84] sm:$0xf]  ;;  %v131_v30 = vld [vmem:[%s7735_s9 + $0x9c] sm:$0xff]  }
  0x10   :  { %120 = vst [vmem:[#allocation2 + $0x84] sm:$0xf] %v119_v25  ;;  %v127_v28 = vld [vmem:[%s7735_s9 + $0x98] sm:$0xf]  ;;  %122 = vst [vmem:[#allocation2 + $0x88] sm:$0xf] %v121_v26 }
  0x11   :  { %124 = vst [vmem:[#allocation2 + $0x8c] sm:$0xff] %v123_v27   ;;  %128 = vst [vmem:[#allocation2 + $0x94] sm:$0xf] %v127_v28  ;;  %v129_v29 = vld [vmem:[%s7735_s9 + $0x94] sm:$0xf]  ;;  %v139_v33 = vld [vmem:[%s7735_s9 + $0xac] sm:$0xff]  }
  0x12   :  { %v135_v31 = vld [vmem:[%s7735_s9 + $0xa8] sm:$0xf]  ;;  %130 = vst [vmem:[#allocation2 + $0x98] sm:$0xf] %v129_v29  ;;  %132 = vst [vmem:[#allocation2 + $0x9c] sm:$0xff] %v131_v30   ;;  %v147_v36 = vld [vmem:[%s7735_s9 + $0xbc] sm:$0xff]  }
  0x13   :  { %136 = vst [vmem:[#allocation2 + $0xa4] sm:$0xf] %v135_v31  ;;  %v137_v32 = vld [vmem:[%s7735_s9 + $0xa4] sm:$0xf]  ;;  %v143_v34 = vld [vmem:[%s7735_s9 + $0xb8] sm:$0xf] }
  0x14   :  { %138 = vst [vmem:[#allocation2 + $0xa8] sm:$0xf] %v137_v32  ;;  %140 = vst [vmem:[#allocation2 + $0xac] sm:$0xff] %v139_v33   ;;  %v145_v35 = vld [vmem:[%s7735_s9 + $0xb4] sm:$0xf]  ;;  %v155_v39 = vld [vmem:[%s7735_s9 + $0xcc] sm:$0xff]  }
  0x15   :  { %144 = vst [vmem:[#allocation2 + $0xb4] sm:$0xf] %v143_v34  ;;  %v151_v37 = vld [vmem:[%s7735_s9 + $0xc8] sm:$0xf]  ;;  %146 = vst [vmem:[#allocation2 + $0xb8] sm:$0xf] %v145_v35 }
  0x16   :  { %148 = vst [vmem:[#allocation2 + $0xbc] sm:$0xff] %v147_v36   ;;  %152 = vst [vmem:[#allocation2 + $0xc4] sm:$0xf] %v151_v37  ;;  %v153_v38 = vld [vmem:[%s7735_s9 + $0xc4] sm:$0xf]  ;;  %v163_v42 = vld [vmem:[%s7735_s9 + $0xdc] sm:$0xff]  }
  0x17   :  { %v159_v40 = vld [vmem:[%s7735_s9 + $0xd8] sm:$0xf]  ;;  %154 = vst [vmem:[#allocation2 + $0xc8] sm:$0xf] %v153_v38  ;;  %156 = vst [vmem:[#allocation2 + $0xcc] sm:$0xff] %v155_v39   ;;  %v171_v45 = vld [vmem:[%s7735_s9 + $0xec] sm:$0xff]  }
  0x18   :  { %160 = vst [vmem:[#allocation2 + $0xd4] sm:$0xf] %v159_v40  ;;  %v161_v41 = vld [vmem:[%s7735_s9 + $0xd4] sm:$0xf]  ;;  %v167_v43 = vld [vmem:[%s7735_s9 + $0xe8] sm:$0xf] }
  0x19   :  { %162 = vst [vmem:[#allocation2 + $0xd8] sm:$0xf] %v161_v41  ;;  %164 = vst [vmem:[#allocation2 + $0xdc] sm:$0xff] %v163_v42   ;;  %v169_v44 = vld [vmem:[%s7735_s9 + $0xe4] sm:$0xf]  ;;  %v179_v48 = vld [vmem:[%s7735_s9 + $0xfc] sm:$0xff]  }
  0x1a   :  { %168 = vst [vmem:[#allocation2 + $0xe4] sm:$0xf] %v167_v43  ;;  %v175_v46 = vld [vmem:[%s7735_s9 + $0xf8] sm:$0xf]  ;;  %170 = vst [vmem:[#allocation2 + $0xe8] sm:$0xf] %v169_v44 }
  0x1b   :  { %172 = vst [vmem:[#allocation2 + $0xec] sm:$0xff] %v171_v45   ;;  %176 = vst [vmem:[#allocation2 + $0xf4] sm:$0xf] %v175_v46  ;;  %v177_v47 = vld [vmem:[%s7735_s9 + $0xf4] sm:$0xf]  ;;  %v187_v51 = vld [vmem:[%s7735_s9 + $0x10c] sm:$0xff]  }
  0x1c   :  { %v183_v49 = vld [vmem:[%s7735_s9 + $0x108] sm:$0xf]  ;;  %178 = vst [vmem:[#allocation2 + $0xf8] sm:$0xf] %v177_v47  ;;  %180 = vst [vmem:[#allocation2 + $0xfc] sm:$0xff] %v179_v48   ;;  %v195_v54 = vld [vmem:[%s7735_s9 + $0x11c] sm:$0xff]  }
  0x1d   :  { %184 = vst [vmem:[#allocation2 + $0x104] sm:$0xf] %v183_v49  ;;  %v185_v50 = vld [vmem:[%s7735_s9 + $0x104] sm:$0xf]  ;;  %v191_v52 = vld [vmem:[%s7735_s9 + $0x118] sm:$0xf] }
  0x1e   :  { %186 = vst [vmem:[#allocation2 + $0x108] sm:$0xf] %v185_v50  ;;  %188 = vst [vmem:[#allocation2 + $0x10c] sm:$0xff] %v187_v51   ;;  %v193_v53 = vld [vmem:[%s7735_s9 + $0x114] sm:$0xf]  ;;  %v203_v57 = vld [vmem:[%s7735_s9 + $0x12c] sm:$0xff]  }
  0x1f   :  { %192 = vst [vmem:[#allocation2 + $0x114] sm:$0xf] %v191_v52  ;;  %v199_v55 = vld [vmem:[%s7735_s9 + $0x128] sm:$0xf]  ;;  %194 = vst [vmem:[#allocation2 + $0x118] sm:$0xf] %v193_v53 }
  0x20   :  { %196 = vst [vmem:[#allocation2 + $0x11c] sm:$0xff] %v195_v54   ;;  %200 = vst [vmem:[#allocation2 + $0x124] sm:$0xf] %v199_v55  ;;  %v201_v56 = vld [vmem:[%s7735_s9 + $0x124] sm:$0xf]  ;;  %v211_v60 = vld [vmem:[%s7735_s9 + $0x13c] sm:$0xff]  }
  0x21   :  { %v207_v58 = vld [vmem:[%s7735_s9 + $0x138] sm:$0xf]  ;;  %202 = vst [vmem:[#allocation2 + $0x128] sm:$0xf] %v201_v56  ;;  %204 = vst [vmem:[#allocation2 + $0x12c] sm:$0xff] %v203_v57   ;;  %v219_v63 = vld [vmem:[%s7735_s9 + $0x14c] sm:$0xff]  }
  0x22   :  { %208 = vst [vmem:[#allocation2 + $0x134] sm:$0xf] %v207_v58  ;;  %v209_v59 = vld [vmem:[%s7735_s9 + $0x134] sm:$0xf]  ;;  %v215_v61 = vld [vmem:[%s7735_s9 + $0x148] sm:$0xf] }
  0x23   :  { %210 = vst [vmem:[#allocation2 + $0x138] sm:$0xf] %v209_v59  ;;  %212 = vst [vmem:[#allocation2 + $0x13c] sm:$0xff] %v211_v60   ;;  %v217_v62 = vld [vmem:[%s7735_s9 + $0x144] sm:$0xf]  ;;  %v227_v2 = vld [vmem:[%s7735_s9 + $0x15c] sm:$0xff]  }
  0x24   :  { %216 = vst [vmem:[#allocation2 + $0x144] sm:$0xf] %v215_v61  ;;  %v223_v0 = vld [vmem:[%s7735_s9 + $0x158] sm:$0xf]  ;;  %218 = vst [vmem:[#allocation2 + $0x148] sm:$0xf] %v217_v62 }
  0x25   :  { %220 = vst [vmem:[#allocation2 + $0x14c] sm:$0xff] %v219_v63   ;;  %224 = vst [vmem:[#allocation2 + $0x154] sm:$0xf] %v223_v0  ;;  %v225_v1 = vld [vmem:[%s7735_s9 + $0x154] sm:$0xf]  ;;  %v235_v5 = vld [vmem:[%s7735_s9 + $0x16c] sm:$0xff]  }
  0x26   :  { %v231_v3 = vld [vmem:[%s7735_s9 + $0x168] sm:$0xf]  ;;  %226 = vst [vmem:[#allocation2 + $0x158] sm:$0xf] %v225_v1  ;;  %228 = vst [vmem:[#allocation2 + $0x15c] sm:$0xff] %v227_v2   ;;  %v243_v8 = vld [vmem:[%s7735_s9 + $0x17c] sm:$0xff]  }
  0x27   :  { %232 = vst [vmem:[#allocation2 + $0x164] sm:$0xf] %v231_v3  ;;  %v233_v4 = vld [vmem:[%s7735_s9 + $0x164] sm:$0xf]  ;;  %v239_v6 = vld [vmem:[%s7735_s9 + $0x178] sm:$0xf] }
  0x28   :  { %234 = vst [vmem:[#allocation2 + $0x168] sm:$0xf] %v233_v4  ;;  %236 = vst [vmem:[#allocation2 + $0x16c] sm:$0xff] %v235_v5   ;;  %v241_v7 = vld [vmem:[%s7735_s9 + $0x174] sm:$0xf]  ;;  %v251_v11 = vld [vmem:[%s7735_s9 + $0x18c] sm:$0xff]  }
  0x29   :  { %240 = vst [vmem:[#allocation2 + $0x174] sm:$0xf] %v239_v6  ;;  %v247_v9 = vld [vmem:[%s7735_s9 + $0x188] sm:$0xf]  ;;  %242 = vst [vmem:[#allocation2 + $0x178] sm:$0xf] %v241_v7 }
  0x2a   :  { %244 = vst [vmem:[#allocation2 + $0x17c] sm:$0xff] %v243_v8   ;;  %248 = vst [vmem:[#allocation2 + $0x184] sm:$0xf] %v247_v9  ;;  %v249_v10 = vld [vmem:[%s7735_s9 + $0x184] sm:$0xf]  ;;  %v259_v14 = vld [vmem:[%s7735_s9 + $0x19c] sm:$0xff]  }
  0x2b   :  { %v255_v12 = vld [vmem:[%s7735_s9 + $0x198] sm:$0xf]  ;;  %250 = vst [vmem:[#allocation2 + $0x188] sm:$0xf] %v249_v10  ;;  %252 = vst [vmem:[#allocation2 + $0x18c] sm:$0xff] %v251_v11   ;;  %v267_v17 = vld [vmem:[%s7735_s9 + $0x1ac] sm:$0xff]  }
  0x2c   :  { %256 = vst [vmem:[#allocation2 + $0x194] sm:$0xf] %v255_v12  ;;  %v257_v13 = vld [vmem:[%s7735_s9 + $0x194] sm:$0xf]  ;;  %v263_v15 = vld [vmem:[%s7735_s9 + $0x1a8] sm:$0xf] }
  0x2d   :  { %258 = vst [vmem:[#allocation2 + $0x198] sm:$0xf] %v257_v13  ;;  %260 = vst [vmem:[#allocation2 + $0x19c] sm:$0xff] %v259_v14   ;;  %v265_v16 = vld [vmem:[%s7735_s9 + $0x1a4] sm:$0xf]  ;;  %v275_v20 = vld [vmem:[%s7735_s9 + $0x1bc] sm:$0xff]  }
  0x2e   :  { %264 = vst [vmem:[#allocation2 + $0x1a4] sm:$0xf] %v263_v15  ;;  %v271_v18 = vld [vmem:[%s7735_s9 + $0x1b8] sm:$0xf]  ;;  %266 = vst [vmem:[#allocation2 + $0x1a8] sm:$0xf] %v265_v16 }
  0x2f   :  { %268 = vst [vmem:[#allocation2 + $0x1ac] sm:$0xff] %v267_v17   ;;  %272 = vst [vmem:[#allocation2 + $0x1b4] sm:$0xf] %v271_v18  ;;  %v273_v19 = vld [vmem:[%s7735_s9 + $0x1b4] sm:$0xf]  ;;  %v283_v23 = vld [vmem:[%s7735_s9 + $0x1cc] sm:$0xff]  }
  0x30   :  { %v279_v21 = vld [vmem:[%s7735_s9 + $0x1c8] sm:$0xf]  ;;  %274 = vst [vmem:[#allocation2 + $0x1b8] sm:$0xf] %v273_v19  ;;  %276 = vst [vmem:[#allocation2 + $0x1bc] sm:$0xff] %v275_v20   ;;  %v291_v26 = vld [vmem:[%s7735_s9 + $0x1dc] sm:$0xff]  }
  0x31   :  { %280 = vst [vmem:[#allocation2 + $0x1c4] sm:$0xf] %v279_v21  ;;  %v281_v22 = vld [vmem:[%s7735_s9 + $0x1c4] sm:$0xf]  ;;  %v287_v24 = vld [vmem:[%s7735_s9 + $0x1d8] sm:$0xf] }
  0x32   :  { %282 = vst [vmem:[#allocation2 + $0x1c8] sm:$0xf] %v281_v22  ;;  %284 = vst [vmem:[#allocation2 + $0x1cc] sm:$0xff] %v283_v23   ;;  %v289_v25 = vld [vmem:[%s7735_s9 + $0x1d4] sm:$0xf]  ;;  %v299_v29 = vld [vmem:[%s7735_s9 + $0x1ec] sm:$0xff]  }
  0x33   :  { %288 = vst [vmem:[#allocation2 + $0x1d4] sm:$0xf] %v287_v24  ;;  %v295_v27 = vld [vmem:[%s7735_s9 + $0x1e8] sm:$0xf]  ;;  %290 = vst [vmem:[#allocation2 + $0x1d8] sm:$0xf] %v289_v25 }
  0x34   :  { %292 = vst [vmem:[#allocation2 + $0x1dc] sm:$0xff] %v291_v26   ;;  %296 = vst [vmem:[#allocation2 + $0x1e4] sm:$0xf] %v295_v27  ;;  %v297_v28 = vld [vmem:[%s7735_s9 + $0x1e4] sm:$0xf]  ;;  %v307_v32 = vld [vmem:[%s7735_s9 + $0x1fc] sm:$0xff]  }
  0x35   :  { %v303_v30 = vld [vmem:[%s7735_s9 + $0x1f8] sm:$0xf]  ;;  %298 = vst [vmem:[#allocation2 + $0x1e8] sm:$0xf] %v297_v28  ;;  %300 = vst [vmem:[#allocation2 + $0x1ec] sm:$0xff] %v299_v29   ;;  %v315_v35 = vld [vmem:[%s7735_s9 + $0x20c] sm:$0xff]  }
  0x36   :  { %304 = vst [vmem:[#allocation2 + $0x1f4] sm:$0xf] %v303_v30  ;;  %v305_v31 = vld [vmem:[%s7735_s9 + $0x1f4] sm:$0xf]  ;;  %v311_v33 = vld [vmem:[%s7735_s9 + $0x208] sm:$0xf] }
  0x37   :  { %306 = vst [vmem:[#allocation2 + $0x1f8] sm:$0xf] %v305_v31  ;;  %308 = vst [vmem:[#allocation2 + $0x1fc] sm:$0xff] %v307_v32   ;;  %v313_v34 = vld [vmem:[%s7735_s9 + $0x204] sm:$0xf]  ;;  %v323_v38 = vld [vmem:[%s7735_s9 + $0x21c] sm:$0xff]  }
  0x38   :  { %312 = vst [vmem:[#allocation2 + $0x204] sm:$0xf] %v311_v33  ;;  %v319_v36 = vld [vmem:[%s7735_s9 + $0x218] sm:$0xf]  ;;  %314 = vst [vmem:[#allocation2 + $0x208] sm:$0xf] %v313_v34 }
  0x39   :  { %316 = vst [vmem:[#allocation2 + $0x20c] sm:$0xff] %v315_v35   ;;  %320 = vst [vmem:[#allocation2 + $0x214] sm:$0xf] %v319_v36  ;;  %v321_v37 = vld [vmem:[%s7735_s9 + $0x214] sm:$0xf]  ;;  %v331_v41 = vld [vmem:[%s7735_s9 + $0x22c] sm:$0xff]  }
  0x3a   :  { %v327_v39 = vld [vmem:[%s7735_s9 + $0x228] sm:$0xf]  ;;  %322 = vst [vmem:[#allocation2 + $0x218] sm:$0xf] %v321_v37  ;;  %324 = vst [vmem:[#allocation2 + $0x21c] sm:$0xff] %v323_v38   ;;  %v339_v44 = vld [vmem:[%s7735_s9 + $0x23c] sm:$0xff]  }
  0x3b   :  { %328 = vst [vmem:[#allocation2 + $0x224] sm:$0xf] %v327_v39  ;;  %v329_v40 = vld [vmem:[%s7735_s9 + $0x224] sm:$0xf]  ;;  %v335_v42 = vld [vmem:[%s7735_s9 + $0x238] sm:$0xf] }
  0x3c   :  { %330 = vst [vmem:[#allocation2 + $0x228] sm:$0xf] %v329_v40  ;;  %332 = vst [vmem:[#allocation2 + $0x22c] sm:$0xff] %v331_v41   ;;  %v337_v43 = vld [vmem:[%s7735_s9 + $0x234] sm:$0xf]  ;;  %v347_v47 = vld [vmem:[%s7735_s9 + $0x24c] sm:$0xff]  }
  0x3d   :  { %336 = vst [vmem:[#allocation2 + $0x234] sm:$0xf] %v335_v42  ;;  %v343_v45 = vld [vmem:[%s7735_s9 + $0x248] sm:$0xf]  ;;  %338 = vst [vmem:[#allocation2 + $0x238] sm:$0xf] %v337_v43 }
  0x3e   :  { %340 = vst [vmem:[#allocation2 + $0x23c] sm:$0xff] %v339_v44   ;;  %344 = vst [vmem:[#allocation2 + $0x244] sm:$0xf] %v343_v45  ;;  %v345_v46 = vld [vmem:[%s7735_s9 + $0x244] sm:$0xf]  ;;  %v355_v50 = vld [vmem:[%s7735_s9 + $0x25c] sm:$0xff]  }
  0x3f   :  { %v351_v48 = vld [vmem:[%s7735_s9 + $0x258] sm:$0xf]  ;;  %346 = vst [vmem:[#allocation2 + $0x248] sm:$0xf] %v345_v46  ;;  %348 = vst [vmem:[#allocation2 + $0x24c] sm:$0xff] %v347_v47   ;;  %v363_v53 = vld [vmem:[%s7735_s9 + $0x26c] sm:$0xff]  }
  0x40   :  { %352 = vst [vmem:[#allocation2 + $0x254] sm:$0xf] %v351_v48  ;;  %v353_v49 = vld [vmem:[%s7735_s9 + $0x254] sm:$0xf]  ;;  %v359_v51 = vld [vmem:[%s7735_s9 + $0x268] sm:$0xf] }
  0x41   :  { %354 = vst [vmem:[#allocation2 + $0x258] sm:$0xf] %v353_v49  ;;  %356 = vst [vmem:[#allocation2 + $0x25c] sm:$0xff] %v355_v50   ;;  %v361_v52 = vld [vmem:[%s7735_s9 + $0x264] sm:$0xf]  ;;  %v371_v56 = vld [vmem:[%s7735_s9 + $0x27c] sm:$0xff]  }
  0x42   :  { %360 = vst [vmem:[#allocation2 + $0x264] sm:$0xf] %v359_v51  ;;  %v367_v54 = vld [vmem:[%s7735_s9 + $0x278] sm:$0xf]  ;;  %362 = vst [vmem:[#allocation2 + $0x268] sm:$0xf] %v361_v52 }
  0x43   :  { %364 = vst [vmem:[#allocation2 + $0x26c] sm:$0xff] %v363_v53   ;;  %368 = vst [vmem:[#allocation2 + $0x274] sm:$0xf] %v367_v54  ;;  %v369_v55 = vld [vmem:[%s7735_s9 + $0x274] sm:$0xf]  ;;  %v379_v59 = vld [vmem:[%s7735_s9 + $0x28c] sm:$0xff]  }
  0x44   :  { %v375_v57 = vld [vmem:[%s7735_s9 + $0x288] sm:$0xf]  ;;  %370 = vst [vmem:[#allocation2 + $0x278] sm:$0xf] %v369_v55  ;;  %372 = vst [vmem:[#allocation2 + $0x27c] sm:$0xff] %v371_v56   ;;  %v387_v62 = vld [vmem:[%s7735_s9 + $0x29c] sm:$0xff]  }
  0x45   :  { %376 = vst [vmem:[#allocation2 + $0x284] sm:$0xf] %v375_v57  ;;  %v377_v58 = vld [vmem:[%s7735_s9 + $0x284] sm:$0xf]  ;;  %v383_v60 = vld [vmem:[%s7735_s9 + $0x298] sm:$0xf] }
  0x46   :  { %378 = vst [vmem:[#allocation2 + $0x288] sm:$0xf] %v377_v58  ;;  %380 = vst [vmem:[#allocation2 + $0x28c] sm:$0xff] %v379_v59   ;;  %v385_v61 = vld [vmem:[%s7735_s9 + $0x294] sm:$0xf]  ;;  %v395_v1 = vld [vmem:[%s7735_s9 + $0x2ac] sm:$0xff]  }
  0x47   :  { %384 = vst [vmem:[#allocation2 + $0x294] sm:$0xf] %v383_v60  ;;  %v391_v63 = vld [vmem:[%s7735_s9 + $0x2a8] sm:$0xf]  ;;  %386 = vst [vmem:[#allocation2 + $0x298] sm:$0xf] %v385_v61 }
  0x48   :  { %388 = vst [vmem:[#allocation2 + $0x29c] sm:$0xff] %v387_v62   ;;  %392 = vst [vmem:[#allocation2 + $0x2a4] sm:$0xf] %v391_v63  ;;  %v393_v0 = vld [vmem:[%s7735_s9 + $0x2a4] sm:$0xf]  ;;  %v403_v4 = vld [vmem:[%s7735_s9 + $0x2bc] sm:$0xff]  }
  0x49   :  { %v399_v2 = vld [vmem:[%s7735_s9 + $0x2b8] sm:$0xf]  ;;  %394 = vst [vmem:[#allocation2 + $0x2a8] sm:$0xf] %v393_v0  ;;  %396 = vst [vmem:[#allocation2 + $0x2ac] sm:$0xff] %v395_v1   ;;  %v411_v7 = vld [vmem:[%s7735_s9 + $0x2cc] sm:$0xff]  }
  0x4a   :  { %400 = vst [vmem:[#allocation2 + $0x2b4] sm:$0xf] %v399_v2  ;;  %v401_v3 = vld [vmem:[%s7735_s9 + $0x2b4] sm:$0xf]  ;;  %v407_v5 = vld [vmem:[%s7735_s9 + $0x2c8] sm:$0xf] }
  0x4b   :  { %402 = vst [vmem:[#allocation2 + $0x2b8] sm:$0xf] %v401_v3  ;;  %404 = vst [vmem:[#allocation2 + $0x2bc] sm:$0xff] %v403_v4   ;;  %v409_v6 = vld [vmem:[%s7735_s9 + $0x2c4] sm:$0xf]  ;;  %v419_v10 = vld [vmem:[%s7735_s9 + $0x2dc] sm:$0xff]  }
  0x4c   :  { %408 = vst [vmem:[#allocation2 + $0x2c4] sm:$0xf] %v407_v5  ;;  %v415_v8 = vld [vmem:[%s7735_s9 + $0x2d8] sm:$0xf]  ;;  %410 = vst [vmem:[#allocation2 + $0x2c8] sm:$0xf] %v409_v6 }
  0x4d   :  { %412 = vst [vmem:[#allocation2 + $0x2cc] sm:$0xff] %v411_v7   ;;  %416 = vst [vmem:[#allocation2 + $0x2d4] sm:$0xf] %v415_v8  ;;  %v417_v9 = vld [vmem:[%s7735_s9 + $0x2d4] sm:$0xf]  ;;  %v427_v13 = vld [vmem:[%s7735_s9 + $0x2ec] sm:$0xff]  }
  0x4e   :  { %v423_v11 = vld [vmem:[%s7735_s9 + $0x2e8] sm:$0xf]  ;;  %418 = vst [vmem:[#allocation2 + $0x2d8] sm:$0xf] %v417_v9  ;;  %420 = vst [vmem:[#allocation2 + $0x2dc] sm:$0xff] %v419_v10   ;;  %v435_v16 = vld [vmem:[%s7735_s9 + $0x2fc] sm:$0xff]  }
  0x4f   :  { %424 = vst [vmem:[#allocation2 + $0x2e4] sm:$0xf] %v423_v11  ;;  %v425_v12 = vld [vmem:[%s7735_s9 + $0x2e4] sm:$0xf]  ;;  %v431_v14 = vld [vmem:[%s7735_s9 + $0x2f8] sm:$0xf] }
  0x50   :  { %426 = vst [vmem:[#allocation2 + $0x2e8] sm:$0xf] %v425_v12  ;;  %428 = vst [vmem:[#allocation2 + $0x2ec] sm:$0xff] %v427_v13   ;;  %v433_v15 = vld [vmem:[%s7735_s9 + $0x2f4] sm:$0xf]  ;;  %v443_v19 = vld [vmem:[%s7735_s9 + $0x30c] sm:$0xff]  }
  0x51   :  { %432 = vst [vmem:[#allocation2 + $0x2f4] sm:$0xf] %v431_v14  ;;  %v439_v17 = vld [vmem:[%s7735_s9 + $0x308] sm:$0xf]  ;;  %434 = vst [vmem:[#allocation2 + $0x2f8] sm:$0xf] %v433_v15 }
  0x52   :  { %436 = vst [vmem:[#allocation2 + $0x2fc] sm:$0xff] %v435_v16   ;;  %440 = vst [vmem:[#allocation2 + $0x304] sm:$0xf] %v439_v17  ;;  %v441_v18 = vld [vmem:[%s7735_s9 + $0x304] sm:$0xf]  ;;  %v451_v22 = vld [vmem:[%s7735_s9 + $0x31c] sm:$0xff]  }
  0x53   :  { %v447_v20 = vld [vmem:[%s7735_s9 + $0x318] sm:$0xf]  ;;  %442 = vst [vmem:[#allocation2 + $0x308] sm:$0xf] %v441_v18  ;;  %444 = vst [vmem:[#allocation2 + $0x30c] sm:$0xff] %v443_v19   ;;  %v459_v25 = vld [vmem:[%s7735_s9 + $0x32c] sm:$0xff]  }
  0x54   :  { %448 = vst [vmem:[#allocation2 + $0x314] sm:$0xf] %v447_v20  ;;  %v449_v21 = vld [vmem:[%s7735_s9 + $0x314] sm:$0xf]  ;;  %v455_v23 = vld [vmem:[%s7735_s9 + $0x328] sm:$0xf] }
  0x55   :  { %450 = vst [vmem:[#allocation2 + $0x318] sm:$0xf] %v449_v21  ;;  %452 = vst [vmem:[#allocation2 + $0x31c] sm:$0xff] %v451_v22   ;;  %v457_v24 = vld [vmem:[%s7735_s9 + $0x324] sm:$0xf]  ;;  %v467_v28 = vld [vmem:[%s7735_s9 + $0x33c] sm:$0xff]  }
  0x56   :  { %456 = vst [vmem:[#allocation2 + $0x324] sm:$0xf] %v455_v23  ;;  %v463_v26 = vld [vmem:[%s7735_s9 + $0x338] sm:$0xf]  ;;  %458 = vst [vmem:[#allocation2 + $0x328] sm:$0xf] %v457_v24 }
  0x57   :  { %460 = vst [vmem:[#allocation2 + $0x32c] sm:$0xff] %v459_v25   ;;  %464 = vst [vmem:[#allocation2 + $0x334] sm:$0xf] %v463_v26  ;;  %v465_v27 = vld [vmem:[%s7735_s9 + $0x334] sm:$0xf]  ;;  %v475_v31 = vld [vmem:[%s7735_s9 + $0x34c] sm:$0xff]  }
  0x58   :  { %v471_v29 = vld [vmem:[%s7735_s9 + $0x348] sm:$0xf]  ;;  %466 = vst [vmem:[#allocation2 + $0x338] sm:$0xf] %v465_v27  ;;  %468 = vst [vmem:[#allocation2 + $0x33c] sm:$0xff] %v467_v28   ;;  %v483_v34 = vld [vmem:[%s7735_s9 + $0x35c] sm:$0xff]  }
  0x59   :  { %472 = vst [vmem:[#allocation2 + $0x344] sm:$0xf] %v471_v29  ;;  %v473_v30 = vld [vmem:[%s7735_s9 + $0x344] sm:$0xf]  ;;  %v479_v32 = vld [vmem:[%s7735_s9 + $0x358] sm:$0xf] }
  0x5a   :  { %474 = vst [vmem:[#allocation2 + $0x348] sm:$0xf] %v473_v30  ;;  %476 = vst [vmem:[#allocation2 + $0x34c] sm:$0xff] %v475_v31   ;;  %v481_v33 = vld [vmem:[%s7735_s9 + $0x354] sm:$0xf]  ;;  %v491_v37 = vld [vmem:[%s7735_s9 + $0x36c] sm:$0xff]  }
  0x5b   :  { %480 = vst [vmem:[#allocation2 + $0x354] sm:$0xf] %v479_v32  ;;  %v487_v35 = vld [vmem:[%s7735_s9 + $0x368] sm:$0xf]  ;;  %482 = vst [vmem:[#allocation2 + $0x358] sm:$0xf] %v481_v33 }
  0x5c   :  { %484 = vst [vmem:[#allocation2 + $0x35c] sm:$0xff] %v483_v34   ;;  %488 = vst [vmem:[#allocation2 + $0x364] sm:$0xf] %v487_v35  ;;  %v489_v36 = vld [vmem:[%s7735_s9 + $0x364] sm:$0xf]  ;;  %v499_v40 = vld [vmem:[%s7735_s9 + $0x37c] sm:$0xff]  }
  0x5d   :  { %v495_v38 = vld [vmem:[%s7735_s9 + $0x378] sm:$0xf]  ;;  %490 = vst [vmem:[#allocation2 + $0x368] sm:$0xf] %v489_v36  ;;  %492 = vst [vmem:[#allocation2 + $0x36c] sm:$0xff] %v491_v37   ;;  %v507_v43 = vld [vmem:[%s7735_s9 + $0x38c] sm:$0xff]  }
  0x5e   :  { %496 = vst [vmem:[#allocation2 + $0x374] sm:$0xf] %v495_v38  ;;  %v497_v39 = vld [vmem:[%s7735_s9 + $0x374] sm:$0xf]  ;;  %v503_v41 = vld [vmem:[%s7735_s9 + $0x388] sm:$0xf] }
  0x5f   :  { %498 = vst [vmem:[#allocation2 + $0x378] sm:$0xf] %v497_v39  ;;  %500 = vst [vmem:[#allocation2 + $0x37c] sm:$0xff] %v499_v40   ;;  %v505_v42 = vld [vmem:[%s7735_s9 + $0x384] sm:$0xf]  ;;  %v515_v46 = vld [vmem:[%s7735_s9 + $0x39c] sm:$0xff]  }
  0x60   :  { %504 = vst [vmem:[#allocation2 + $0x384] sm:$0xf] %v503_v41  ;;  %v511_v44 = vld [vmem:[%s7735_s9 + $0x398] sm:$0xf]  ;;  %506 = vst [vmem:[#allocation2 + $0x388] sm:$0xf] %v505_v42 }
  0x61   :  { %508 = vst [vmem:[#allocation2 + $0x38c] sm:$0xff] %v507_v43   ;;  %512 = vst [vmem:[#allocation2 + $0x394] sm:$0xf] %v511_v44  ;;  %v513_v45 = vld [vmem:[%s7735_s9 + $0x394] sm:$0xf]  ;;  %v523_v49 = vld [vmem:[%s7735_s9 + $0x3ac] sm:$0xff]  }
  0x62   :  { %v519_v47 = vld [vmem:[%s7735_s9 + $0x3a8] sm:$0xf]  ;;  %514 = vst [vmem:[#allocation2 + $0x398] sm:$0xf] %v513_v45  ;;  %516 = vst [vmem:[#allocation2 + $0x39c] sm:$0xff] %v515_v46   ;;  %v531_v52 = vld [vmem:[%s7735_s9 + $0x3bc] sm:$0xff]  }
  0x63   :  { %520 = vst [vmem:[#allocation2 + $0x3a4] sm:$0xf] %v519_v47  ;;  %v521_v48 = vld [vmem:[%s7735_s9 + $0x3a4] sm:$0xf]  ;;  %v527_v50 = vld [vmem:[%s7735_s9 + $0x3b8] sm:$0xf] }
  0x64   :  { %522 = vst [vmem:[#allocation2 + $0x3a8] sm:$0xf] %v521_v48  ;;  %524 = vst [vmem:[#allocation2 + $0x3ac] sm:$0xff] %v523_v49   ;;  %v529_v51 = vld [vmem:[%s7735_s9 + $0x3b4] sm:$0xf]  ;;  %v539_v55 = vld [vmem:[%s7735_s9 + $0x3cc] sm:$0xff]  }
  0x65   :  { %528 = vst [vmem:[#allocation2 + $0x3b4] sm:$0xf] %v527_v50  ;;  %v535_v53 = vld [vmem:[%s7735_s9 + $0x3c8] sm:$0xf]  ;;  %530 = vst [vmem:[#allocation2 + $0x3b8] sm:$0xf] %v529_v51 }
  0x66   :  { %532 = vst [vmem:[#allocation2 + $0x3bc] sm:$0xff] %v531_v52   ;;  %536 = vst [vmem:[#allocation2 + $0x3c4] sm:$0xf] %v535_v53  ;;  %v537_v54 = vld [vmem:[%s7735_s9 + $0x3c4] sm:$0xf]  ;;  %v547_v58 = vld [vmem:[%s7735_s9 + $0x3dc] sm:$0xff]  }
  0x67   :  { %v543_v56 = vld [vmem:[%s7735_s9 + $0x3d8] sm:$0xf]  ;;  %538 = vst [vmem:[#allocation2 + $0x3c8] sm:$0xf] %v537_v54  ;;  %540 = vst [vmem:[#allocation2 + $0x3cc] sm:$0xff] %v539_v55   ;;  %v555_v61 = vld [vmem:[%s7735_s9 + $0x3ec] sm:$0xff]  }
  0x68   :  { %544 = vst [vmem:[#allocation2 + $0x3d4] sm:$0xf] %v543_v56  ;;  %v545_v57 = vld [vmem:[%s7735_s9 + $0x3d4] sm:$0xf]  ;;  %v551_v59 = vld [vmem:[%s7735_s9 + $0x3e8] sm:$0xf] }
  0x69   :  { %546 = vst [vmem:[#allocation2 + $0x3d8] sm:$0xf] %v545_v57  ;;  %548 = vst [vmem:[#allocation2 + $0x3dc] sm:$0xff] %v547_v58   ;;  %v553_v60 = vld [vmem:[%s7735_s9 + $0x3e4] sm:$0xf]  ;;  %v563_v0 = vld [vmem:[%s7735_s9 + $0x3fc] sm:$0xff]  }
  0x6a   :  { %552 = vst [vmem:[#allocation2 + $0x3e4] sm:$0xf] %v551_v59  ;;  %v559_v62 = vld [vmem:[%s7735_s9 + $0x3f8] sm:$0xf]  ;;  %554 = vst [vmem:[#allocation2 + $0x3e8] sm:$0xf] %v553_v60 }
  0x6b   :  { %556 = vst [vmem:[#allocation2 + $0x3ec] sm:$0xff] %v555_v61   ;;  %560 = vst [vmem:[#allocation2 + $0x3f4] sm:$0xf] %v559_v62  ;;  %v561_v63 = vld [vmem:[%s7735_s9 + $0x3f4] sm:$0xf]  ;;  %v571_v3 = vld [vmem:[%s7735_s9 + $0x40c] sm:$0xff]  }
  0x6c   :  { %v567_v1 = vld [vmem:[%s7735_s9 + $0x408] sm:$0xf]  ;;  %562 = vst [vmem:[#allocation2 + $0x3f8] sm:$0xf] %v561_v63  ;;  %564 = vst [vmem:[#allocation2 + $0x3fc] sm:$0xff] %v563_v0   ;;  %v579_v6 = vld [vmem:[%s7735_s9 + $0x41c] sm:$0xff]  }
  0x6d   :  { %568 = vst [vmem:[#allocation2 + $0x404] sm:$0xf] %v567_v1  ;;  %v569_v2 = vld [vmem:[%s7735_s9 + $0x404] sm:$0xf]  ;;  %v575_v4 = vld [vmem:[%s7735_s9 + $0x418] sm:$0xf] }
  0x6e   :  { %570 = vst [vmem:[#allocation2 + $0x408] sm:$0xf] %v569_v2  ;;  %572 = vst [vmem:[#allocation2 + $0x40c] sm:$0xff] %v571_v3   ;;  %v577_v5 = vld [vmem:[%s7735_s9 + $0x414] sm:$0xf]  ;;  %v587_v9 = vld [vmem:[%s7735_s9 + $0x42c] sm:$0xff]  }
  0x6f   :  { %576 = vst [vmem:[#allocation2 + $0x414] sm:$0xf] %v575_v4  ;;  %v583_v7 = vld [vmem:[%s7735_s9 + $0x428] sm:$0xf]  ;;  %578 = vst [vmem:[#allocation2 + $0x418] sm:$0xf] %v577_v5 }
  0x70   :  { %580 = vst [vmem:[#allocation2 + $0x41c] sm:$0xff] %v579_v6   ;;  %584 = vst [vmem:[#allocation2 + $0x424] sm:$0xf] %v583_v7  ;;  %v585_v8 = vld [vmem:[%s7735_s9 + $0x424] sm:$0xf]  ;;  %v595_v12 = vld [vmem:[%s7735_s9 + $0x43c] sm:$0xff]  }
  0x71   :  { %v591_v10 = vld [vmem:[%s7735_s9 + $0x438] sm:$0xf]  ;;  %586 = vst [vmem:[#allocation2 + $0x428] sm:$0xf] %v585_v8  ;;  %588 = vst [vmem:[#allocation2 + $0x42c] sm:$0xff] %v587_v9   ;;  %v603_v15 = vld [vmem:[%s7735_s9 + $0x44c] sm:$0xff]  }
  0x72   :  { %592 = vst [vmem:[#allocation2 + $0x434] sm:$0xf] %v591_v10  ;;  %v593_v11 = vld [vmem:[%s7735_s9 + $0x434] sm:$0xf]  ;;  %v599_v13 = vld [vmem:[%s7735_s9 + $0x448] sm:$0xf] }
  0x73   :  { %594 = vst [vmem:[#allocation2 + $0x438] sm:$0xf] %v593_v11  ;;  %596 = vst [vmem:[#allocation2 + $0x43c] sm:$0xff] %v595_v12   ;;  %v601_v14 = vld [vmem:[%s7735_s9 + $0x444] sm:$0xf]  ;;  %v611_v18 = vld [vmem:[%s7735_s9 + $0x45c] sm:$0xff]  }
  0x74   :  { %600 = vst [vmem:[#allocation2 + $0x444] sm:$0xf] %v599_v13  ;;  %v607_v16 = vld [vmem:[%s7735_s9 + $0x458] sm:$0xf]  ;;  %602 = vst [vmem:[#allocation2 + $0x448] sm:$0xf] %v601_v14 }
  0x75   :  { %604 = vst [vmem:[#allocation2 + $0x44c] sm:$0xff] %v603_v15   ;;  %608 = vst [vmem:[#allocation2 + $0x454] sm:$0xf] %v607_v16  ;;  %v609_v17 = vld [vmem:[%s7735_s9 + $0x454] sm:$0xf]  ;;  %v619_v21 = vld [vmem:[%s7735_s9 + $0x46c] sm:$0xff]  }
  0x76   :  { %v615_v19 = vld [vmem:[%s7735_s9 + $0x468] sm:$0xf]  ;;  %610 = vst [vmem:[#allocation2 + $0x458] sm:$0xf] %v609_v17  ;;  %612 = vst [vmem:[#allocation2 + $0x45c] sm:$0xff] %v611_v18   ;;  %v627_v24 = vld [vmem:[%s7735_s9 + $0x47c] sm:$0xff]  }
  0x77   :  { %616 = vst [vmem:[#allocation2 + $0x464] sm:$0xf] %v615_v19  ;;  %v617_v20 = vld [vmem:[%s7735_s9 + $0x464] sm:$0xf]  ;;  %v623_v22 = vld [vmem:[%s7735_s9 + $0x478] sm:$0xf] }
  0x78   :  { %618 = vst [vmem:[#allocation2 + $0x468] sm:$0xf] %v617_v20  ;;  %620 = vst [vmem:[#allocation2 + $0x46c] sm:$0xff] %v619_v21   ;;  %v625_v23 = vld [vmem:[%s7735_s9 + $0x474] sm:$0xf]  ;;  %v635_v27 = vld [vmem:[%s7735_s9 + $0x48c] sm:$0xff]  }
  0x79   :  { %624 = vst [vmem:[#allocation2 + $0x474] sm:$0xf] %v623_v22  ;;  %v631_v25 = vld [vmem:[%s7735_s9 + $0x488] sm:$0xf]  ;;  %626 = vst [vmem:[#allocation2 + $0x478] sm:$0xf] %v625_v23 }
  0x7a   :  { %628 = vst [vmem:[#allocation2 + $0x47c] sm:$0xff] %v627_v24   ;;  %632 = vst [vmem:[#allocation2 + $0x484] sm:$0xf] %v631_v25  ;;  %v633_v26 = vld [vmem:[%s7735_s9 + $0x484] sm:$0xf]  ;;  %v643_v30 = vld [vmem:[%s7735_s9 + $0x49c] sm:$0xff]  }
  0x7b   :  { %v639_v28 = vld [vmem:[%s7735_s9 + $0x498] sm:$0xf]  ;;  %634 = vst [vmem:[#allocation2 + $0x488] sm:$0xf] %v633_v26  ;;  %636 = vst [vmem:[#allocation2 + $0x48c] sm:$0xff] %v635_v27   ;;  %v651_v33 = vld [vmem:[%s7735_s9 + $0x4ac] sm:$0xff]  }
  0x7c   :  { %640 = vst [vmem:[#allocation2 + $0x494] sm:$0xf] %v639_v28  ;;  %v641_v29 = vld [vmem:[%s7735_s9 + $0x494] sm:$0xf]  ;;  %v647_v31 = vld [vmem:[%s7735_s9 + $0x4a8] sm:$0xf] }
  0x7d   :  { %642 = vst [vmem:[#allocation2 + $0x498] sm:$0xf] %v641_v29  ;;  %644 = vst [vmem:[#allocation2 + $0x49c] sm:$0xff] %v643_v30   ;;  %v649_v32 = vld [vmem:[%s7735_s9 + $0x4a4] sm:$0xf]  ;;  %v659_v36 = vld [vmem:[%s7735_s9 + $0x4bc] sm:$0xff]  }
  0x7e   :  { %648 = vst [vmem:[#allocation2 + $0x4a4] sm:$0xf] %v647_v31  ;;  %v655_v34 = vld [vmem:[%s7735_s9 + $0x4b8] sm:$0xf]  ;;  %650 = vst [vmem:[#allocation2 + $0x4a8] sm:$0xf] %v649_v32 }
  0x7f   :  { %652 = vst [vmem:[#allocation2 + $0x4ac] sm:$0xff] %v651_v33   ;;  %656 = vst [vmem:[#allocation2 + $0x4b4] sm:$0xf] %v655_v34  ;;  %v657_v35 = vld [vmem:[%s7735_s9 + $0x4b4] sm:$0xf]  ;;  %v667_v39 = vld [vmem:[%s7735_s9 + $0x4cc] sm:$0xff]  }
  0x80   :  { %v663_v37 = vld [vmem:[%s7735_s9 + $0x4c8] sm:$0xf]  ;;  %658 = vst [vmem:[#allocation2 + $0x4b8] sm:$0xf] %v657_v35  ;;  %660 = vst [vmem:[#allocation2 + $0x4bc] sm:$0xff] %v659_v36   ;;  %v675_v42 = vld [vmem:[%s7735_s9 + $0x4dc] sm:$0xff]  }
  0x81   :  { %664 = vst [vmem:[#allocation2 + $0x4c4] sm:$0xf] %v663_v37  ;;  %v665_v38 = vld [vmem:[%s7735_s9 + $0x4c4] sm:$0xf]  ;;  %v671_v40 = vld [vmem:[%s7735_s9 + $0x4d8] sm:$0xf] }
  0x82   :  { %666 = vst [vmem:[#allocation2 + $0x4c8] sm:$0xf] %v665_v38  ;;  %668 = vst [vmem:[#allocation2 + $0x4cc] sm:$0xff] %v667_v39   ;;  %v673_v41 = vld [vmem:[%s7735_s9 + $0x4d4] sm:$0xf]  ;;  %v683_v45 = vld [vmem:[%s7735_s9 + $0x4ec] sm:$0xff]  }
  0x83   :  { %672 = vst [vmem:[#allocation2 + $0x4d4] sm:$0xf] %v671_v40  ;;  %v679_v43 = vld [vmem:[%s7735_s9 + $0x4e8] sm:$0xf]  ;;  %674 = vst [vmem:[#allocation2 + $0x4d8] sm:$0xf] %v673_v41 }
  0x84   :  { %676 = vst [vmem:[#allocation2 + $0x4dc] sm:$0xff] %v675_v42   ;;  %680 = vst [vmem:[#allocation2 + $0x4e4] sm:$0xf] %v679_v43  ;;  %v681_v44 = vld [vmem:[%s7735_s9 + $0x4e4] sm:$0xf]  ;;  %v691_v48 = vld [vmem:[%s7735_s9 + $0x4fc] sm:$0xff]  }
  0x85   :  { %v687_v46 = vld [vmem:[%s7735_s9 + $0x4f8] sm:$0xf]  ;;  %682 = vst [vmem:[#allocation2 + $0x4e8] sm:$0xf] %v681_v44  ;;  %684 = vst [vmem:[#allocation2 + $0x4ec] sm:$0xff] %v683_v45   ;;  %v699_v51 = vld [vmem:[%s7735_s9 + $0x50c] sm:$0xff]  }
  0x86   :  { %688 = vst [vmem:[#allocation2 + $0x4f4] sm:$0xf] %v687_v46  ;;  %v689_v47 = vld [vmem:[%s7735_s9 + $0x4f4] sm:$0xf]  ;;  %v695_v49 = vld [vmem:[%s7735_s9 + $0x508] sm:$0xf] }
  0x87   :  { %690 = vst [vmem:[#allocation2 + $0x4f8] sm:$0xf] %v689_v47  ;;  %692 = vst [vmem:[#allocation2 + $0x4fc] sm:$0xff] %v691_v48   ;;  %v697_v50 = vld [vmem:[%s7735_s9 + $0x504] sm:$0xf]  ;;  %v707_v54 = vld [vmem:[%s7735_s9 + $0x51c] sm:$0xff]  }
  0x88   :  { %696 = vst [vmem:[#allocation2 + $0x504] sm:$0xf] %v695_v49  ;;  %v703_v52 = vld [vmem:[%s7735_s9 + $0x518] sm:$0xf]  ;;  %698 = vst [vmem:[#allocation2 + $0x508] sm:$0xf] %v697_v50 }
  0x89   :  { %700 = vst [vmem:[#allocation2 + $0x50c] sm:$0xff] %v699_v51   ;;  %704 = vst [vmem:[#allocation2 + $0x514] sm:$0xf] %v703_v52  ;;  %v705_v53 = vld [vmem:[%s7735_s9 + $0x514] sm:$0xf]  ;;  %v715_v57 = vld [vmem:[%s7735_s9 + $0x52c] sm:$0xff]  }
  0x8a   :  { %v711_v55 = vld [vmem:[%s7735_s9 + $0x528] sm:$0xf]  ;;  %706 = vst [vmem:[#allocation2 + $0x518] sm:$0xf] %v705_v53  ;;  %708 = vst [vmem:[#allocation2 + $0x51c] sm:$0xff] %v707_v54   ;;  %v723_v60 = vld [vmem:[%s7735_s9 + $0x53c] sm:$0xff]  }
  0x8b   :  { %712 = vst [vmem:[#allocation2 + $0x524] sm:$0xf] %v711_v55  ;;  %v713_v56 = vld [vmem:[%s7735_s9 + $0x524] sm:$0xf]  ;;  %v719_v58 = vld [vmem:[%s7735_s9 + $0x538] sm:$0xf] }
  0x8c   :  { %714 = vst [vmem:[#allocation2 + $0x528] sm:$0xf] %v713_v56  ;;  %716 = vst [vmem:[#allocation2 + $0x52c] sm:$0xff] %v715_v57   ;;  %v721_v59 = vld [vmem:[%s7735_s9 + $0x534] sm:$0xf]  ;;  %v731_v63 = vld [vmem:[%s7735_s9 + $0x54c] sm:$0xff]  }
  0x8d   :  { %720 = vst [vmem:[#allocation2 + $0x534] sm:$0xf] %v719_v58  ;;  %v727_v61 = vld [vmem:[%s7735_s9 + $0x548] sm:$0xf]  ;;  %722 = vst [vmem:[#allocation2 + $0x538] sm:$0xf] %v721_v59 }
  0x8e   :  { %724 = vst [vmem:[#allocation2 + $0x53c] sm:$0xff] %v723_v60   ;;  %728 = vst [vmem:[#allocation2 + $0x544] sm:$0xf] %v727_v61  ;;  %v729_v62 = vld [vmem:[%s7735_s9 + $0x544] sm:$0xf]  ;;  %v739_v2 = vld [vmem:[%s7735_s9 + $0x55c] sm:$0xff]  }
  0x8f   :  { %v735_v0 = vld [vmem:[%s7735_s9 + $0x558] sm:$0xf]  ;;  %730 = vst [vmem:[#allocation2 + $0x548] sm:$0xf] %v729_v62  ;;  %732 = vst [vmem:[#allocation2 + $0x54c] sm:$0xff] %v731_v63   ;;  %v747_v5 = vld [vmem:[%s7735_s9 + $0x56c] sm:$0xff]  }
  0x90   :  { %736 = vst [vmem:[#allocation2 + $0x554] sm:$0xf] %v735_v0  ;;  %v737_v1 = vld [vmem:[%s7735_s9 + $0x554] sm:$0xf]  ;;  %v743_v3 = vld [vmem:[%s7735_s9 + $0x568] sm:$0xf] }
  0x91   :  { %738 = vst [vmem:[#allocation2 + $0x558] sm:$0xf] %v737_v1  ;;  %740 = vst [vmem:[#allocation2 + $0x55c] sm:$0xff] %v739_v2   ;;  %v745_v4 = vld [vmem:[%s7735_s9 + $0x564] sm:$0xf]  ;;  %v755_v8 = vld [vmem:[%s7735_s9 + $0x57c] sm:$0xff]  }
  0x92   :  { %744 = vst [vmem:[#allocation2 + $0x564] sm:$0xf] %v743_v3  ;;  %v751_v6 = vld [vmem:[%s7735_s9 + $0x578] sm:$0xf]  ;;  %746 = vst [vmem:[#allocation2 + $0x568] sm:$0xf] %v745_v4 }
  0x93   :  { %748 = vst [vmem:[#allocation2 + $0x56c] sm:$0xff] %v747_v5   ;;  %752 = vst [vmem:[#allocation2 + $0x574] sm:$0xf] %v751_v6  ;;  %v753_v7 = vld [vmem:[%s7735_s9 + $0x574] sm:$0xf]  ;;  %v763_v11 = vld [vmem:[%s7735_s9 + $0x58c] sm:$0xff]  }
  0x94   :  { %v759_v9 = vld [vmem:[%s7735_s9 + $0x588] sm:$0xf]  ;;  %754 = vst [vmem:[#allocation2 + $0x578] sm:$0xf] %v753_v7  ;;  %756 = vst [vmem:[#allocation2 + $0x57c] sm:$0xff] %v755_v8  }
  0x95   :  { %760 = vst [vmem:[#allocation2 + $0x584] sm:$0xf] %v759_v9  ;;  %v761_v10 = vld [vmem:[%s7735_s9 + $0x584] sm:$0xf]  ;;  %v767_v12 = vld [vmem:[%s7735_s9 + $0x598] sm:$0xf] }
  0x96   :  { %762 = vst [vmem:[#allocation2 + $0x588] sm:$0xf] %v761_v10  ;;  %764 = vst [vmem:[#allocation2 + $0x58c] sm:$0xff] %v763_v11   ;;  %v769_v13 = vld [vmem:[%s7735_s9 + $0x594] sm:$0xf] }
  0x97   :  { %768 = vst [vmem:[#allocation2 + $0x594] sm:$0xf] %v767_v12  ;;  %v771_v14 = vld [vmem:[%s7735_s9 + $0x59c] sm:$0xf]  ;;  %770 = vst [vmem:[#allocation2 + $0x598] sm:$0xf] %v769_v13 }
  0x98   :  { %772 = vst [vmem:[#allocation2 + $0x59c] sm:$0xf] %v771_v14 }
  0x99   :  { %1523 = vsyncadd [#allocation4], 23040  ;;  %v6490_v15 = vld [vmem:[%s7736_s10] sm:$0xff]  ;;  %v6495_v16 = vld [vmem:[%s7736_s10 + $0x8] sm:$0xff] }
  0x9a   :  { %v6500_v17 = vld [vmem:[%s7736_s10 + $0x10] sm:$0xff]  ;;  %v6505_v18 = vld [vmem:[%s7736_s10 + $0x18] sm:$0xff]  ;;  %v6510_v19 = vld [vmem:[%s7736_s10 + $0x20] sm:$0xff] }
  0x9b   :  { %v6515_v20 = vld [vmem:[%s7736_s10 + $0x28] sm:$0xff]  ;;  %v6520_v21 = vld [vmem:[%s7736_s10 + $0x30] sm:$0xff]  ;;  %v6525_v22 = vld [vmem:[%s7736_s10 + $0x38] sm:$0xff] }
  0x9c   :  { %v6530_v23 = vld [vmem:[%s7736_s10 + $0x40] sm:$0xff]  ;;  %v6535_v24 = vld [vmem:[%s7736_s10 + $0x48] sm:$0xff]  ;;  %v6540_v25 = vld [vmem:[%s7736_s10 + $0x50] sm:$0xff] }
  0x9d   :  { %v6545_v26 = vld [vmem:[%s7736_s10 + $0x58] sm:$0xff]  ;;  %v6550_v27 = vld [vmem:[%s7736_s10 + $0x60] sm:$0xff]  ;;  %v6555_v28 = vld [vmem:[%s7736_s10 + $0x68] sm:$0xff] }
  0x9e   :  { %7744 = vst [vmem:[#allocation12_spill] sm:$0xff] %v6545_v26  ;;  %7745 = vst [vmem:[#allocation13_spill] sm:$0xff] %v6550_v27  ;;  %v6560_v29 = vld [vmem:[%s7736_s10 + $0x70] sm:$0xff]  ;;  %v6565_v30 = vld [vmem:[%s7736_s10 + $0x78] sm:$0xff] }
  0x9f   :  { %7746 = vst [vmem:[#allocation14_spill] sm:$0xff] %v6555_v28  ;;  %v6570_v31 = vld [vmem:[%s7736_s10 + $0x80] sm:$0xff]  ;;  %v6575_v32 = vld [vmem:[%s7736_s10 + $0x88] sm:$0xff]  ;;  %v6580_v33 = vld [vmem:[%s7736_s10 + $0x90] sm:$0xff] }
  0xa0   :  { %v6585_v34 = vld [vmem:[%s7736_s10 + $0x98] sm:$0xff]  ;;  %v6590_v35 = vld [vmem:[%s7736_s10 + $0xa0] sm:$0xff]  ;;  %v6595_v36 = vld [vmem:[%s7736_s10 + $0xa8] sm:$0xff] }
  0xa1   :  { %v6600_v37 = vld [vmem:[%s7736_s10 + $0xb0] sm:$0xff]  ;;  %v6605_v38 = vld [vmem:[%s7736_s10 + $0xb8] sm:$0xff]  ;;  %v6610_v39 = vld [vmem:[%s7736_s10 + $0xc0] sm:$0xff] }
  0xa2   :  { %v6615_v40 = vld [vmem:[%s7736_s10 + $0xc8] sm:$0xff]  ;;  %v6620_v41 = vld [vmem:[%s7736_s10 + $0xd0] sm:$0xff]  ;;  %v6625_v42 = vld [vmem:[%s7736_s10 + $0xd8] sm:$0xff] }
  0xa3   :  { %v6630_v43 = vld [vmem:[%s7736_s10 + $0xe0] sm:$0xff]  ;;  %v6635_v44 = vld [vmem:[%s7736_s10 + $0xe8] sm:$0xff]  ;;  %v6640_v45 = vld [vmem:[%s7736_s10 + $0xf0] sm:$0xff] }
  0xa4   :  { %7747 = vst [vmem:[#allocation15_spill] sm:$0xff] %v6630_v43  ;;  %7748 = vst [vmem:[#allocation16_spill] sm:$0xff] %v6635_v44  ;;  %v6645_v46 = vld [vmem:[%s7736_s10 + $0xf8] sm:$0xff]  ;;  %v6650_v47 = vld [vmem:[%s7736_s10 + $0x100] sm:$0xff] }
  0xa5   :  { %7749 = vst [vmem:[#allocation17_spill] sm:$0xff] %v6640_v45  ;;  %7750 = vst [vmem:[#allocation18_spill] sm:$0xff] %v6645_v46  ;;  %v6655_v48 = vld [vmem:[%s7736_s10 + $0x108] sm:$0xff]  ;;  %v6660_v49 = vld [vmem:[%s7736_s10 + $0x110] sm:$0xff] }
  0xa6   :  { %7751 = vst [vmem:[#allocation19_spill] sm:$0xff] %v6650_v47  ;;  %7752 = vst [vmem:[#allocation20_spill] sm:$0xff] %v6655_v48  ;;  %v6665_v50 = vld [vmem:[%s7736_s10 + $0x118] sm:$0xff]  ;;  %v6670_v51 = vld [vmem:[%s7736_s10 + $0x120] sm:$0xff] }
  0xa7   :  { %7753 = vst [vmem:[#allocation21_spill] sm:$0xff] %v6660_v49  ;;  %7754 = vst [vmem:[#allocation22_spill] sm:$0xff] %v6665_v50  ;;  %v6675_v52 = vld [vmem:[%s7736_s10 + $0x128] sm:$0xff]  ;;  %v6680_v53 = vld [vmem:[%s7736_s10 + $0x130] sm:$0xff] }
  0xa8   :  { %7755 = vst [vmem:[#allocation23_spill] sm:$0xff] %v6670_v51  ;;  %7756 = vst [vmem:[#allocation24_spill] sm:$0xff] %v6675_v52  ;;  %v6685_v54 = vld [vmem:[%s7736_s10 + $0x138] sm:$0xff]  ;;  %v6690_v55 = vld [vmem:[%s7736_s10 + $0x140] sm:$0xff] }
  0xa9   :  { %7757 = vst [vmem:[#allocation25_spill] sm:$0xff] %v6680_v53  ;;  %7758 = vst [vmem:[#allocation26_spill] sm:$0xff] %v6685_v54  ;;  %v6695_v56 = vld [vmem:[%s7736_s10 + $0x148] sm:$0xff]  ;;  %v6700_v57 = vld [vmem:[%s7736_s10 + $0x150] sm:$0xff] }
  0xaa   :  { %7759 = vst [vmem:[#allocation27_spill] sm:$0xff] %v6690_v55  ;;  %7760 = vst [vmem:[#allocation28_spill] sm:$0xff] %v6695_v56  ;;  %v6705_v58 = vld [vmem:[%s7736_s10 + $0x158] sm:$0xff]  ;;  %v6710_v59 = vld [vmem:[%s7736_s10 + $0x160] sm:$0xff] }
  0xab   :  { %7761 = vst [vmem:[#allocation29_spill] sm:$0xff] %v6700_v57  ;;  %7762 = vst [vmem:[#allocation30_spill] sm:$0xff] %v6705_v58  ;;  %v6715_v60 = vld [vmem:[%s7736_s10 + $0x168] sm:$0xff]  ;;  %v6720_v61 = vld [vmem:[%s7736_s10 + $0x170] sm:$0xff] }
  0xac   :  { %7763 = vst [vmem:[#allocation31_spill] sm:$0xff] %v6710_v59  ;;  %7764 = vst [vmem:[#allocation32_spill] sm:$0xff] %v6715_v60  ;;  %v6725_v62 = vld [vmem:[%s7736_s10 + $0x178] sm:$0xff]  ;;  %v6730_v63 = vld [vmem:[%s7736_s10 + $0x180] sm:$0xff] }
  0xad   :  { %7765 = vst [vmem:[#allocation33_spill] sm:$0xff] %v6720_v61  ;;  %7766 = vst [vmem:[#allocation34_spill] sm:$0xff] %v6725_v62  ;;  %v6735_v0 = vld [vmem:[%s7736_s10 + $0x188] sm:$0xff]  ;;  %v6740_v1 = vld [vmem:[%s7736_s10 + $0x190] sm:$0xff] }
  0xae   :  { %7767 = vst [vmem:[#allocation35_spill] sm:$0xff] %v6730_v63  ;;  %7768 = vst [vmem:[#allocation36_spill] sm:$0xff] %v6735_v0  ;;  %v6745_v2 = vld [vmem:[%s7736_s10 + $0x198] sm:$0xff]  ;;  %v6750_v3 = vld [vmem:[%s7736_s10 + $0x1a0] sm:$0xff] }
  0xaf   :  { %7769 = vst [vmem:[#allocation37_spill] sm:$0xff] %v6740_v1  ;;  %7770 = vst [vmem:[#allocation38_spill] sm:$0xff] %v6745_v2  ;;  %v6755_v4 = vld [vmem:[%s7736_s10 + $0x1a8] sm:$0xff]  ;;  %v6760_v5 = vld [vmem:[%s7736_s10 + $0x1b0] sm:$0xff] }
  0xb0   :  { %7771 = vst [vmem:[#allocation39_spill] sm:$0xff] %v6750_v3  ;;  %7772 = vst [vmem:[#allocation40_spill] sm:$0xff] %v6755_v4  ;;  %v6765_v6 = vld [vmem:[%s7736_s10 + $0x1b8] sm:$0xff]  ;;  %v6770_v7 = vld [vmem:[%s7736_s10 + $0x1c0] sm:$0xff] }
  0xb1   :  { %7773 = vst [vmem:[#allocation41_spill] sm:$0xff] %v6760_v5  ;;  %7774 = vst [vmem:[#allocation42_spill] sm:$0xff] %v6765_v6  ;;  %v6775_v8 = vld [vmem:[%s7736_s10 + $0x1c8] sm:$0xff]  ;;  %v6780_v9 = vld [vmem:[%s7736_s10 + $0x1d0] sm:$0xff] }
  0xb2   :  { %7775 = vst [vmem:[#allocation43_spill] sm:$0xff] %v6770_v7  ;;  %7776 = vst [vmem:[#allocation44_spill] sm:$0xff] %v6775_v8  ;;  %v6785_v10 = vld [vmem:[%s7736_s10 + $0x1d8] sm:$0xff]  ;;  %v6790_v11 = vld [vmem:[%s7736_s10 + $0x1e0] sm:$0xff] }
  0xb3   :  { %7777 = vst [vmem:[#allocation45_spill] sm:$0xff] %v6780_v9  ;;  %7778 = vst [vmem:[#allocation46_spill] sm:$0xff] %v6785_v10  ;;  %v6795_v12 = vld [vmem:[%s7736_s10 + $0x1e8] sm:$0xff]  ;;  %v6800_v13 = vld [vmem:[%s7736_s10 + $0x1f0] sm:$0xff] }
  0xb4   :  { %7779 = vst [vmem:[#allocation47_spill] sm:$0xff] %v6790_v11  ;;  %7780 = vst [vmem:[#allocation48_spill] sm:$0xff] %v6795_v12  ;;  %v6805_v14 = vld [vmem:[%s7736_s10 + $0x1f8] sm:$0xff]  ;;  %v6810_v10 = vld [vmem:[%s7736_s10 + $0x200] sm:$0xff] }
  0xb5   :  { %7781 = vst [vmem:[#allocation49_spill] sm:$0xff] %v6800_v13  ;;  %7782 = vst [vmem:[#allocation50_spill] sm:$0xff] %v6805_v14  ;;  %v6815_v11 = vld [vmem:[%s7736_s10 + $0x208] sm:$0xff]  ;;  %v6820_v12 = vld [vmem:[%s7736_s10 + $0x210] sm:$0xff] }
  0xb6   :  { %7783 = vst [vmem:[#allocation51_spill] sm:$0xff] %v6810_v10  ;;  %7784 = vst [vmem:[#allocation52_spill] sm:$0xff] %v6815_v11  ;;  %v6825_v13 = vld [vmem:[%s7736_s10 + $0x218] sm:$0xff]  ;;  %v6830_v14 = vld [vmem:[%s7736_s10 + $0x220] sm:$0xff] }
  0xb7   :  { %7785 = vst [vmem:[#allocation53_spill] sm:$0xff] %v6820_v12  ;;  %7786 = vst [vmem:[#allocation54_spill] sm:$0xff] %v6825_v13  ;;  %v6835_v10 = vld [vmem:[%s7736_s10 + $0x228] sm:$0xff] }
  0xb8   :  { %7787 = vst [vmem:[#allocation55_spill] sm:$0xff] %v6830_v14  ;;  %7788 = vst [vmem:[#allocation56_spill] sm:$0xff] %v6835_v10 }
  0xb9   :  { %1704 = vsyncadd [#allocation4 + $0x1], 8960  ;;  %v7740_v11 = vmov 0.0   ;;  %v5409_v12 = vld [vmem:[%s7727_s1 + $0xb8] ss:$12 sps:$4 sm:$0xff]   ;;  %vm5611_vm0 = vmmov 0  }
  0xba   :  { %5155 = vmatprep.subr.bf16.mxu1 %v7740_v11  ;;  %v5411_v13 = vld [vmem:[%s7727_s1 + $0xbc] ss:$12 sps:$4 sm:$0xff]   ;;  %v5412_v14 = vld [vmem:[%s7727_s1 + $0xb4] ss:$12 sps:$4 sm:$0xff]   ;;  %1929 = vmatprep.subr.bf16.mxu0 %v5409_v12  ;;  %v5416_v8 = vld [vmem:[%s7727_s1 + $0xcc] ss:$12 sps:$4 sm:$0xff]  }
  0xbb   :  { %v5413_v10 = vld [vmem:[%s7727_s1 + $0xd0] ss:$12 sps:$4 sm:$0xff]   ;;  %5171 = vmatprep.mubr.msk.bf16.mxu1 %vm5611_vm0, %v7740_v11  ;;  %5156 = vmatpush3.bf16.msra.mxu1 %v5411_v13  ;;  %v5415_v9 = vld [vmem:[%s7727_s1 + $0xd4] ss:$12 sps:$4 sm:$0xff]   ;;  %v7738_v7 = vmov 0   ;;  %vm1919_vm1 = vcmask 1043456  }
  0xbc   :  { %1930 = vmatpush1.bf16.msra.mxu0 %v5412_v14  ;;  %5157 = vmatprep.subr.bf16.mxu1 %v7740_v11  ;;  %v5417_v12 = vld [vmem:[%s7727_s1 + $0xe8] ss:$12 sps:$4 sm:$0xff]   ;;  %v5419_v13 = vld [vmem:[%s7727_s1 + $0xec] ss:$12 sps:$4 sm:$0xff]   ;;  %v5420_v14 = vld [vmem:[%s7727_s1 + $0xe4] ss:$12 sps:$4 sm:$0xff]  }
  0xbd   :  { %1931 = vmatprep.subr.bf16.mxu0 %v5413_v10  ;;  %1961 = vmatprep.mubr.bf16.mxu0 %v7738_v7  ;;  %v5421_v10 = vld [vmem:[%s7727_s1 + $0x100] ss:$12 sps:$4 sm:$0xff]   ;;  %v5423_v7 = vld [vmem:[%s7727_s1 + $0x104] ss:$12 sps:$4 sm:$0xff]   ;;  %vm1909_vm2 = vcmask 982016   ;;  %vm2345_vm3 = vcmask 1046528  }
  0xbe   :  { %v5438_v6 = vld [vmem:[%s7727_s1 + $0x164] ss:$0 sps:$4 sm:$0xff]   ;;  %v5457_v4 = vld [vmem:[%s7726_s0 + $0x1c] sm:$0xff]   ;;  %v5455_v1 = vld [vmem:[%s7727_s1 + $0x4c] ss:$12 sps:$4 sm:$0xff]   ;;  %vm2958_vm4 = vcmask 1045504  }
  0xbf   :  { %5158 = vmatpush3.bf16.msra.mxu1 %v5415_v9  ;;  %v5425_v9 = vld [vmem:[%s7727_s1 + $0x118] ss:$12 sps:$4 sm:$0xff]   ;;  %v2653_v2 = vrot.slane %v5457_v4, 1  ;;  %v5464_v63 = vld [vmem:[%s7727_s1 + $0x7c] ss:$12 sps:$4 sm:$0xff]  }
  0xc0   :  { %1932 = vmatpush1.bf16.msra.mxu0 %v5416_v8  ;;  %5159 = vmatprep.subr.bf16.mxu1 %v7740_v11  ;;  %v5424_v8 = vld [vmem:[%s7727_s1 + $0xfc] ss:$12 sps:$4 sm:$0xff]   ;;  %v5443_v3 = vld [vmem:[%s7727_s1 + $0x4] ss:$12 sps:$4 sm:$0xff]   ;;  %v5510_v57 = vld [vmem:[%s7727_s1 + $0x220] ss:$12 sps:$4 sm:$0xff]  }
  0xc1   :  { %1933 = vmatprep.subr.bf16.mxu0 %v5417_v12  ;;  %v5427_v12 = vld [vmem:[%s7727_s1 + $0x11c] ss:$12 sps:$4 sm:$0xff]   ;;  %v7019_v61 = vld [vmem:[%s7726_s0 + $0x10] ss:$0 sps:$4 sm:$0xff]  }
  0xc2   :  { %v5472_v59 = vld [vmem:[%s7727_s1 + $0xb0] ss:$0 sps:$4 sm:$0xff]   ;;  %v5475_v58 = vld [vmem:[%s7727_s1 + $0x168] ss:$12 sps:$4 sm:$0xff]  }
  0xc3   :  { %5160 = vmatpush3.bf16.msra.mxu1 %v5419_v13  ;;  %v5428_v13 = vld [vmem:[%s7727_s1 + $0x114] ss:$12 sps:$4 sm:$0xff]  }
  0xc4   :  { %1934 = vmatpush1.bf16.msra.mxu0 %v5420_v14  ;;  %5161 = vmatprep.subr.bf16.mxu1 %v7740_v11  ;;  %v5429_v14 = vld [vmem:[%s7727_s1 + $0x130] ss:$12 sps:$4 sm:$0xff]  }
  0xc5   :  { %1935 = vmatprep.subr.bf16.mxu0 %v5421_v10  ;;  %v5432_v10 = vld [vmem:[%s7727_s1 + $0x12c] ss:$12 sps:$4 sm:$0xff]  }
  0xc7   :  { %5162 = vmatpush3.bf16.msra.mxu1 %v5423_v7  ;;  %v5431_v7 = vld [vmem:[%s7727_s1 + $0x134] ss:$12 sps:$4 sm:$0xff]  }
  0xc8   :  { %1936 = vmatpush1.bf16.msra.mxu0 %v5424_v8  ;;  %5163 = vmatprep.subr.bf16.mxu1 %v7740_v11  ;;  %v5433_v8 = vld [vmem:[%s7727_s1 + $0x148] ss:$12 sps:$4 sm:$0xff]  }
  0xc9   :  { %1937 = vmatprep.subr.bf16.mxu0 %v5425_v9  ;;  %v4786_v9 = vld [vmem:[%s7727_s1 + $0x15c] sm:$0xff] }
  0xca   :  { %v4812_v5 = vcombine.low %v4786_v9, %v4786_v9 }
  0xcb   :  { %5164 = vmatpush3.bf16.msra.mxu1 %v5427_v12  ;;  %v5435_v12 = vld [vmem:[%s7727_s1 + $0x14c] ss:$12 sps:$4 sm:$0xff]  }
  0xcc   :  { %1938 = vmatpush1.bf16.msra.mxu0 %v5428_v13  ;;  %5165 = vmatprep.subr.bf16.mxu1 %v7740_v11  ;;  %v5436_v13 = vld [vmem:[%s7727_s1 + $0x144] ss:$12 sps:$4 sm:$0xff]  }
  0xcd   :  { %1939 = vmatprep.subr.bf16.mxu0 %v5429_v14  ;;  %v4813_v14 = vcombine.high %v4786_v9, %v4786_v9  ;;  %v1921_v9 = vsel %vm1919_vm1, %v4812_v5, 0  ;;  %v5447_v5 = vld [vmem:[%s7727_s1 + $0x1c] ss:$12 sps:$4 sm:$0xff]  }
  0xcf   :  { %5166 = vmatpush3.bf16.msra.mxu1 %v5431_v7  ;;  %v5440_v7 = vld [vmem:[%s7726_s0 + $0x14] sm:$0xff]  }
  0xd0   :  { %1940 = vmatpush1.bf16.msra.mxu0 %v5432_v10  ;;  %5167 = vmatprep.subr.bf16.mxu1 %v7740_v11  ;;  %v2652_v10 = vrot.slane %v5440_v7, 1 }
  0xd1   :  { %1941 = vmatprep.subr.bf16.mxu0 %v5433_v8  ;;  %v1927_v8 = vsel %vm1919_vm1, %v5438_v6, 0 }
  0xd2   :  { %v6936_v6 = vsel %vm2345_vm3, %v2652_v10, %v2653_v2  ;;  %v5445_v10 = vld [vmem:[%s7727_s1 + $0x18] ss:$12 sps:$4 sm:$0xff]  }
  0xd3   :  { %5168 = vmatpush3.bf16.msra.mxu1 %v5435_v12  ;;  %v5441_v12 = vld [vmem:[%s7727_s1] ss:$12 sps:$4 sm:$0xff]  }
  0xd4   :  { %1942 = vmatpush1.bf16.msra.mxu0 %v5436_v13  ;;  %5169 = vmatprep.subr.bf16.mxu1 %v7740_v11  ;;  %v5444_v13 = vld [vmem:[%s7727_s1 + $0x8] ss:$12 sps:$4 sm:$0xff]  }
  0xd5   :  { %4815 = vmatprep.subr.msk.bf16.mxu0 %vm1919_vm1, %v4813_v14  ;;  %v5466_v14 = vld [vmem:[%s7726_s0 + $0x24] ss:$0 sps:$4 sm:$0xff]  }
  0xd7   :  { %5170 = vmatpush3.bf16.msra.mxu1 %v1927_v8  ;;  %v6953_v8 = vrot.slane %v5466_v14, 1 }
  0xd8   :  { %1944 = vmatpush1.bf16.msra.mxu0 %v1921_v9  ;;  %5183 = vmatprep.subr.bf16.mxu1 %v7740_v11  ;;  %v5451_v9 = vld [vmem:[%s7727_s1 + $0x34] ss:$12 sps:$4 sm:$0xff]  }
  0xd9   :  { %2197 = vmatprep.subr.bf16.mxu0 %v5443_v3  ;;  %v5448_v3 = vld [vmem:[%s7727_s1 + $0x20] ss:$12 sps:$4 sm:$0xff]  }
  0xda   :  { %5172 = vmatmul.mubr.msk.bf16.vlgmr.msra.gmra.mrb[0].mxu1 %vm1909_vm2, %v5440_v7 }
  0xdb   :  { %4816 = vmatmul.mubr.msk.bf16.vlgmr.msra.gmra.mrb[0].mxu0 %vm1909_vm2, %v5440_v7  ;;  %5184 = vmatpush3.bf16.msra.mxu1 %v5444_v13  ;;  %v7789_v7 = vmov 0   ;;  %v5449_v13 = vld [vmem:[%s7727_s1 + $0x30] ss:$12 sps:$4 sm:$0xff]  }
  0xdc   :  { %2198 = vmatpush1.bf16.msra.mxu0 %v5441_v12  ;;  %5185 = vmatprep.subr.bf16.mxu1 %v7740_v11  ;;  %v6964_v12 = vsel %vm2345_vm3, %v2653_v2, %v6953_v8  ;;  %v5453_v2 = vld [vmem:[%s7727_s1 + $0x48] ss:$12 sps:$4 sm:$0xff]  }
  0xdd   :  { %2199 = vmatprep.subr.bf16.mxu0 %v5447_v5  ;;  %1971 = vmatprep.mubr.bf16.mxu0 %v7789_v7  ;;  %v5452_v5 = vld [vmem:[%s7727_s1 + $0x38] ss:$12 sps:$4 sm:$0xff]  }
  0xde   :  { %5175 = vmatprep.mubr.msk.bf16.mxu1 %vm5611_vm0, %v7740_v11 }
  0xdf   :  { %5186 = vmatpush3.bf16.msra.mxu1 %v5448_v3  ;;  %v5456_v3 = vld [vmem:[%s7727_s1 + $0x50] ss:$12 sps:$4 sm:$0xff]  }
  0xe0   :  { %2200 = vmatpush1.bf16.msra.mxu0 %v5445_v10  ;;  %5187 = vmatprep.subr.bf16.mxu1 %v7740_v11  ;;  %v6984_v10 = vld [vmem:[%s7726_s0] sm:$0xff]  }
  0xe1   :  { %2201 = vmatprep.subr.bf16.mxu0 %v5451_v9  ;;  %v5460_v9 = vld [vmem:[%s7727_s1 + $0x64] ss:$12 sps:$4 sm:$0xff]   ;;  %v2959_v0 = vrot.slane %v6984_v10, 2 }
  0xe2   :  { %5176 = vmatmul.mubr.msk.bf16.gmra.mrb[4].mxu1 %vm1909_vm2, %v5457_v4 }
  0xe3   :  { %4817 = vmatmul.mubr.msk.bf16.gmra.mrb[4].mxu0 %vm1909_vm2, %v5457_v4  ;;  %5188 = vmatpush3.bf16.msra.mxu1 %v5452_v5  ;;  %v6996_v4 = vld [vmem:[%s7726_s0 + $0x8] sm:$0xff]  }
  0xe4   :  { %2202 = vmatpush1.bf16.msra.mxu0 %v5449_v13  ;;  %5189 = vmatprep.subr.bf16.mxu1 %v7740_v11  ;;  %v2960_v13 = vrot.slane %v6996_v4, 2  ;;  %v5461_v5 = vld [vmem:[%s7727_s1 + $0x68] ss:$12 sps:$4 sm:$0xff]  }
  0xe5   :  { %2203 = vmatprep.subr.bf16.mxu0 %v5455_v1  ;;  %1981 = vmatprep.mubr.bf16.mxu0 %v7789_v7  ;;  %v5458_v1 = vld [vmem:[%s7727_s1 + $0x60] ss:$12 sps:$4 sm:$0xff]  }
  0xe6   :  { %5179 = vmatprep.mubr.msk.bf16.mxu1 %vm5611_vm0, %v7740_v11  ;;  %v7014_v62 = vsel %vm2958_vm4, %v2959_v0, %v2960_v13  ;;  %v5465_v0 = vld [vmem:[%s7727_s1 + $0x80] ss:$12 sps:$4 sm:$0xff]  }
  0xe7   :  { %5190 = vmatpush3.bf16.msra.mxu1 %v5456_v3  ;;  %v7030_v3 = vrot.slane %v7019_v61, 2 }
  0xe8   :  { %2204 = vmatpush1.bf16.msra.mxu0 %v5453_v2  ;;  %5191 = vmatprep.subr.bf16.mxu1 %v7740_v11  ;;  %v5462_v2 = vld [vmem:[%s7727_s1 + $0x78] ss:$12 sps:$4 sm:$0xff]  }
  0xe9   :  { %2205 = vmatprep.subr.bf16.mxu0 %v5460_v9  ;;  %v5469_v9 = vld [vmem:[%s7727_s1 + $0x94] ss:$12 sps:$4 sm:$0xff]  }
  0xea   :  { %5180 = vmatmul.mubr.msk.bf16.gmra.mrb[8].mxu1 %vm1909_vm2, %v5466_v14 }
  0xeb   :  { %4818 = vmatmul.mubr.msk.bf16.gmra.mrb[8].mxu0 %vm1909_vm2, %v5466_v14  ;;  %5192 = vmatpush3.bf16.msra.mxu1 %v5461_v5  ;;  %v1743_v14 = vld [vmem:[%s7727_s1 + $0xa8] sm:$0xff]  ;;  %v5470_v5 = vld [vmem:[%s7727_s1 + $0x98] ss:$12 sps:$4 sm:$0xff]  }
  0xec   :  { %2206 = vmatpush1.bf16.msra.mxu0 %v5458_v1  ;;  %5193 = vmatprep.subr.bf16.mxu1 %v7740_v11  ;;  %v7044_v1 = vsel %vm2958_vm4, %v2960_v13, %v7030_v3  ;;  %v4847_v60 = vcombine.high %v1743_v14, %v1743_v14  ;;  %v4846_v13 = vcombine.low %v1743_v14, %v1743_v14  ;;  %v5478_v14 = vld [vmem:[%s7727_s1 + $0x170] ss:$12 sps:$4 sm:$0xff]  }
  0xed   :  { %2207 = vmatprep.subr.bf16.mxu0 %v5464_v63  ;;  %5199 = vmatprep.mubr.msk.bf16.mxu1 %vm5611_vm0, %v7740_v11  ;;  %v5467_v63 = vld [vmem:[%s7727_s1 + $0x90] ss:$12 sps:$4 sm:$0xff]  }
  0xee   :  { %2229 = vmatprep.mubr.bf16.mxu0 %v7789_v7 }
  0xef   :  { %5194 = vmatpush3.bf16.msra.mxu1 %v5465_v0  ;;  %v2189_v0 = vsel %vm1919_vm1, %v4846_v13, 0  ;;  %v5487_v13 = vld [vmem:[%s7727_s1 + $0x1a0] ss:$12 sps:$4 sm:$0xff]  }
  0xf0   :  { %2208 = vmatpush1.bf16.msra.mxu0 %v5462_v2  ;;  %5195 = vmatprep.subr.bf16.mxu1 %v7740_v11  ;;  %v2195_v2 = vsel %vm1919_vm1, %v5472_v59, 0  ;;  %v5481_v59 = vld [vmem:[%s7727_s1 + $0x184] ss:$12 sps:$4 sm:$0xff]  }
  0xf1   :  { %2209 = vmatprep.subr.bf16.mxu0 %v5469_v9  ;;  %v5477_v9 = vld [vmem:[%s7727_s1 + $0x16c] ss:$12 sps:$4 sm:$0xff]  }
  0xf3   :  { %5196 = vmatpush3.bf16.msra.mxu1 %v5470_v5  ;;  %v5486_v5 = vld [vmem:[%s7727_s1 + $0x19c] ss:$12 sps:$4 sm:$0xff]  }
  0xf4   :  { %2210 = vmatpush1.bf16.msra.mxu0 %v5467_v63  ;;  %5197 = vmatprep.subr.bf16.mxu1 %v7740_v11  ;;  %v5482_v63 = vld [vmem:[%s7727_s1 + $0x188] ss:$12 sps:$4 sm:$0xff]  }
  0xf5   :  { %4849 = vmatprep.subr.msk.bf16.mxu0 %vm1919_vm1, %v4847_v60  ;;  %v5479_v60 = vld [vmem:[%s7727_s1 + $0x180] ss:$12 sps:$4 sm:$0xff]  }
  0xf7   :  { %5198 = vmatpush3.bf16.msra.mxu1 %v2195_v2  ;;  %v5490_v2 = vld [vmem:[%s7727_s1 + $0x1b4] ss:$12 sps:$4 sm:$0xff]  }
  0xf8   :  { %2212 = vmatpush1.bf16.msra.mxu0 %v2189_v0  ;;  %5211 = vmatprep.subr.bf16.mxu1 %v7740_v11  ;;  %v5488_v0 = vld [vmem:[%s7727_s1 + $0x1b0] ss:$12 sps:$4 sm:$0xff]  }
  0xf9   :  { %2489 = vmatprep.subr.bf16.mxu0 %v5477_v9  ;;  %v5491_v9 = vld [vmem:[%s7727_s1 + $0x1b8] ss:$12 sps:$4 sm:$0xff]  }
  0xfa   :  { %5200 = vmatmul.mubr.msk.bf16.vlgmr.msra.gmra.mrb[12].mxu1 %vm1909_vm2, %v6984_v10 }
  0xfb   :  { %4850 = vmatmul.mubr.msk.bf16.vlgmr.msra.gmra.mrb[0].mxu0 %vm1909_vm2, %v6984_v10  ;;  %5212 = vmatpush3.bf16.msra.mxu1 %v5478_v14  ;;  %v5495_v14 = vld [vmem:[%s7727_s1 + $0x1cc] ss:$12 sps:$4 sm:$0xff]  }
  0xfc   :  { %2490 = vmatpush1.bf16.msra.mxu0 %v5475_v58  ;;  %5213 = vmatprep.subr.bf16.mxu1 %v7740_v11  ;;  %v5484_v58 = vld [vmem:[%s7727_s1 + $0x198] ss:$12 sps:$4 sm:$0xff]  }
  0xfd   :  { %2491 = vmatprep.subr.bf16.mxu0 %v5481_v59  ;;  %5203 = vmatprep.mubr.msk.bf16.mxu1 %vm5611_vm0, %v7740_v11  ;;  %v5493_v59 = vld [vmem:[%s7727_s1 + $0x1c8] ss:$12 sps:$4 sm:$0xff]  }
  0xfe   :  { %2239 = vmatprep.mubr.bf16.mxu0 %v7789_v7 }
  0xff   :  { %5214 = vmatpush3.bf16.msra.mxu1 %v5482_v63  ;;  %v5499_v63 = vld [vmem:[%s7727_s1 + $0x1e4] ss:$12 sps:$4 sm:$0xff]  }
 0x100   :  { %2492 = vmatpush1.bf16.msra.mxu0 %v5479_v60  ;;  %5215 = vmatprep.subr.bf16.mxu1 %v7740_v11  ;;  %v5496_v60 = vld [vmem:[%s7727_s1 + $0x1d0] ss:$12 sps:$4 sm:$0xff]  }
 0x101   :  { %2493 = vmatprep.subr.bf16.mxu0 %v5486_v5  ;;  %v5497_v5 = vld [vmem:[%s7727_s1 + $0x1e0] ss:$12 sps:$4 sm:$0xff]  }
 0x102   :  { %5204 = vmatmul.mubr.msk.bf16.gmra.mrb[16].mxu1 %vm1909_vm2, %v6996_v4 }
 0x103   :  { %4851 = vmatmul.mubr.msk.bf16.gmra.mrb[4].mxu0 %vm1909_vm2, %v6996_v4  ;;  %5216 = vmatpush3.bf16.msra.mxu1 %v5487_v13  ;;  %v5503_v13 = vld [vmem:[%s7727_s1 + $0x1fc] ss:$12 sps:$4 sm:$0xff]  }
 0x104   :  { %2494 = vmatpush1.bf16.msra.mxu0 %v5484_v58  ;;  %5217 = vmatprep.subr.bf16.mxu1 %v7740_v11  ;;  %v5500_v58 = vld [vmem:[%s7727_s1 + $0x1e8] ss:$12 sps:$4 sm:$0xff]  }
 0x105   :  { %2495 = vmatprep.subr.bf16.mxu0 %v5490_v2  ;;  %5207 = vmatprep.mubr.msk.bf16.mxu1 %vm5611_vm0, %v7740_v11  ;;  %v4884_v2 = vld [vmem:[%s7727_s1 + $0x210] sm:$0xff] }
 0x106   :  { %2249 = vmatprep.mubr.bf16.mxu0 %v7789_v7 }
 0x107   :  { %5218 = vmatpush3.bf16.msra.mxu1 %v5491_v9  ;;  %v5504_v9 = vld [vmem:[%s7727_s1 + $0x200] ss:$12 sps:$4 sm:$0xff]  }
 0x108   :  { %2496 = vmatpush1.bf16.msra.mxu0 %v5488_v0  ;;  %5219 = vmatprep.subr.bf16.mxu1 %v7740_v11  ;;  %v5501_v0 = vld [vmem:[%s7727_s1 + $0x1f8] ss:$12 sps:$4 sm:$0xff]  }
 0x109   :  { %2497 = vmatprep.subr.bf16.mxu0 %v5495_v14  ;;  %v4908_v14 = vcombine.high %v4884_v2, %v4884_v2 }
 0x10a   :  { %5208 = vmatmul.mubr.msk.bf16.gmra.mrb[20].mxu1 %vm1909_vm2, %v7019_v61 }
 0x10b   :  { %4852 = vmatmul.mubr.msk.bf16.gmra.mrb[12].mxu0 %vm1909_vm2, %v7019_v61  ;;  %5220 = vmatpush3.bf16.msra.mxu1 %v5496_v60  ;;  %v4907_v60 = vcombine.low %v4884_v2, %v4884_v2 }
 0x10c   :  { %2498 = vmatpush1.bf16.msra.mxu0 %v5493_v59  ;;  %5221 = vmatprep.subr.bf16.mxu1 %v7740_v11  ;;  %v5506_v59 = vld [vmem:[%s7727_s1 + $0x218] ss:$0 sps:$4 sm:$0xff]  }
 0x10d   :  { %2499 = vmatprep.subr.bf16.mxu0 %v5499_v63  ;;  %5227 = vmatprep.mubr.msk.bf16.mxu1 %vm5611_vm0, %v7740_v11  ;;  %v2346_v63 = vrot.slane %v6984_v10, 1  ;;  %v5508_v10 = vld [vmem:[%s7727_s1 + $0x21c] ss:$12 sps:$4 sm:$0xff]  }
 0x10e   :  { %2521 = vmatprep.mubr.bf16.mxu0 %v7789_v7 }
 0x10f   :  { %5222 = vmatpush3.bf16.msra.mxu1 %v5500_v58  ;;  %v2487_v58 = vsel %vm1919_vm1, %v5506_v59, 0  ;;  %v5518_v59 = vld [vmem:[%s7727_s1 + $0x250] ss:$12 sps:$4 sm:$0xff]  }
 0x110   :  { %2500 = vmatpush1.bf16.msra.mxu0 %v5497_v5  ;;  %5223 = vmatprep.subr.bf16.mxu1 %v7740_v11  ;;  %v2347_v5 = vrot.slane %v6996_v4, 1  ;;  %v5511_v4 = vld [vmem:[%s7727_s1 + $0x224] ss:$12 sps:$4 sm:$0xff]  }
 0x111   :  { %2501 = vmatprep.subr.bf16.mxu0 %v5503_v13  ;;  %v2481_v13 = vsel %vm1919_vm1, %v4907_v60, 0 }
 0x112   :  { %v2348_v2 = vsel %vm2345_vm3, %v2346_v63, %v2347_v5  ;;  %v5519_v63 = vld [vmem:[%s7727_s1 + $0x254] ss:$12 sps:$4 sm:$0xff]  }
 0x113   :  { %5224 = vmatpush3.bf16.msra.mxu1 %v5504_v9  ;;  %v5512_v9 = vld [vmem:[%s7727_s1 + $0x234] ss:$12 sps:$4 sm:$0xff]  }
 0x114   :  { %2502 = vmatpush1.bf16.msra.mxu0 %v5501_v0  ;;  %5225 = vmatprep.subr.bf16.mxu1 %v7740_v11  ;;  %v5514_v0 = vld [vmem:[%s7727_s1 + $0x238] ss:$12 sps:$4 sm:$0xff]  }
 0x115   :  { %4910 = vmatprep.subr.msk.bf16.mxu0 %vm1919_vm1, %v4908_v14  ;;  %v5515_v14 = vld [vmem:[%s7727_s1 + $0x23c] ss:$12 sps:$4 sm:$0xff]  }
 0x117   :  { %5226 = vmatpush3.bf16.msra.mxu1 %v2487_v58  ;;  %v5522_v58 = vld [vmem:[%s7727_s1 + $0x268] ss:$12 sps:$4 sm:$0xff]  }
 0x118   :  { %2504 = vmatpush1.bf16.msra.mxu0 %v2481_v13  ;;  %5239 = vmatprep.subr.bf16.mxu1 %v7740_v11  ;;  %v5523_v13 = vld [vmem:[%s7727_s1 + $0x26c] ss:$12 sps:$4 sm:$0xff]  }
 0x119   :  { %2795 = vmatprep.subr.bf16.mxu0 %v5510_v57  ;;  %v2349_v57 = vrot.slane %v7019_v61, 1  ;;  %v5516_v61 = vld [vmem:[%s7727_s1 + $0x24c] ss:$12 sps:$4 sm:$0xff]  }
 0x11a   :  { %5228 = vmatmul.mubr.msk.bf16.vlgmr.msra.gmra.mrb[24].mxu1 %vm1909_vm2, %v2348_v2 }
 0x11b   :  { %4911 = vmatmul.mubr.msk.bf16.vlgmr.msra.gmra.mrb[0].mxu0 %vm1909_vm2, %v2348_v2  ;;  %5240 = vmatpush3.bf16.msra.mxu1 %v5511_v4  ;;  %v2350_v60 = vsel %vm2345_vm3, %v2347_v5, %v2349_v57  ;;  %v5520_v5 = vld [vmem:[%s7727_s1 + $0x264] ss:$12 sps:$4 sm:$0xff]   ;;  %v5526_v2 = vld [vmem:[%s7727_s1 + $0x280] ss:$12 sps:$4 sm:$0xff]  }
 0x11c   :  { %2796 = vmatpush1.bf16.msra.mxu0 %v5508_v10  ;;  %5241 = vmatprep.subr.bf16.mxu1 %v7740_v11  ;;  %v5524_v10 = vld [vmem:[%s7727_s1 + $0x27c] ss:$12 sps:$4 sm:$0xff]   ;;  %v5527_v4 = vld [vmem:[%s7727_s1 + $0x284] ss:$12 sps:$4 sm:$0xff]  }
 0x11d   :  { %2797 = vmatprep.subr.bf16.mxu0 %v5514_v0  ;;  %5231 = vmatprep.mubr.msk.bf16.mxu1 %vm5611_vm0, %v7740_v11  ;;  %v5530_v0 = vld [vmem:[%s7727_s1 + $0x298] ss:$12 sps:$4 sm:$0xff]  }
 0x11e   :  { %2531 = vmatprep.mubr.bf16.mxu0 %v7789_v7 }
 0x11f   :  { %5242 = vmatpush3.bf16.msra.mxu1 %v5515_v14  ;;  %v5531_v14 = vld [vmem:[%s7727_s1 + $0x29c] ss:$12 sps:$4 sm:$0xff]  }
 0x120   :  { %2798 = vmatpush1.bf16.msra.mxu0 %v5512_v9  ;;  %5243 = vmatprep.subr.bf16.mxu1 %v7740_v11  ;;  %v5528_v9 = vld [vmem:[%s7727_s1 + $0x294] ss:$12 sps:$4 sm:$0xff]  }
 0x121   :  { %2799 = vmatprep.subr.bf16.mxu0 %v5518_v59  ;;  %v5534_v59 = vld [vmem:[%s7727_s1 + $0x2b0] ss:$12 sps:$4 sm:$0xff]  }
 0x122   :  { %5232 = vmatmul.mubr.msk.bf16.gmra.mrb[28].mxu1 %vm1909_vm2, %v2350_v60 }
 0x123   :  { %4912 = vmatmul.mubr.msk.bf16.gmra.mrb[4].mxu0 %vm1909_vm2, %v2350_v60  ;;  %5244 = vmatpush3.bf16.msra.mxu1 %v5519_v63  ;;  %v5532_v60 = vld [vmem:[%s7727_s1 + $0x2ac] ss:$12 sps:$4 sm:$0xff]  }
 0x124   :  { %2800 = vmatpush1.bf16.msra.mxu0 %v5516_v61  ;;  %5245 = vmatprep.subr.bf16.mxu1 %v7740_v11  ;;  %v5535_v61 = vld [vmem:[%s7727_s1 + $0x2b4] ss:$12 sps:$4 sm:$0xff]  }
 0x125   :  { %2801 = vmatprep.subr.bf16.mxu0 %v5522_v58  ;;  %5235 = vmatprep.mubr.msk.bf16.mxu1 %vm5611_vm0, %v7740_v11  ;;  %v5537_v58 = vld [vmem:[%s7727_s1 + $0x2cc] ss:$0 sps:$4 sm:$0xff]  }
 0x126   :  { %2541 = vmatprep.mubr.bf16.mxu0 %v7789_v7 }
 0x127   :  { %5246 = vmatpush3.bf16.msra.mxu1 %v5523_v13  ;;  %v2793_v13 = vsel %vm1919_vm1, %v5537_v58, 0  ;;  %v5554_v58 = vld [vmem:[%s7727_s1 + $0x320] ss:$12 sps:$4 sm:$0xff]  }
 0x128   :  { %2802 = vmatpush1.bf16.msra.mxu0 %v5520_v5  ;;  %5247 = vmatprep.subr.bf16.mxu1 %v7740_v11 }
 0x129   :  { %2803 = vmatprep.subr.bf16.mxu0 %v5526_v2 }
 0x12a   :  { %5236 = vmatmul.mubr.msk.bf16.gmra.mrb[32].mxu1 %vm1909_vm2, %v2349_v57 }
 0x12b   :  { %4913 = vmatmul.mubr.msk.bf16.gmra.mrb[16].mxu0 %vm1909_vm2, %v2349_v57  ;;  %5248 = vmatpush3.bf16.msra.mxu1 %v5527_v4  ;;  %v4945_v57 = vld [vmem:[%s7727_s1 + $0x2c4] sm:$0xff]  ;;  %v5539_v4 = vld [vmem:[%s7727_s1 + $0x2d0] ss:$12 sps:$4 sm:$0xff]  }
 0x12c   :  { %2804 = vmatpush1.bf16.msra.mxu0 %v5524_v10  ;;  %5249 = vmatprep.subr.bf16.mxu1 %v7740_v11  ;;  %v4969_v63 = vcombine.high %v4945_v57, %v4945_v57  ;;  %v4968_v5 = vcombine.low %v4945_v57, %v4945_v57  ;;  %v5541_v10 = vld [vmem:[%s7727_s1 + $0x2d4] ss:$12 sps:$4 sm:$0xff]   ;;  %v5549_v57 = vld [vmem:[%s7727_s1 + $0x304] ss:$12 sps:$4 sm:$0xff]  }
 0x12d   :  { %2805 = vmatprep.subr.bf16.mxu0 %v5530_v0  ;;  %5255 = vmatprep.mubr.msk.bf16.mxu1 %vm5611_vm0, %v7740_v11  ;;  %v5542_v0 = vld [vmem:[%s7727_s1 + $0x2d8] ss:$12 sps:$4 sm:$0xff]  }
 0x12e   :  { %2827 = vmatprep.mubr.bf16.mxu0 %v7789_v7  ;;  %v2787_v2 = vsel %vm1919_vm1, %v4968_v5, 0  ;;  %v5557_v5 = vld [vmem:[%s7727_s1 + $0x334] ss:$12 sps:$4 sm:$0xff]  }
 0x12f   :  { %5250 = vmatpush3.bf16.msra.mxu1 %v5531_v14  ;;  %v5543_v14 = vld [vmem:[%s7727_s1 + $0x2e8] ss:$12 sps:$4 sm:$0xff]  }
 0x130   :  { %2806 = vmatpush1.bf16.msra.mxu0 %v5528_v9  ;;  %5251 = vmatprep.subr.bf16.mxu1 %v7740_v11  ;;  %v5545_v9 = vld [vmem:[%s7727_s1 + $0x2ec] ss:$12 sps:$4 sm:$0xff]  }
 0x131   :  { %2807 = vmatprep.subr.bf16.mxu0 %v5534_v59  ;;  %v5546_v59 = vld [vmem:[%s7727_s1 + $0x2f0] ss:$12 sps:$4 sm:$0xff]  }
 0x133   :  { %5252 = vmatpush3.bf16.msra.mxu1 %v5535_v61  ;;  %v5553_v61 = vld [vmem:[%s7727_s1 + $0x31c] ss:$12 sps:$4 sm:$0xff]  }
 0x134   :  { %2808 = vmatpush1.bf16.msra.mxu0 %v5532_v60  ;;  %5253 = vmatprep.subr.bf16.mxu1 %v7740_v11  ;;  %v5550_v60 = vld [vmem:[%s7727_s1 + $0x308] ss:$12 sps:$4 sm:$0xff]  }
 0x135   :  { %4971 = vmatprep.subr.msk.bf16.mxu0 %vm1919_vm1, %v4969_v63  ;;  %v5551_v63 = vld [vmem:[%s7727_s1 + $0x318] ss:$12 sps:$4 sm:$0xff]  }
 0x137   :  { %5254 = vmatpush3.bf16.msra.mxu1 %v2793_v13  ;;  %v5558_v13 = vld [vmem:[%s7727_s1 + $0x338] ss:$12 sps:$4 sm:$0xff]  }
 0x138   :  { %2810 = vmatpush1.bf16.msra.mxu0 %v2787_v2  ;;  %5267 = vmatprep.subr.bf16.mxu1 %v7740_v11  ;;  %v5561_v2 = vld [vmem:[%s7727_s1 + $0x34c] ss:$12 sps:$4 sm:$0xff]  }
 0x139   :  { %3102 = vmatprep.subr.bf16.mxu0 %v5541_v10  ;;  %v5559_v10 = vld [vmem:[%s7727_s1 + $0x348] ss:$12 sps:$4 sm:$0xff]  }
 0x13a   :  { %5256 = vmatmul.mubr.msk.bf16.vlgmr.msra.gmra.mrb[36].mxu1 %vm1909_vm2, %v6936_v6 }
 0x13b   :  { %4972 = vmatmul.mubr.msk.bf16.vlgmr.msra.gmra.mrb[0].mxu0 %vm1909_vm2, %v6936_v6  ;;  %5268 = vmatpush3.bf16.msra.mxu1 %v5542_v0  ;;  %v5547_v6 = vld [vmem:[%s7727_s1 + $0x300] ss:$12 sps:$4 sm:$0xff]   ;;  %v5565_v0 = vld [vmem:[%s7727_s1 + $0x364] ss:$12 sps:$4 sm:$0xff]  }
 0x13c   :  { %3103 = vmatpush1.bf16.msra.mxu0 %v5539_v4  ;;  %5269 = vmatprep.subr.bf16.mxu1 %v7740_v11  ;;  %v5562_v4 = vld [vmem:[%s7727_s1 + $0x350] ss:$12 sps:$4 sm:$0xff]  }
 0x13d   :  { %3104 = vmatprep.subr.bf16.mxu0 %v5545_v9  ;;  %5259 = vmatprep.mubr.msk.bf16.mxu1 %vm5611_vm0, %v7740_v11  ;;  %v5563_v9 = vld [vmem:[%s7727_s1 + $0x360] ss:$12 sps:$4 sm:$0xff]  }
 0x13e   :  { %2837 = vmatprep.mubr.bf16.mxu0 %v7789_v7 }
 0x13f   :  { %5270 = vmatpush3.bf16.msra.mxu1 %v5546_v59 }
 0x140   :  { %3105 = vmatpush1.bf16.msra.mxu0 %v5543_v14  ;;  %5271 = vmatprep.subr.bf16.mxu1 %v7740_v11  ;;  %v5566_v14 = vld [vmem:[%s7727_s1 + $0x368] ss:$12 sps:$4 sm:$0xff]  }
 0x141   :  { %3106 = vmatprep.subr.bf16.mxu0 %v5549_v57  ;;  %v5568_v57 = vld [vmem:[%s7727_s1 + $0x380] ss:$0 sps:$4 sm:$0xff]  }
 0x142   :  { %5260 = vmatmul.mubr.msk.bf16.gmra.mrb[40].mxu1 %vm1909_vm2, %v6964_v12 }
 0x143   :  { %4973 = vmatmul.mubr.msk.bf16.gmra.mrb[4].mxu0 %vm1909_vm2, %v6964_v12  ;;  %5272 = vmatpush3.bf16.msra.mxu1 %v5550_v60  ;;  %v5555_v12 = vld [vmem:[%s7727_s1 + $0x330] ss:$12 sps:$4 sm:$0xff]   ;;  %v3100_v60 = vsel %vm1919_vm1, %v5568_v57, 0 }
 0x144   :  { %3107 = vmatpush1.bf16.msra.mxu0 %v5547_v6  ;;  %5273 = vmatprep.subr.bf16.mxu1 %v7740_v11 }
 0x145   :  { %3108 = vmatprep.subr.bf16.mxu0 %v5553_v61  ;;  %5263 = vmatprep.mubr.msk.bf16.mxu1 %vm5611_vm0, %v7740_v11 }
 0x146   :  { %2847 = vmatprep.mubr.bf16.mxu0 %v7789_v7 }
 0x147   :  { %5274 = vmatpush3.bf16.msra.mxu1 %v5554_v58 }
 0x148   :  { %3109 = vmatpush1.bf16.msra.mxu0 %v5551_v63  ;;  %5275 = vmatprep.subr.bf16.mxu1 %v7740_v11 }
 0x149   :  { %3110 = vmatprep.subr.bf16.mxu0 %v5557_v5 }
 0x14a   :  { %5264 = vmatmul.mubr.msk.bf16.gmra.mrb[44].mxu1 %vm1909_vm2, %v6953_v8 }
 0x14b   :  { %4974 = vmatmul.mubr.msk.bf16.gmra.mrb[20].mxu0 %vm1909_vm2, %v6953_v8  ;;  %5276 = vmatpush3.bf16.msra.mxu1 %v5558_v13  ;;  %v5006_v8 = vld [vmem:[%s7727_s1 + $0x378] sm:$0xff] }
 0x14c   :  { %3111 = vmatpush1.bf16.msra.mxu0 %v5555_v12  ;;  %5277 = vmatprep.subr.bf16.mxu1 %v7740_v11  ;;  %v5030_v59 = vcombine.high %v5006_v8, %v5006_v8  ;;  %v5029_v6 = vcombine.low %v5006_v8, %v5006_v8 }
 0x14d   :  { %3112 = vmatprep.subr.bf16.mxu0 %v5561_v2  ;;  %5283 = vmatprep.mubr.msk.bf16.mxu1 %vm5611_vm0, %v7740_v11 }
 0x14e   :  { %3134 = vmatprep.mubr.bf16.mxu0 %v7789_v7  ;;  %v3094_v61 = vsel %vm1919_vm1, %v5029_v6, 0 }
 0x14f   :  { %5278 = vmatpush3.bf16.msra.mxu1 %v5562_v4 }
 0x150   :  { %3113 = vmatpush1.bf16.msra.mxu0 %v5559_v10  ;;  %5279 = vmatprep.subr.bf16.mxu1 %v7740_v11 }
 0x151   :  { %3114 = vmatprep.subr.bf16.mxu0 %v5565_v0 }
 0x153   :  { %5280 = vmatpush3.bf16.msra.mxu1 %v5566_v14 }
 0x154   :  { %3115 = vmatpush1.bf16.msra.mxu0 %v5563_v9  ;;  %5281 = vmatprep.subr.bf16.mxu1 %v7740_v11 }
 0x155   :  { %5032 = vmatprep.subr.msk.bf16.mxu0 %vm1919_vm1, %v5030_v59 }
 0x157   :  { %5282 = vmatpush3.bf16.msra.mxu1 %v3100_v60 }
 0x158   :  { %3117 = vmatpush1.bf16.msra.mxu0 %v3094_v61 }
 0x15a   :  { %5284 = vmatmul.mubr.msk.bf16.vlgmr.msra.gmra.mrb[48].mxu1 %vm1909_vm2, %v7014_v62 }
 0x15b   :  { %5033 = vmatmul.mubr.msk.bf16.vlgmr.msra.gmra.mrb[0].mxu0 %vm1909_vm2, %v7014_v62  ;;  %5287 = vmatprep.mubr.msk.bf16.mxu1 %vm5611_vm0, %v7740_v11 }
 0x15c   :  { %3144 = vmatprep.mubr.bf16.mxu0 %v7789_v7 }
 0x162   :  { %5288 = vmatmul.mubr.msk.bf16.gmra.mrb[52].mxu1 %vm1909_vm2, %v7044_v1 }
 0x163   :  { %5034 = vmatmul.mubr.msk.bf16.gmra.mrb[4].mxu0 %vm1909_vm2, %v7044_v1  ;;  %5291 = vmatprep.mubr.msk.bf16.mxu1 %vm5611_vm0, %v7740_v11 }
 0x164   :  { %3154 = vmatprep.mubr.bf16.mxu0 %v7789_v7 }
 0x16a   :  { %5292 = vmatmul.mubr.msk.bf16.gmra.mrb[56].mxu1 %vm1909_vm2, %v7030_v3 }
 0x16b   :  { %5035 = vmatmul.mubr.msk.bf16.gmra.mrb[24].mxu0 %vm1909_vm2, %v7030_v3 }
 0x1ad   :  { %v2024_v62 = vpop.f32.mrb[0].mxu1 }
 0x1ae   :  { %v5173_v63 = vpop.f32.mrb[1].mxu1 }
 0x1af   :  { %v2027_v58 = vpop.f32.mrb[2].mxu1 }
 0x1b0   :  { %v5174_v5 = vpop.f32.mrb[3].mxu1 }
 0x1b5   :  { %v2032_v12 = vpop.f32.mrb[4].mxu1 }
 0x1b6   :  { %v5177_v13 = vpop.f32.mrb[5].mxu1 }
 0x1b7   :  { %v2035_v2 = vpop.f32.mrb[6].mxu1 }
 0x1b8   :  { %v5178_v10 = vpop.f32.mrb[7].mxu1 }
 0x1bd   :  { %v2040_v4 = vpop.f32.mrb[8].mxu1 }
 0x1be   :  { %v1983_v1 = vpop.f32.mrb[8].mxu0  ;;  %v5181_v8 = vpop.f32.mrb[9].mxu1 }
 0x1bf   :  { %v1985_v0 = vpop.f32.mrb[9].mxu0  ;;  %v2043_v14 = vpop.f32.mrb[10].mxu1 }
 0x1c0   :  { %v1987_v9 = vpop.f32.mrb[10].mxu0  ;;  %v5182_v57 = vpop.f32.mrb[11].mxu1 }
 0x1c1   :  { %v1988_v59 = vpop.f32.mrb[11].mxu0 }
 0x1cd   :  { %v2292_v6 = vpop.f32.mrb[12].mxu1 }
 0x1ce   :  { %v2293_v60 = vadd.f32 %v2292_v6, %v2024_v62  ;;  %v5201_v61 = vpop.f32.mrb[13].mxu1 }
 0x1cf   :  { %v2295_v3 = vpop.f32.mrb[14].mxu1 }
 0x1d0   :  { %v2296_v11 = vadd.f32 %v2295_v3, %v2027_v58  ;;  %v5202_v63 = vpop.f32.mrb[15].mxu1 }
 0x1d5   :  { %v2300_v56 = vpop.f32.mrb[16].mxu1 }
 0x1d6   :  { %v2301_v5 = vadd.f32 %v2300_v56, %v2032_v12  ;;  %v5205_v55 = vpop.f32.mrb[17].mxu1 }
 0x1d7   :  { %v2303_v13 = vpop.f32.mrb[18].mxu1 }
 0x1d8   :  { %v2304_v54 = vadd.f32 %v2303_v13, %v2035_v2  ;;  %v5206_v10 = vpop.f32.mrb[19].mxu1 }
 0x1dd   :  { %v2308_v53 = vpop.f32.mrb[20].mxu1 }
 0x1de   :  { %v2251_v52 = vpop.f32.mrb[12].mxu0  ;;  %v2309_v51 = vadd.f32 %v2308_v53, %v2040_v4  ;;  %v5209_v14 = vpop.f32.mrb[21].mxu1 }
 0x1df   :  { %v2252_v8 = vadd.f32 %v2251_v52, %v1983_v1  ;;  %v2253_v9 = vpop.f32.mrb[13].mxu0  ;;  %v2311_v50 = vpop.f32.mrb[22].mxu1 }
 0x1e0   :  { %v2254_v59 = vadd.f32 %v2253_v9, %v1985_v0  ;;  %v2255_v57 = vpop.f32.mrb[14].mxu0  ;;  %v5210_v6 = vpop.f32.mrb[23].mxu1 }
 0x1e1   :  { %v2256_v62 = vpop.f32.mrb[15].mxu0 }
 0x1ed   :  { %v2584_v61 = vpop.f32.mrb[24].mxu1 }
 0x1ee   :  { %v2608_v58 = vadd.f32 %v2584_v61, %v2293_v60  ;;  %v5229_v3 = vpop.f32.mrb[25].mxu1 }
 0x1ef   :  { %v2587_v63 = vpop.f32.mrb[26].mxu1 }
 0x1f0   :  { %v2611_v56 = vadd.f32 %v2587_v63, %v2296_v11  ;;  %v5230_v55 = vpop.f32.mrb[27].mxu1 }
 0x1f5   :  { %v2592_v12 = vpop.f32.mrb[28].mxu1 }
 0x1f6   :  { %v2614_v2 = vadd.f32 %v2592_v12, %v2301_v5  ;;  %v5233_v13 = vpop.f32.mrb[29].mxu1 }
 0x1f7   :  { %v2595_v10 = vpop.f32.mrb[30].mxu1 }
 0x1f8   :  { %v2617_v49 = vadd.f32 %v2595_v10, %v2304_v54  ;;  %v5234_v53 = vpop.f32.mrb[31].mxu1 }
 0x1fd   :  { %v2600_v52 = vpop.f32.mrb[32].mxu1 }
 0x1fe   :  { %v2543_v1 = vpop.f32.mrb[16].mxu0  ;;  %v2620_v4 = vadd.f32 %v2600_v52, %v2309_v51  ;;  %v5237_v50 = vpop.f32.mrb[33].mxu1 }
 0x1ff   :  { %v2618_v0 = vadd.f32 %v2543_v1, %v2252_v8  ;;  %v2545_v9 = vpop.f32.mrb[17].mxu0  ;;  %v2603_v62 = vpop.f32.mrb[34].mxu1 }
 0x200   :  { %v2619_v14 = vadd.f32 %v2545_v9, %v2254_v59  ;;  %v2547_v57 = vpop.f32.mrb[18].mxu0  ;;  %v5238_v6 = vpop.f32.mrb[35].mxu1 }
 0x201   :  { %v2548_v60 = vpop.f32.mrb[19].mxu0  ;;  %v3236_v57 = vlaneseq }
 0x20d   :  { %v2890_v61 = vpop.f32.mrb[36].mxu1 }
 0x20e   :  { %v2914_v11 = vadd.f32 %v2890_v61, %v2608_v58  ;;  %v5257_v3 = vpop.f32.mrb[37].mxu1 }
 0x20f   :  { %v2893_v63 = vpop.f32.mrb[38].mxu1 }
 0x210   :  { %v2917_v5 = vadd.f32 %v2893_v63, %v2611_v56  ;;  %v5258_v55 = vpop.f32.mrb[39].mxu1 }
 0x215   :  { %v2898_v12 = vpop.f32.mrb[40].mxu1 }
 0x216   :  { %v2920_v54 = vadd.f32 %v2898_v12, %v2614_v2  ;;  %v5261_v13 = vpop.f32.mrb[41].mxu1  ;;  %v7386_v2 = vshrl.u32 %v3236_v57, 7 }
 0x217   :  { %v2901_v10 = vpop.f32.mrb[42].mxu1 }
 0x218   :  { %v2923_v53 = vadd.f32 %v2901_v10, %v2617_v49  ;;  %v5262_v51 = vpop.f32.mrb[43].mxu1  ;;  %v7742_v49 = vsub.s32 0, %v7386_v2  ;;  %v3246_v61 = vsub.s32 2, %v7386_v2 }
 0x21d   :  { %v2906_v8 = vpop.f32.mrb[44].mxu1 }
 0x21e   :  { %v2849_v52 = vpop.f32.mrb[20].mxu0  ;;  %v7380_v1 = vadd.f32 %v2906_v8, %v2620_v4  ;;  %v5265_v50 = vpop.f32.mrb[45].mxu1  ;;  %v3234_v4 = vld [vmem:[%s7728_s2] sm:$0x7] }
 0x21f   :  { %v7382_v59 = vadd.f32 %v2849_v52, %v2618_v0  ;;  %v2851_v9 = vpop.f32.mrb[21].mxu0  ;;  %v2909_v56 = vpop.f32.mrb[46].mxu1  ;;  %v7743_v0 = vsub.s32 1, %v7386_v2  ;;  %v3247_v63 = vrot.slane %v3234_v4, %v3246_v61 }
 0x220   :  { %v7384_v58 = vadd.f32 %v2851_v9, %v2619_v14  ;;  %v2853_v62 = vpop.f32.mrb[22].mxu0  ;;  %v5266_v6 = vpop.f32.mrb[47].mxu1  ;;  %v3239_v14 = vrot.slane %v3234_v4, %v7742_v49 }
 0x221   :  { %v2854_v60 = vpop.f32.mrb[23].mxu0  ;;  %v3243_v3 = vrot.slane %v3234_v4, %v7743_v0 }
 0x22d   :  { %v3197_v55 = vpop.f32.mrb[48].mxu1 }
 0x22e   :  { %v3136_v12 = vpop.f32.mrb[0].mxu0  ;;  %v3221_v13 = vadd.f32 %v3197_v55, %v2914_v11  ;;  %v5285_v51 = vpop.f32.mrb[49].mxu1 }
 0x22f   :  { %v3251_v10 = vadd.f32 %v3239_v14, %v3136_v12  ;;  %v3138_v8 = vpop.f32.mrb[1].mxu0  ;;  %v3200_v9 = vpop.f32.mrb[50].mxu1 }
 0x230   :  { %v3252_v52 = vadd.f32 %v3243_v3, %v3138_v8  ;;  %v3140_v50 = vpop.f32.mrb[2].mxu0  ;;  %v3253_v57 = vadd.f32 %v3247_v63, %v3221_v13  ;;  %v3224_v56 = vadd.f32 %v3200_v9, %v2917_v5  ;;  %v5286_v6 = vpop.f32.mrb[51].mxu1 }
 0x231   :  { %v3266_v62 = vmax.f32 %v3251_v10, 0.0  ;;  %v3254_v60 = vadd.f32 %v3239_v14, %v3140_v50  ;;  %v3142_v48 = vpop.f32.mrb[3].mxu0 }
 0x232   :  { %v3267_v49 = vmax.f32 %v3252_v52, 0.0  ;;  %v3255_v47 = vadd.f32 %v3243_v3, %v3142_v48  ;;  %v3268_v46 = vmax.f32 %v3253_v57, 0.0  ;;  %v3256_v0 = vadd.f32 %v3247_v63, %v3224_v56 }
 0x233   :  { %v3269_v4 = vmax.f32 %v3254_v60, 0.0 }
 0x234   :  { %v3270_v61 = vmax.f32 %v3255_v47, 0.0  ;;  %v3271_v45 = vmax.f32 %v3256_v0, 0.0 }
 0x235   :  { %v3205_v11 = vpop.f32.mrb[52].mxu1  ;;  %v3291_v26 = vpack.c.bf16 %v3269_v4, %v3266_v62 }
 0x236   :  { %v3146_v55 = vpop.f32.mrb[4].mxu0  ;;  %v3227_v12 = vadd.f32 %v3205_v11, %v2920_v54  ;;  %v5289_v8 = vpop.f32.mrb[53].mxu1 }
 0x237   :  { %v3257_v51 = vadd.f32 %v3239_v14, %v3146_v55  ;;  %v3148_v44 = vpop.f32.mrb[5].mxu0  ;;  %v3208_v13 = vpop.f32.mrb[54].mxu1 }
 0x238   :  { %v3258_v43 = vadd.f32 %v3243_v3, %v3148_v44  ;;  %v3150_v10 = vpop.f32.mrb[6].mxu0  ;;  %v3259_v5 = vadd.f32 %v3247_v63, %v3227_v12  ;;  %v3230_v50 = vadd.f32 %v3208_v13, %v2923_v53  ;;  %v5290_v52 = vpop.f32.mrb[55].mxu1 }
 0x239   :  { %v3272_v9 = vmax.f32 %v3257_v51, 0.0  ;;  %v3260_v6 = vadd.f32 %v3239_v14, %v3150_v10  ;;  %v3152_v48 = vpop.f32.mrb[7].mxu0 }
 0x23a   :  { %v3273_v57 = vmax.f32 %v3258_v43, 0.0  ;;  %v3261_v56 = vadd.f32 %v3243_v3, %v3152_v48  ;;  %v3274_v60 = vmax.f32 %v3259_v5, 0.0  ;;  %v3262_v47 = vadd.f32 %v3247_v63, %v3230_v50 }
 0x23b   :  { %v3275_v0 = vmax.f32 %v3260_v6, 0.0 }
 0x23c   :  { %v3276_v28 = vmax.f32 %v3261_v56, 0.0  ;;  %v3277_v27 = vmax.f32 %v3262_v47, 0.0  ;;  %v3292_v47 = vpack.c.bf16 %v3270_v61, %v3267_v49 }
 0x23d   :  { %v3213_v54 = vpop.f32.mrb[56].mxu1 }
 0x23e   :  { %v3156_v11 = vpop.f32.mrb[24].mxu0  ;;  %v3233_v55 = vadd.f32 %v3213_v54, %v7380_v1  ;;  %v5293_v8 = vpop.f32.mrb[57].mxu1 }
 0x23f   :  { %v3231_v44 = vadd.f32 %v3156_v11, %v7382_v59  ;;  %v3158_v12 = vpop.f32.mrb[25].mxu0  ;;  %v3216_v51 = vpop.f32.mrb[58].mxu1 }
 0x240   :  { %v3232_v53 = vadd.f32 %v3158_v12, %v7384_v58  ;;  %v3160_v13 = vpop.f32.mrb[26].mxu0  ;;  %v3265_v10 = vadd.f32 %v3247_v63, %v3233_v55  ;;  %v5294_v52 = vpop.f32.mrb[59].mxu1 }
 0x241   :  { %v3263_v43 = vadd.f32 %v3239_v14, %v3231_v44  ;;  %v3161_v5 = vpop.f32.mrb[27].mxu0 }
 0x242   :  { %v3264_v50 = vadd.f32 %v3243_v3, %v3232_v53  ;;  %v3280_v6 = vmax.f32 %v3265_v10, 0.0 }
 0x243   :  { %v3278_v48 = vmax.f32 %v3263_v43, 0.0 }
 0x244   :  { %v3279_v56 = vmax.f32 %v3264_v50, 0.0 }
 0x245   :  { %5604 = dma.done.wait [#allocation4], 23040 }
 0x246   :  { %5605 = vsyncadd [#allocation4], 4294944256  ;;  %v7790_v1 = vmov 0.0   ;;  %v3293_v59 = vpack.c.bf16 %v3271_v45, %v3268_v46  ;;  %v3295_v54 = vpack.c.bf16 %v3276_v28, %v3273_v57  ;;  %3365 = vmatprep.mubr.bf16.mxu0 %v7789_v7  ;;  %3333 = vmatprep.subr.bf16.mxu0 %v3292_v47  ;;  %v3296_v58 = vpack.c.bf16 %v3277_v27, %v3274_v60  ;;  %v3497_v46 = vld [vmem:[#allocation2 + $0x128] sm:$0xff]  ;;  %v3496_v27 = vld [vmem:[#allocation2 + $0x120] sm:$0xff] }
 0x247   :  { %5295 = vmatprep.subr.bf16.mxu1 %v7790_v1  ;;  %5301 = vmatprep.mubr.msk.bf16.mxu1 %vm5611_vm0, %v7790_v1  ;;  %v3294_v14 = vpack.c.bf16 %v3275_v0, %v3272_v9  ;;  %v3299_v49 = vpack.c.bf16 %v3280_v6, %v3280_v6  ;;  %v3298_v3 = vpack.c.bf16 %v3279_v56, %v3279_v56  ;;  %vm3323_vm5 = vcmask 1041408   ;;  %v3499_v62 = vld [vmem:[#allocation2 + $0x138] sm:$0xff]  ;;  %v3498_v4 = vld [vmem:[#allocation2 + $0x130] sm:$0xff]  ;;  %v3501_v61 = vld [vmem:[#allocation2 + $0x148] sm:$0xff] }
 0x248   :  { %5296 = vmatpush3.bf16.msra.mxu1 %v3293_v59  ;;  %3334 = vmatpush1.bf16.msra.mxu0 %v3291_v26  ;;  %v3297_v63 = vpack.c.bf16 %v3278_v48, %v3278_v48  ;;  %v5570_v26 = vld [vmem:[%s7729_s3] sm:$0xff]   ;;  %vm3313_vm6 = vcmask 293888   ;;  %v5571_v9 = vld [vmem:[%s7729_s3 + $0x8] sm:$0xff]   ;;  %v3503_v60 = vld [vmem:[#allocation2 + $0x158] sm:$0xff]  ;;  %vm3540_vm7 = vcmask 261120  }
 0x249   :  { %5297 = vmatprep.subr.bf16.mxu1 %v7790_v1  ;;  %3335 = vmatprep.subr.bf16.mxu0 %v3295_v54  ;;  %v3331_v28 = vsel %vm3323_vm5, %v3299_v49, 0  ;;  %v3500_v57 = vld [vmem:[#allocation2 + $0x140] sm:$0xff]  ;;  %v3502_v0 = vld [vmem:[#allocation2 + $0x150] sm:$0xff]  ;;  %v3505_v11 = vld [vmem:[#allocation2 + $0x168] sm:$0xff] }
 0x24a   :  { %v3325_v45 = vsel %vm3323_vm5, %v3297_v63, 0  ;;  %v5572_v55 = vld [vmem:[%s7729_s3 + $0x10] ss:$0 sps:$4 sm:$0x33]   ;;  %v3504_v44 = vld [vmem:[#allocation2 + $0x160] sm:$0xff]  ;;  %v3507_v8 = vld [vmem:[#allocation2 + $0x178] sm:$0xff] }
 0x24b   :  { %v3506_v12 = vld [vmem:[#allocation2 + $0x170] sm:$0xff]  ;;  %v3509_v53 = vld [vmem:[#allocation2 + $0x188] sm:$0xff]  ;;  %v3508_v51 = vld [vmem:[#allocation2 + $0x180] sm:$0xff] }
 0x24c   :  { %5298 = vmatpush3.bf16.msra.mxu1 %v3296_v58  ;;  %3336 = vmatpush1.bf16.msra.mxu0 %v3294_v14  ;;  %v3511_v13 = vld [vmem:[#allocation2 + $0x198] sm:$0xff]  ;;  %v3510_v10 = vld [vmem:[#allocation2 + $0x190] sm:$0xff]  ;;  %v3513_v43 = vld [vmem:[#allocation2 + $0x1a8] sm:$0xff] }
 0x24d   :  { %5299 = vmatprep.subr.bf16.mxu1 %v7790_v1  ;;  %5042 = vmatprep.subr.msk.bf16.mxu0 %vm3323_vm5, %v3298_v3  ;;  %v3512_v52 = vld [vmem:[#allocation2 + $0x1a0] sm:$0xff]  ;;  %v3515_v5 = vld [vmem:[#allocation2 + $0x1b8] sm:$0xff]  ;;  %v3514_v50 = vld [vmem:[#allocation2 + $0x1b0] sm:$0xff] }
 0x24e   :  { %v3517_v6 = vld [vmem:[#allocation2 + $0x1c8] sm:$0xff]  ;;  %v3516_v48 = vld [vmem:[#allocation2 + $0x1c0] sm:$0xff]  ;;  %v3519_v56 = vld [vmem:[#allocation2 + $0x1d8] sm:$0xff] }
 0x24f   :  { %v3518_v47 = vld [vmem:[#allocation2 + $0x1d0] sm:$0xff]  ;;  %v3521_v59 = vld [vmem:[#allocation2 + $0x1e8] sm:$0xff]  ;;  %v3520_v54 = vld [vmem:[#allocation2 + $0x1e0] sm:$0xff] }
 0x250   :  { %5300 = vmatpush3.bf16.msra.mxu1 %v3331_v28  ;;  %3338 = vmatpush1.bf16.msra.mxu0 %v3325_v45  ;;  %v3523_v58 = vld [vmem:[#allocation2 + $0x1f8] sm:$0xff]  ;;  %v3522_v14 = vld [vmem:[#allocation2 + $0x1f0] sm:$0xff]  ;;  %v3525_v49 = vld [vmem:[#allocation2 + $0x208] sm:$0xff] }
 0x251   :  { %3544 = vmatprep.subr.bf16.mxu0 %v3497_v46  ;;  %v3524_v3 = vld [vmem:[#allocation2 + $0x200] sm:$0xff]  ;;  %v3529_v63 = vld [vmem:[#allocation2 + $0x228] sm:$0xff]  ;;  %v3527_v45 = vld [vmem:[#allocation2 + $0x218] sm:$0xff] }
 0x252   :  { %3587 = vmatprep.subr.bf16.mxu1 %v3529_v63  ;;  %v3528_v28 = vld [vmem:[#allocation2 + $0x220] sm:$0xff]  ;;  %v3526_v46 = vld [vmem:[#allocation2 + $0x210] sm:$0xff]  ;;  %v3462_v63 = vld [vmem:[#allocation2 + $0x18] sm:$0xff] }
 0x253   :  { %5302 = vmatmul.mubr.msk.bf16.vlgmr.msra.gmra.mrb[60].mxu1 %vm3313_vm6, %v5570_v26  ;;  %5043 = vmatmul.mubr.msk.bf16.vlgmr.msra.gmra.mrb[28].mxu0 %vm3313_vm6, %v5570_v26  ;;  %v3531_v26 = vld [vmem:[#allocation2 + $0x238] sm:$0xff] }
 0x254   :  { %5305 = vmatprep.mubr.msk.bf16.mxu1 %vm5611_vm0, %v7790_v1  ;;  %3375 = vmatprep.mubr.bf16.mxu0 %v7789_v7 }
 0x255   :  { %3545 = vmatpush1.bf16.msra.mxu0 %v3496_v27  ;;  %3588 = vmatpush1.bf16.msra.mxu1 %v3528_v28  ;;  %v3530_v27 = vld [vmem:[#allocation2 + $0x230] sm:$0xff] }
 0x256   :  { %3546 = vmatprep.subr.bf16.mxu0 %v3499_v62  ;;  %3589 = vmatprep.subr.bf16.mxu1 %v3531_v26  ;;  %v3460_v62 = vld [vmem:[#allocation2 + $0x8] sm:$0xff] }
 0x259   :  { %3547 = vmatpush1.bf16.msra.mxu0 %v3498_v4  ;;  %3590 = vmatpush1.bf16.msra.mxu1 %v3530_v27 }
 0x25a   :  { %3548 = vmatprep.subr.bf16.mxu0 %v3501_v61 }
 0x25b   :  { %5306 = vmatmul.mubr.msk.bf16.gmra.mrb[64].mxu1 %vm3313_vm6, %v5571_v9  ;;  %5044 = vmatmul.mubr.msk.bf16.gmra.mrb[32].mxu0 %vm3313_vm6, %v5571_v9 }
 0x25c   :  { %5309 = vmatprep.mubr.msk.bf16.mxu1 %vm5611_vm0, %v7790_v1  ;;  %3385 = vmatprep.mubr.bf16.mxu0 %v7789_v7 }
 0x25d   :  { %3549 = vmatpush1.bf16.msra.mxu0 %v3500_v57 }
 0x25e   :  { %3550 = vmatprep.subr.bf16.mxu0 %v3503_v60 }
 0x261   :  { %3551 = vmatpush1.bf16.msra.mxu0 %v3502_v0 }
 0x262   :  { %3552 = vmatprep.subr.bf16.mxu0 %v3505_v11 }
 0x263   :  { %5310 = vmatmul.mubr.msk.bf16.gmra.mrb[68].mxu1 %vm3313_vm6, %v5572_v55  ;;  %5045 = vmatmul.mubr.msk.bf16.gmra.mrb[36].mxu0 %vm3313_vm6, %v5572_v55 }
 0x264   :  { %3619 = vmatprep.mubr.bf16.mxu1 %v7789_v7 }
 0x265   :  { %3553 = vmatpush1.bf16.msra.mxu0 %v3504_v44 }
 0x266   :  { %3554 = vmatprep.subr.bf16.mxu0 %v3507_v8 }
 0x269   :  { %3555 = vmatpush1.bf16.msra.mxu0 %v3506_v12 }
 0x26a   :  { %3556 = vmatprep.subr.bf16.mxu0 %v3509_v53 }
 0x26d   :  { %3557 = vmatpush1.bf16.msra.mxu0 %v3508_v51 }
 0x26e   :  { %3558 = vmatprep.subr.bf16.mxu0 %v3511_v13 }
 0x271   :  { %3559 = vmatpush1.bf16.msra.mxu0 %v3510_v10 }
 0x272   :  { %3560 = vmatprep.subr.bf16.mxu0 %v3513_v43 }
 0x275   :  { %3561 = vmatpush1.bf16.msra.mxu0 %v3512_v52 }
 0x276   :  { %3562 = vmatprep.subr.bf16.mxu0 %v3515_v5 }
 0x279   :  { %3563 = vmatpush1.bf16.msra.mxu0 %v3514_v50 }
 0x27a   :  { %3564 = vmatprep.subr.bf16.mxu0 %v3517_v6 }
 0x27d   :  { %3565 = vmatpush1.bf16.msra.mxu0 %v3516_v48 }
 0x27e   :  { %3566 = vmatprep.subr.bf16.mxu0 %v3519_v56 }
 0x281   :  { %3567 = vmatpush1.bf16.msra.mxu0 %v3518_v47 }
 0x282   :  { %3568 = vmatprep.subr.bf16.mxu0 %v3521_v59 }
 0x285   :  { %3569 = vmatpush1.bf16.msra.mxu0 %v3520_v54 }
 0x286   :  { %3570 = vmatprep.subr.bf16.mxu0 %v3523_v58 }
 0x289   :  { %3571 = vmatpush1.bf16.msra.mxu0 %v3522_v14 }
 0x28a   :  { %3572 = vmatprep.subr.bf16.mxu0 %v3525_v49  ;;  %v3459_v49 = vld [vmem:[#allocation2] sm:$0xff] }
 0x28d   :  { %3573 = vmatpush1.bf16.msra.mxu0 %v3524_v3 }
 0x28e   :  { %3574 = vmatprep.subr.bf16.mxu0 %v3527_v45 }
 0x291   :  { %3575 = vmatpush1.bf16.msra.mxu0 %v3526_v46 }
 0x292   :  { %3633 = vmatprep.subr.bf16.mxu0 %v3460_v62 }
 0x326   :  { %v3428_v4 = vpop.f32.mrb[60].mxu1  ;;  %v3367_v61 = vpop.f32.mrb[28].mxu0 }
 0x327   :  { %v5303_v9 = vpop.f32.mrb[61].mxu1  ;;  %v3369_v57 = vpop.f32.mrb[29].mxu0 }
 0x328   :  { %v3431_v60 = vpop.f32.mrb[62].mxu1  ;;  %v3371_v0 = vpop.f32.mrb[30].mxu0 }
 0x329   :  { %v7429_v11 = vpack.c.bf16 %v3431_v60, %v3428_v4  ;;  %v5304_v55 = vpop.f32.mrb[63].mxu1  ;;  %v7431_v44 = vpack.c.bf16 %v3371_v0, %v3367_v61  ;;  %v3373_v8 = vpop.f32.mrb[31].mxu0  ;;  %v3461_v61 = vld [vmem:[#allocation2 + $0x10] sm:$0xff]  ;;  %v3464_v60 = vld [vmem:[#allocation2 + $0x28] sm:$0xff] }
 0x32a   :  { %v7433_v12 = vpack.c.bf16 %v3373_v8, %v3369_v57  ;;  %v3463_v8 = vld [vmem:[#allocation2 + $0x20] sm:$0xff] }
 0x32c   :  { %v4040_v58 = vrot.slane %v7433_v12, 2 }
 0x32e   :  { %v3436_v53 = vpop.f32.mrb[64].mxu1  ;;  %v3377_v51 = vpop.f32.mrb[32].mxu0 }
 0x32f   :  { %v5307_v13 = vpop.f32.mrb[65].mxu1  ;;  %v3379_v10 = vpop.f32.mrb[33].mxu0 }
 0x330   :  { %v3439_v43 = vpop.f32.mrb[66].mxu1  ;;  %v3381_v52 = vpop.f32.mrb[34].mxu0  ;;  %v3468_v13 = vld [vmem:[#allocation2 + $0x48] sm:$0xff] }
 0x331   :  { %v7435_v5 = vpack.c.bf16 %v3439_v43, %v3436_v53  ;;  %v5308_v50 = vpop.f32.mrb[67].mxu1  ;;  %v7437_v6 = vpack.c.bf16 %v3381_v52, %v3377_v51  ;;  %v3383_v48 = vpop.f32.mrb[35].mxu0  ;;  %v3466_v53 = vld [vmem:[#allocation2 + $0x38] sm:$0xff]  ;;  %v3465_v51 = vld [vmem:[#allocation2 + $0x30] sm:$0xff] }
 0x332   :  { %v3454_v56 = vpack.c.bf16 %v3383_v48, %v3379_v10  ;;  %v3467_v10 = vld [vmem:[#allocation2 + $0x40] sm:$0xff]  ;;  %v3470_v43 = vld [vmem:[#allocation2 + $0x58] sm:$0xff]  ;;  %v3469_v52 = vld [vmem:[#allocation2 + $0x50] sm:$0xff] }
 0x333   :  { %v3537_v47 = vrot.slane %v7435_v5, 1  ;;  %v3535_v14 = vrot.slane %v7437_v6, 1  ;;  %v3897_v62 = vrot.slane %v7437_v6, 2  ;;  %v3472_v50 = vld [vmem:[#allocation2 + $0x68] sm:$0xff]  ;;  %v3471_v48 = vld [vmem:[#allocation2 + $0x60] sm:$0xff] }
 0x334   :  { %v3536_v59 = vrot.slane %v3454_v56, 1  ;;  %v3900_v54 = vrot.slane %v3454_v56, 2  ;;  %v3474_v56 = vld [vmem:[#allocation2 + $0x78] sm:$0xff]  ;;  %v4139_v6 = vld [vmem:[%s7730_s4] sm:$0x3] }
 0x335   :  { %5049 = vmatmul.mubr.msk.bf16.vlgmr.msra.gmra.mrb[72].mxu1 %vm3540_vm7, %v3537_v47  ;;  %v3473_v47 = vld [vmem:[#allocation2 + $0x70] sm:$0xff] }
 0x336   :  { %v3387_v3 = vpop.f32.mrb[36].mxu0  ;;  %3576 = vmatprep.mubr.bf16.mxu0 %v3536_v59  ;;  %v7444_v28 = vsel %vm2958_vm4, %v4040_v58, %v3900_v54  ;;  %v3476_v59 = vld [vmem:[#allocation2 + $0x88] sm:$0xff]  ;;  %v3478_v58 = vld [vmem:[#allocation2 + $0x98] sm:$0xff] }
 0x337   :  { %v3456_v45 = vpack.c.bf16 %v3387_v3, %v3387_v3  ;;  %v3389_v46 = vpop.f32.mrb[37].mxu0  ;;  %3577 = vmatmul.mubr.bf16.vlgmr.msra.gmra.mrb[40].mxu0 %v3535_v14  ;;  %v3477_v14 = vld [vmem:[#allocation2 + $0x90] sm:$0xff]  ;;  %v3479_v3 = vld [vmem:[#allocation2 + $0xa0] sm:$0xff] }
 0x338   :  { %v3457_v26 = vpack.c.bf16 %v3389_v46, %v3389_v46  ;;  %3634 = vmatpush1.bf16.msra.mxu0 %v3459_v49  ;;  %3665 = vmatprep.mubr.bf16.mxu0 %v7433_v12  ;;  %v3391_v27 = vpop.f32.mrb[38].mxu0  ;;  %v3480_v49 = vld [vmem:[#allocation2 + $0xa8] sm:$0xff] }
 0x339   :  { %v3898_v4 = vrot.slane %v3456_v45, 2  ;;  %3635 = vmatprep.subr.bf16.mxu0 %v3462_v63  ;;  %v3392_v9 = vpop.f32.mrb[39].mxu0  ;;  %v3482_v63 = vld [vmem:[#allocation2 + $0xb8] sm:$0xff]  ;;  %v3481_v45 = vld [vmem:[#allocation2 + $0xb0] sm:$0xff]  ;;  %v3484_v46 = vld [vmem:[#allocation2 + $0xc8] sm:$0xff] }
 0x33a   :  { %v3901_v57 = vrot.slane %v3457_v26, 2  ;;  %v3483_v26 = vld [vmem:[#allocation2 + $0xc0] sm:$0xff]  ;;  %v3486_v27 = vld [vmem:[#allocation2 + $0xd8] sm:$0xff] }
 0x33b   :  { %v7451_v0 = vsel %vm2958_vm4, %v3897_v62, %v3898_v4  ;;  %v3485_v4 = vld [vmem:[#allocation2 + $0xd0] sm:$0xff]  ;;  %v3487_v9 = vld [vmem:[#allocation2 + $0xe0] sm:$0xff] }
 0x33c   :  { %3636 = vmatpush1.bf16.msra.mxu0 %v3461_v61  ;;  %v7454_v55 = vsel %vm2958_vm4, %v3900_v54, %v3901_v57  ;;  %v3475_v54 = vld [vmem:[#allocation2 + $0x80] sm:$0xff]  ;;  %v3488_v61 = vld [vmem:[#allocation2 + $0xe8] sm:$0xff]  ;;  %v3490_v57 = vld [vmem:[#allocation2 + $0xf8] sm:$0xff] }
 0x33d   :  { %3637 = vmatprep.subr.bf16.mxu0 %v3464_v60  ;;  %v3489_v60 = vld [vmem:[#allocation2 + $0xf0] sm:$0xff] }
 0x340   :  { %3638 = vmatpush1.bf16.msra.mxu0 %v3463_v8  ;;  %v3492_v8 = vld [vmem:[#allocation2 + $0x108] sm:$0xff] }
 0x341   :  { %3639 = vmatprep.subr.bf16.mxu0 %v3466_v53  ;;  %v3491_v53 = vld [vmem:[#allocation2 + $0x100] sm:$0xff] }
 0x344   :  { %3640 = vmatpush1.bf16.msra.mxu0 %v3465_v51  ;;  %v3494_v51 = vld [vmem:[#allocation2 + $0x118] sm:$0xff] }
 0x345   :  { %3641 = vmatprep.subr.bf16.mxu0 %v3468_v13  ;;  %v3493_v13 = vld [vmem:[#allocation2 + $0x110] sm:$0xff] }
 0x348   :  { %3642 = vmatpush1.bf16.msra.mxu0 %v3467_v10  ;;  %v3721_v10 = vld [vmem:[#allocation2 + $0x248] sm:$0xff] }
 0x349   :  { %3643 = vmatprep.subr.bf16.mxu0 %v3470_v43  ;;  %v3720_v43 = vld [vmem:[#allocation2 + $0x240] sm:$0xff] }
 0x34c   :  { %3644 = vmatpush1.bf16.msra.mxu0 %v3469_v52  ;;  %v3760_v52 = vrot.slane %v7433_v12, 1  ;;  %v3726_v12 = vld [vmem:[#allocation2 + $0x270] sm:$0xff] }
 0x34d   :  { %3645 = vmatprep.subr.bf16.mxu0 %v3472_v50  ;;  %v3723_v50 = vld [vmem:[#allocation2 + $0x258] sm:$0xff] }
 0x350   :  { %3646 = vmatpush1.bf16.msra.mxu0 %v3471_v48  ;;  %v3722_v48 = vld [vmem:[#allocation2 + $0x250] sm:$0xff] }
 0x351   :  { %3647 = vmatprep.subr.bf16.mxu0 %v3474_v56  ;;  %v3725_v56 = vld [vmem:[#allocation2 + $0x268] sm:$0xff] }
 0x354   :  { %3648 = vmatpush1.bf16.msra.mxu0 %v3473_v47  ;;  %v7461_v47 = vpop.f32.mrb[68].mxu1 }
 0x355   :  { %3649 = vmatprep.subr.bf16.mxu0 %v3476_v59  ;;  %v3724_v59 = vld [vmem:[#allocation2 + $0x260] sm:$0xff] }
 0x358   :  { %3650 = vmatpush1.bf16.msra.mxu0 %v3475_v54  ;;  %v5311_v54 = vpop.f32.mrb[69].mxu1 }
 0x359   :  { %3651 = vmatprep.subr.bf16.mxu0 %v3478_v58  ;;  %v3727_v58 = vld [vmem:[#allocation2 + $0x278] sm:$0xff] }
 0x35a   :  { %v3751_v54 = vld [vmem:[#allocation2 + $0x338] sm:$0xff] }
 0x35c   :  { %3652 = vmatpush1.bf16.msra.mxu0 %v3477_v14  ;;  %v3447_v14 = vpop.f32.mrb[70].mxu1 }
 0x35d   :  { %3653 = vmatprep.subr.bf16.mxu0 %v3480_v49  ;;  %v5312_v49 = vpop.f32.mrb[71].mxu1  ;;  %v3753_v14 = vld [vmem:[#allocation2 + $0x348] sm:$0xff] }
 0x35e   :  { %v3759_v49 = vrot.slane %v7431_v44, 1 }
 0x360   :  { %3654 = vmatpush1.bf16.msra.mxu0 %v3479_v3  ;;  %v3729_v3 = vld [vmem:[#allocation2 + $0x288] sm:$0xff] }
 0x361   :  { %3655 = vmatprep.subr.bf16.mxu0 %v3482_v63  ;;  %v3728_v63 = vld [vmem:[#allocation2 + $0x280] sm:$0xff] }
 0x364   :  { %3656 = vmatpush1.bf16.msra.mxu0 %v3481_v45  ;;  %v3731_v45 = vld [vmem:[#allocation2 + $0x298] sm:$0xff] }
 0x365   :  { %3657 = vmatprep.subr.bf16.mxu0 %v3484_v46  ;;  %v3730_v46 = vld [vmem:[#allocation2 + $0x290] sm:$0xff] }
 0x368   :  { %3658 = vmatpush1.bf16.msra.mxu0 %v3483_v26  ;;  %v3733_v26 = vld [vmem:[#allocation2 + $0x2a8] sm:$0xff] }
 0x369   :  { %3659 = vmatprep.subr.bf16.mxu0 %v3486_v27  ;;  %v3732_v27 = vld [vmem:[#allocation2 + $0x2a0] sm:$0xff] }
 0x36c   :  { %3660 = vmatpush1.bf16.msra.mxu0 %v3485_v4  ;;  %v3735_v4 = vld [vmem:[#allocation2 + $0x2b8] sm:$0xff] }
 0x36d   :  { %3661 = vmatprep.subr.bf16.mxu0 %v3488_v61  ;;  %v3734_v61 = vld [vmem:[#allocation2 + $0x2b0] sm:$0xff] }
 0x370   :  { %3662 = vmatpush1.bf16.msra.mxu0 %v3487_v9  ;;  %v3737_v9 = vld [vmem:[#allocation2 + $0x2c8] sm:$0xff] }
 0x371   :  { %3663 = vmatprep.subr.bf16.mxu0 %v3490_v57  ;;  %v3736_v57 = vld [vmem:[#allocation2 + $0x2c0] sm:$0xff] }
 0x374   :  { %3664 = vmatpush1.bf16.msra.mxu0 %v3489_v60  ;;  %v3739_v60 = vld [vmem:[#allocation2 + $0x2d8] sm:$0xff] }
 0x375   :  { %3676 = vmatprep.subr.bf16.mxu0 %v3492_v8  ;;  %v3738_v8 = vld [vmem:[#allocation2 + $0x2d0] sm:$0xff] }
 0x377   :  { %3666 = vmatmul.mubr.bf16.vlgmr.msra.gmra.mrb[44].mxu0 %v7431_v44 }
 0x378   :  { %3677 = vmatpush1.bf16.msra.mxu0 %v3491_v53  ;;  %3708 = vmatprep.mubr.bf16.mxu0 %v7789_v7  ;;  %v3741_v53 = vld [vmem:[#allocation2 + $0x2e8] sm:$0xff] }
 0x379   :  { %3678 = vmatprep.subr.bf16.mxu0 %v3494_v51  ;;  %v3740_v51 = vld [vmem:[#allocation2 + $0x2e0] sm:$0xff] }
 0x37c   :  { %3679 = vmatpush1.bf16.msra.mxu0 %v3493_v13  ;;  %v3743_v13 = vld [vmem:[#allocation2 + $0x2f8] sm:$0xff] }
 0x37d   :  { %3767 = vmatprep.subr.bf16.mxu0 %v3721_v10  ;;  %v3742_v10 = vld [vmem:[#allocation2 + $0x2f0] sm:$0xff] }
 0x383   :  { %5050 = vmatmul.mubr.msk.bf16.vlgmr.msra.gmra.mrb[44].mxu0 %vm3540_vm7, %v7429_v11 }
 0x384   :  { %3768 = vmatpush1.bf16.msra.mxu0 %v3720_v43  ;;  %3799 = vmatprep.mubr.bf16.mxu0 %v3760_v52  ;;  %v3745_v43 = vld [vmem:[#allocation2 + $0x308] sm:$0xff]  ;;  %v3744_v52 = vld [vmem:[#allocation2 + $0x300] sm:$0xff] }
 0x385   :  { %3769 = vmatprep.subr.bf16.mxu0 %v3723_v50  ;;  %v3747_v50 = vld [vmem:[#allocation2 + $0x318] sm:$0xff] }
 0x388   :  { %3770 = vmatpush1.bf16.msra.mxu0 %v3722_v48  ;;  %v3746_v48 = vld [vmem:[#allocation2 + $0x310] sm:$0xff] }
 0x389   :  { %3771 = vmatprep.subr.bf16.mxu0 %v3725_v56  ;;  %v3749_v56 = vld [vmem:[#allocation2 + $0x328] sm:$0xff] }
 0x38c   :  { %3772 = vmatpush1.bf16.msra.mxu0 %v3724_v59  ;;  %v3748_v59 = vld [vmem:[#allocation2 + $0x320] sm:$0xff] }
 0x38d   :  { %3773 = vmatprep.subr.bf16.mxu0 %v3727_v58  ;;  %v3750_v58 = vld [vmem:[#allocation2 + $0x330] sm:$0xff] }
 0x390   :  { %3774 = vmatpush1.bf16.msra.mxu0 %v3726_v12  ;;  %v3752_v12 = vld [vmem:[#allocation2 + $0x340] sm:$0xff] }
 0x391   :  { %3775 = vmatprep.subr.bf16.mxu0 %v3729_v3  ;;  %v3755_v3 = vld [vmem:[#allocation2 + $0x358] sm:$0xff] }
 0x394   :  { %3776 = vmatpush1.bf16.msra.mxu0 %v3728_v63  ;;  %v3754_v63 = vld [vmem:[#allocation2 + $0x350] sm:$0xff] }
 0x395   :  { %3777 = vmatprep.subr.bf16.mxu0 %v3731_v45  ;;  %v3859_v45 = vld [vmem:[#allocation2 + $0x368] sm:$0xff] }
 0x398   :  { %3778 = vmatpush1.bf16.msra.mxu0 %v3730_v46  ;;  %v3761_v46 = vrot.slane %v7429_v11, 1 }
 0x399   :  { %3779 = vmatprep.subr.bf16.mxu0 %v3733_v26  ;;  %v3858_v26 = vld [vmem:[#allocation2 + $0x360] sm:$0xff] }
 0x39c   :  { %3780 = vmatpush1.bf16.msra.mxu0 %v3732_v27  ;;  %v3861_v27 = vld [vmem:[#allocation2 + $0x378] sm:$0xff] }
 0x39d   :  { %3781 = vmatprep.subr.bf16.mxu0 %v3735_v4  ;;  %v3860_v4 = vld [vmem:[#allocation2 + $0x370] sm:$0xff] }
 0x3a0   :  { %3782 = vmatpush1.bf16.msra.mxu0 %v3734_v61  ;;  %v3863_v61 = vld [vmem:[#allocation2 + $0x388] sm:$0xff] }
 0x3a1   :  { %3783 = vmatprep.subr.bf16.mxu0 %v3737_v9  ;;  %v3862_v9 = vld [vmem:[#allocation2 + $0x380] sm:$0xff] }
 0x3a4   :  { %3784 = vmatpush1.bf16.msra.mxu0 %v3736_v57  ;;  %v3865_v57 = vld [vmem:[#allocation2 + $0x398] sm:$0xff] }
 0x3a5   :  { %3785 = vmatprep.subr.bf16.mxu0 %v3739_v60  ;;  %v3864_v60 = vld [vmem:[#allocation2 + $0x390] sm:$0xff] }
 0x3a8   :  { %3786 = vmatpush1.bf16.msra.mxu0 %v3738_v8  ;;  %v3867_v8 = vld [vmem:[#allocation2 + $0x3a8] sm:$0xff] }
 0x3a9   :  { %3787 = vmatprep.subr.bf16.mxu0 %v3741_v53  ;;  %v3866_v53 = vld [vmem:[#allocation2 + $0x3a0] sm:$0xff] }
 0x3ac   :  { %3788 = vmatpush1.bf16.msra.mxu0 %v3740_v51  ;;  %v3869_v51 = vld [vmem:[#allocation2 + $0x3b8] sm:$0xff] }
 0x3ad   :  { %3789 = vmatprep.subr.bf16.mxu0 %v3743_v13  ;;  %v3868_v13 = vld [vmem:[#allocation2 + $0x3b0] sm:$0xff] }
 0x3b0   :  { %3790 = vmatpush1.bf16.msra.mxu0 %v3742_v10  ;;  %v3871_v10 = vld [vmem:[#allocation2 + $0x3c8] sm:$0xff] }
 0x3b1   :  { %3791 = vmatprep.subr.bf16.mxu0 %v3745_v43  ;;  %v3873_v43 = vld [vmem:[#allocation2 + $0x3d8] sm:$0xff] }
 0x3b4   :  { %3792 = vmatpush1.bf16.msra.mxu0 %v3744_v52  ;;  %v3872_v52 = vld [vmem:[#allocation2 + $0x3d0] sm:$0xff] }
 0x3b5   :  { %3793 = vmatprep.subr.bf16.mxu0 %v3747_v50  ;;  %v3875_v50 = vld [vmem:[#allocation2 + $0x3e8] sm:$0xff] }
 0x3b8   :  { %3794 = vmatpush1.bf16.msra.mxu0 %v3746_v48  ;;  %v3874_v48 = vld [vmem:[#allocation2 + $0x3e0] sm:$0xff] }
 0x3b9   :  { %3795 = vmatprep.subr.bf16.mxu0 %v3749_v56  ;;  %v3877_v56 = vld [vmem:[#allocation2 + $0x3f8] sm:$0xff] }
 0x3bc   :  { %3796 = vmatpush1.bf16.msra.mxu0 %v3748_v59  ;;  %v3876_v59 = vld [vmem:[#allocation2 + $0x3f0] sm:$0xff] }
 0x3bd   :  { %3797 = vmatprep.subr.bf16.mxu0 %v3751_v54  ;;  %v3879_v54 = vld [vmem:[#allocation2 + $0x408] sm:$0xff] }
 0x3c0   :  { %3798 = vmatpush1.bf16.msra.mxu0 %v3750_v58  ;;  %v3878_v58 = vld [vmem:[#allocation2 + $0x400] sm:$0xff] }
 0x3c1   :  { %3810 = vmatprep.subr.bf16.mxu0 %v3753_v14  ;;  %v3881_v14 = vld [vmem:[#allocation2 + $0x418] sm:$0xff] }
 0x3c3   :  { %3800 = vmatmul.mubr.bf16.vlgmr.msra.gmra.mrb[44].mxu0 %v3759_v49  ;;  %v3880_v49 = vld [vmem:[#allocation2 + $0x410] sm:$0xff] }
 0x3c4   :  { %3811 = vmatpush1.bf16.msra.mxu0 %v3752_v12  ;;  %3842 = vmatprep.mubr.bf16.mxu0 %v7789_v7  ;;  %v3883_v12 = vld [vmem:[#allocation2 + $0x428] sm:$0xff] }
 0x3c5   :  { %3812 = vmatprep.subr.bf16.mxu0 %v3755_v3  ;;  %v3882_v3 = vld [vmem:[#allocation2 + $0x420] sm:$0xff] }
 0x3c8   :  { %3813 = vmatpush1.bf16.msra.mxu0 %v3754_v63  ;;  %v3885_v63 = vld [vmem:[#allocation2 + $0x438] sm:$0xff] }
 0x3c9   :  { %3911 = vmatprep.subr.bf16.mxu0 %v3859_v45  ;;  %v3884_v45 = vld [vmem:[#allocation2 + $0x430] sm:$0xff] }
 0x3cf   :  { %5051 = vmatmul.mubr.msk.bf16.vlgmr.msra.gmra.mrb[44].mxu0 %vm3540_vm7, %v3761_v46  ;;  %v3887_v46 = vld [vmem:[#allocation2 + $0x448] sm:$0xff] }
 0x3d0   :  { %3912 = vmatpush1.bf16.msra.mxu0 %v3858_v26  ;;  %3943 = vmatprep.mubr.bf16.mxu0 %v7454_v55  ;;  %v3870_v55 = vld [vmem:[#allocation2 + $0x3c0] sm:$0xff] }
 0x3d1   :  { %3913 = vmatprep.subr.bf16.mxu0 %v3861_v27  ;;  %v3886_v26 = vld [vmem:[#allocation2 + $0x440] sm:$0xff]  ;;  %v3889_v27 = vld [vmem:[#allocation2 + $0x458] sm:$0xff] }
 0x3d4   :  { %3914 = vmatpush1.bf16.msra.mxu0 %v3860_v4 }
 0x3d5   :  { %3915 = vmatprep.subr.bf16.mxu0 %v3863_v61 }
 0x3d8   :  { %3916 = vmatpush1.bf16.msra.mxu0 %v3862_v9  ;;  %v3888_v9 = vld [vmem:[#allocation2 + $0x450] sm:$0xff] }
 0x3d9   :  { %3917 = vmatprep.subr.bf16.mxu0 %v3865_v57 }
 0x3dc   :  { %3918 = vmatpush1.bf16.msra.mxu0 %v3864_v60 }
 0x3dd   :  { %3919 = vmatprep.subr.bf16.mxu0 %v3867_v8  ;;  %v3891_v8 = vld [vmem:[#allocation2 + $0x468] sm:$0xff] }
 0x3e0   :  { %3920 = vmatpush1.bf16.msra.mxu0 %v3866_v53 }
 0x3e1   :  { %3921 = vmatprep.subr.bf16.mxu0 %v3869_v51 }
 0x3e4   :  { %3922 = vmatpush1.bf16.msra.mxu0 %v3868_v13 }
 0x3e5   :  { %3923 = vmatprep.subr.bf16.mxu0 %v3871_v10 }
 0x3e8   :  { %3924 = vmatpush1.bf16.msra.mxu0 %v3870_v55 }
 0x3e9   :  { %3925 = vmatprep.subr.bf16.mxu0 %v3873_v43 }
 0x3ec   :  { %3926 = vmatpush1.bf16.msra.mxu0 %v3872_v52 }
 0x3ed   :  { %3927 = vmatprep.subr.bf16.mxu0 %v3875_v50  ;;  %v3890_v50 = vld [vmem:[#allocation2 + $0x460] sm:$0xff] }
 0x3f0   :  { %3928 = vmatpush1.bf16.msra.mxu0 %v3874_v48 }
 0x3f1   :  { %3929 = vmatprep.subr.bf16.mxu0 %v3877_v56  ;;  %v3893_v56 = vld [vmem:[#allocation2 + $0x478] sm:$0xff] }
 0x3f4   :  { %3930 = vmatpush1.bf16.msra.mxu0 %v3876_v59  ;;  %v3892_v59 = vld [vmem:[#allocation2 + $0x470] sm:$0xff] }
 0x3f5   :  { %3931 = vmatprep.subr.bf16.mxu0 %v3879_v54  ;;  %v3458_v54 = vpack.c.bf16 %v7461_v47, %v7461_v47  ;;  %v4007_v47 = vld [vmem:[#allocation2 + $0x4a8] sm:$0xff] }
 0x3f8   :  { %3932 = vmatpush1.bf16.msra.mxu0 %v3878_v58  ;;  %v4003_v58 = vld [vmem:[#allocation2 + $0x488] sm:$0xff] }
 0x3f9   :  { %3933 = vmatprep.subr.bf16.mxu0 %v3881_v14  ;;  %v3904_v14 = vrot.slane %v3458_v54, 2  ;;  %v4024_v54 = vld [vmem:[#allocation2 + $0x530] sm:$0xff] }
 0x3fc   :  { %3934 = vmatpush1.bf16.msra.mxu0 %v3880_v49  ;;  %v3903_v49 = vrot.slane %v7435_v5, 2 }
 0x3fd   :  { %3935 = vmatprep.subr.bf16.mxu0 %v3883_v12  ;;  %v4002_v12 = vld [vmem:[#allocation2 + $0x480] sm:$0xff] }
 0x400   :  { %3936 = vmatpush1.bf16.msra.mxu0 %v3882_v3  ;;  %v3905_v3 = vsel %vm2958_vm4, %v3903_v49, %v3904_v14  ;;  %v4026_v14 = vld [vmem:[#allocation2 + $0x540] sm:$0xff] }
 0x401   :  { %3937 = vmatprep.subr.bf16.mxu0 %v3885_v63  ;;  %v4004_v63 = vld [vmem:[#allocation2 + $0x490] sm:$0xff] }
 0x404   :  { %3938 = vmatpush1.bf16.msra.mxu0 %v3884_v45  ;;  %v4006_v45 = vld [vmem:[#allocation2 + $0x4a0] sm:$0xff] }
 0x405   :  { %3939 = vmatprep.subr.bf16.mxu0 %v3887_v46  ;;  %v4009_v46 = vld [vmem:[#allocation2 + $0x4b8] sm:$0xff] }
 0x408   :  { %v3621_v4 = vpop.f32.mrb[72].mxu1  ;;  %3940 = vmatpush1.bf16.msra.mxu0 %v3886_v26  ;;  %v4008_v26 = vld [vmem:[#allocation2 + $0x4b0] sm:$0xff] }
 0x409   :  { %v3623_v61 = vpop.f32.mrb[73].mxu1  ;;  %3941 = vmatprep.subr.bf16.mxu0 %v3889_v27  ;;  %v4011_v27 = vld [vmem:[#allocation2 + $0x4c8] sm:$0xff] }
 0x40a   :  { %v3625_v57 = vpop.f32.mrb[74].mxu1  ;;  %v3578_v60 = vpop.f32.mrb[40].mxu0 }
 0x40b   :  { %v3627_v53 = vpop.f32.mrb[75].mxu1  ;;  %v7468_v51 = vadd.f32 %v3621_v4, %v3578_v60  ;;  %v3580_v13 = vpop.f32.mrb[41].mxu0  ;;  %v4010_v4 = vld [vmem:[#allocation2 + $0x4c0] sm:$0xff]  ;;  %v4017_v60 = vld [vmem:[#allocation2 + $0x4f8] sm:$0xff] }
 0x40c   :  { %3942 = vmatpush1.bf16.msra.mxu0 %v3888_v9  ;;  %v7470_v10 = vadd.f32 %v3623_v61, %v3580_v13  ;;  %v3582_v55 = vpop.f32.mrb[42].mxu0  ;;  %v4013_v61 = vld [vmem:[#allocation2 + $0x4d8] sm:$0xff]  ;;  %v4012_v9 = vld [vmem:[#allocation2 + $0x4d0] sm:$0xff]  ;;  %v4018_v13 = vld [vmem:[#allocation2 + $0x500] sm:$0xff] }
 0x40d   :  { %v7472_v43 = vadd.f32 %v3625_v57, %v3582_v55  ;;  %3954 = vmatprep.subr.bf16.mxu0 %v3891_v8  ;;  %v3584_v52 = vpop.f32.mrb[43].mxu0  ;;  %v4015_v57 = vld [vmem:[#allocation2 + $0x4e8] sm:$0xff]  ;;  %v4016_v8 = vld [vmem:[#allocation2 + $0x4f0] sm:$0xff]  ;;  %v4021_v55 = vld [vmem:[#allocation2 + $0x518] sm:$0xff] }
 0x40e   :  { %v7474_v48 = vadd.f32 %v3627_v53, %v3584_v52  ;;  %v4019_v53 = vld [vmem:[#allocation2 + $0x508] sm:$0xff]  ;;  %v4020_v52 = vld [vmem:[#allocation2 + $0x510] sm:$0xff] }
 0x40f   :  { %3944 = vmatmul.mubr.bf16.vlgmr.msra.gmra.mrb[44].mxu0 %v7451_v0  ;;  %v4005_v0 = vld [vmem:[#allocation2 + $0x498] sm:$0xff] }
 0x410   :  { %3955 = vmatpush1.bf16.msra.mxu0 %v3890_v50  ;;  %3986 = vmatprep.mubr.bf16.mxu0 %v7789_v7  ;;  %v4023_v50 = vld [vmem:[#allocation2 + $0x528] sm:$0xff] }
 0x411   :  { %3956 = vmatprep.subr.bf16.mxu0 %v3893_v56  ;;  %v4022_v56 = vld [vmem:[#allocation2 + $0x520] sm:$0xff] }
 0x414   :  { %3957 = vmatpush1.bf16.msra.mxu0 %v3892_v59  ;;  %v4025_v59 = vld [vmem:[#allocation2 + $0x538] sm:$0xff] }
 0x415   :  { %4049 = vmatprep.subr.bf16.mxu0 %v4003_v58  ;;  %v4027_v58 = vld [vmem:[#allocation2 + $0x548] sm:$0xff] }
 0x41b   :  { %5052 = vmatmul.mubr.msk.bf16.vlgmr.msra.gmra.mrb[44].mxu0 %vm3540_vm7, %v3905_v3  ;;  %v4028_v3 = vld [vmem:[#allocation2 + $0x550] sm:$0xff] }
 0x41c   :  { %4050 = vmatpush1.bf16.msra.mxu0 %v4002_v12  ;;  %4081 = vmatprep.mubr.bf16.mxu0 %v7444_v28  ;;  %v4014_v28 = vld [vmem:[#allocation2 + $0x4e0] sm:$0xff]  ;;  %v4029_v12 = vld [vmem:[#allocation2 + $0x558] sm:$0xff] }
 0x41d   :  { %4051 = vmatprep.subr.bf16.mxu0 %v4005_v0  ;;  %v4031_v0 = vld [vmem:[#allocation2 + $0x568] sm:$0xff] }
 0x420   :  { %4052 = vmatpush1.bf16.msra.mxu0 %v4004_v63  ;;  %v4030_v63 = vld [vmem:[#allocation2 + $0x560] sm:$0xff] }
 0x421   :  { %4053 = vmatprep.subr.bf16.mxu0 %v4007_v47  ;;  %v4033_v47 = vld [vmem:[#allocation2 + $0x578] sm:$0xff] }
 0x424   :  { %4054 = vmatpush1.bf16.msra.mxu0 %v4006_v45  ;;  %v4032_v45 = vld [vmem:[#allocation2 + $0x570] sm:$0xff] }
 0x425   :  { %4055 = vmatprep.subr.bf16.mxu0 %v4009_v46  ;;  %v4035_v46 = vld [vmem:[#allocation2 + $0x588] sm:$0xff] }
 0x428   :  { %4056 = vmatpush1.bf16.msra.mxu0 %v4008_v26  ;;  %v4038_v26 = vrot.slane %v7431_v44, 2 }
 0x429   :  { %4057 = vmatprep.subr.bf16.mxu0 %v4011_v27  ;;  %v4034_v27 = vld [vmem:[#allocation2 + $0x580] sm:$0xff] }
 0x42c   :  { %4058 = vmatpush1.bf16.msra.mxu0 %v4010_v4  ;;  %v4039_v4 = vsel %vm2958_vm4, %v4038_v26, %v3897_v62  ;;  %v7791_v62 = vsub.s32 0, %v7386_v2 }
 0x42d   :  { %4059 = vmatprep.subr.bf16.mxu0 %v4013_v61  ;;  %v4037_v61 = vld [vmem:[#allocation2 + $0x598] sm:$0xff] }
 0x430   :  { %4060 = vmatpush1.bf16.msra.mxu0 %v4012_v9  ;;  %v4036_v9 = vld [vmem:[#allocation2 + $0x590] sm:$0xff] }
 0x431   :  { %4061 = vmatprep.subr.bf16.mxu0 %v4015_v57  ;;  %v4042_v57 = vrot.slane %v7429_v11, 2 }
 0x433   :  { %v4043_v44 = vsel %vm2958_vm4, %v4042_v57, %v3903_v49 }
 0x434   :  { %4062 = vmatpush1.bf16.msra.mxu0 %v4014_v28  ;;  %v4144_v28 = vrot.slane %v4139_v6, %v7791_v62 }
 0x435   :  { %4063 = vmatprep.subr.bf16.mxu0 %v4017_v60 }
 0x438   :  { %4064 = vmatpush1.bf16.msra.mxu0 %v4016_v8  ;;  %v7792_v8 = vsub.s32 1, %v7386_v2 }
 0x439   :  { %4065 = vmatprep.subr.bf16.mxu0 %v4019_v53 }
 0x43a   :  { %v4148_v53 = vrot.slane %v4139_v6, %v7792_v8 }
 0x43c   :  { %4066 = vmatpush1.bf16.msra.mxu0 %v4018_v13 }
 0x43d   :  { %4067 = vmatprep.subr.bf16.mxu0 %v4021_v55 }
 0x440   :  { %4068 = vmatpush1.bf16.msra.mxu0 %v4020_v52 }
 0x441   :  { %4069 = vmatprep.subr.bf16.mxu0 %v4023_v50 }
 0x444   :  { %4070 = vmatpush1.bf16.msra.mxu0 %v4022_v56 }
 0x445   :  { %4071 = vmatprep.subr.bf16.mxu0 %v4025_v59 }
 0x448   :  { %4072 = vmatpush1.bf16.msra.mxu0 %v4024_v54 }
 0x449   :  { %4073 = vmatprep.subr.bf16.mxu0 %v4027_v58 }
 0x44c   :  { %4074 = vmatpush1.bf16.msra.mxu0 %v4026_v14 }
 0x44d   :  { %4075 = vmatprep.subr.bf16.mxu0 %v4029_v12 }
 0x450   :  { %4076 = vmatpush1.bf16.msra.mxu0 %v4028_v3 }
 0x451   :  { %4077 = vmatprep.subr.bf16.mxu0 %v4031_v0 }
 0x454   :  { %4078 = vmatpush1.bf16.msra.mxu0 %v4030_v63 }
 0x455   :  { %4079 = vmatprep.subr.bf16.mxu0 %v4033_v47 }
 0x458   :  { %4080 = vmatpush1.bf16.msra.mxu0 %v4032_v45 }
 0x459   :  { %4092 = vmatprep.subr.bf16.mxu0 %v4035_v46 }
 0x45b   :  { %4082 = vmatmul.mubr.bf16.vlgmr.msra.gmra.mrb[44].mxu0 %v4039_v4 }
 0x45c   :  { %4093 = vmatpush1.bf16.msra.mxu0 %v4034_v27  ;;  %4124 = vmatprep.mubr.bf16.mxu0 %v7789_v7 }
 0x45d   :  { %4094 = vmatprep.subr.bf16.mxu0 %v4037_v61 }
 0x460   :  { %4095 = vmatpush1.bf16.msra.mxu0 %v4036_v9 }
 0x467   :  { %5053 = vmatmul.mubr.msk.bf16.vlgmr.msra.gmra.mrb[44].mxu0 %vm3540_vm7, %v4043_v44 }
 0x53a   :  { %v4126_v60 = vpop.f32.mrb[44].mxu0 }
 0x53b   :  { %v5338_v13 = vadd.f32 %v4126_v60, %v7468_v51  ;;  %v4128_v11 = vpop.f32.mrb[45].mxu0 }
 0x53c   :  { %v5340_v5 = vadd.f32 %v4128_v11, %v7470_v10  ;;  %v4130_v55 = vpop.f32.mrb[46].mxu0 }
 0x53d   :  { %v4151_v49 = vadd.f32 %v5338_v13, %v4144_v28  ;;  %v5342_v52 = vadd.f32 %v4130_v55, %v7472_v43  ;;  %v4132_v50 = vpop.f32.mrb[47].mxu0 }
 0x53e   :  { %v4152_v56 = vadd.f32 %v5340_v5, %v4148_v53  ;;  %v5344_v59 = vadd.f32 %v4132_v50, %v7474_v48 }
 0x53f   :  { %v4155_v54 = vmax.f32 %v4151_v49, 0.0  ;;  %v4153_v58 = vadd.f32 %v5342_v52, %v4144_v28 }
 0x540   :  { %v4156_v14 = vmax.f32 %v4152_v56, 0.0  ;;  %v4154_v12 = vadd.f32 %v5344_v59, %v4148_v53 }
 0x541   :  { %v4157_v3 = vmax.f32 %v4153_v58, 0.0 }
 0x542   :  { %v4158_v2 = vmax.f32 %v4154_v12, 0.0 }
 0x543   :  { %5606 = dma.done.wait [#allocation4 + $0x1], 8960 }
 0x544   :  { %5607 = vsyncadd [#allocation4 + $0x1], 4294958336  ;;  %v4166_v51 = vpack.c.bf16 %v4158_v2, %v4156_v14  ;;  %v4165_v0 = vpack.c.bf16 %v4157_v3, %v4155_v54  ;;  %4215 = vmatprep.mubr.bf16.mxu1 %v7789_v7  ;;  %vm4172_vm8 = vcmask 113664   ;;  %v5573_v43 = vld [vmem:[%s7731_s5] sm:$0x7f]   ;;  %vm4262_vm9 = vcmask 785408  }
 0x545   :  { %v7809_v48 = vld [vmem:[#allocation28_spill] sm:$0xff]  ;;  %v7810_v45 = vld [vmem:[#allocation29_spill] sm:$0xff]  ;;  %v7811_v46 = vld [vmem:[#allocation30_spill] sm:$0xff]  ;;  %vm4588_vm10 = vcmask 523264   ;;  %s5613_s14 = smov [#allocation5]   ;;  %vm4707_vm11 = vcmask 25600  }
 0x546   :  { %5055 = vmatprep.subr.msk.bf16.mxu1 %vm2345_vm3, %v4166_v51  ;;  %v4178_v10 = vsel %vm2345_vm3, %v4165_v0, 0  ;;  %v7812_v26 = vld [vmem:[#allocation31_spill] sm:$0xff]  ;;  %v7813_v27 = vld [vmem:[#allocation32_spill] sm:$0xff]  ;;  %v7814_v4 = vld [vmem:[#allocation33_spill] sm:$0xff]  ;;  %s4715_s10 = sshll.u32 %s5613_s14, 4  ;;  %s4716_s10 = int_to_ptr.vmem [resolvable:$true] %s4715_s10 }
 0x547   :  { %4184 = vmatpush1.bf16.msra.mxu1 %v4178_v10  ;;  %v7815_v61 = vld [vmem:[#allocation34_spill] sm:$0xff]  ;;  %v7816_v9 = vld [vmem:[#allocation35_spill] sm:$0xff]  ;;  %v7817_v57 = vld [vmem:[#allocation36_spill] sm:$0xff]  ;;  %p5587_p1 = scmp.lt.s32.totalorder %s4716_s10, %s4716_s10 }
 0x548   :  { %4266 = vmatprep.subr.bf16.mxu1 %v7789_v7  ;;  %v7818_v44 = vld [vmem:[#allocation37_spill] sm:$0xff]  ;;  %v7819_v6 = vld [vmem:[#allocation38_spill] sm:$0xff]  ;;  %v7820_v62 = vld [vmem:[#allocation39_spill] sm:$0xff] }
 0x549   :  { %v7821_v28 = vld [vmem:[#allocation40_spill] sm:$0xff]  ;;  %v7822_v60 = vld [vmem:[#allocation41_spill] sm:$0xff]  ;;  %v7823_v8 = vld [vmem:[#allocation42_spill] sm:$0xff] }
 0x54a   :  { %5056 = vmatmul.mubr.msk.bf16.vlgmr.msra.gmra.mrb[76].mxu1 %vm4172_vm8, %v5573_v43  ;;  %v7824_v11 = vld [vmem:[#allocation43_spill] sm:$0xff]  ;;  %v7825_v5 = vld [vmem:[#allocation44_spill] sm:$0xff]  ;;  %v7826_v55 = vld [vmem:[#allocation45_spill] sm:$0xff] }
 0x54b   :  { %4267 = vmatpush1.bf16.msra.mxu1 %v6560_v29  ;;  %v7827_v49 = vld [vmem:[#allocation46_spill] sm:$0xff]  ;;  %v7828_v52 = vld [vmem:[#allocation47_spill] sm:$0xff]  ;;  %v7829_v50 = vld [vmem:[#allocation48_spill] sm:$0xff] }
 0x54c   :  { %4268 = vmatprep.subr.bf16.mxu1 %v7789_v7  ;;  %v7830_v56 = vld [vmem:[#allocation49_spill] sm:$0xff]  ;;  %v7831_v59 = vld [vmem:[#allocation50_spill] sm:$0xff]  ;;  %v7832_v54 = vld [vmem:[#allocation51_spill] sm:$0xff] }
 0x54d   :  { %v7833_v58 = vld [vmem:[#allocation52_spill] sm:$0xff]  ;;  %v7834_v14 = vld [vmem:[#allocation53_spill] sm:$0xff]  ;;  %v7835_v2 = vld [vmem:[#allocation54_spill] sm:$0xff] }
 0x54e   :  { %v7836_v10 = vld [vmem:[#allocation55_spill] sm:$0xff]  ;;  %v7837_v43 = vld [vmem:[#allocation56_spill] sm:$0xff] }
 0x54f   :  { %4269 = vmatpush1.bf16.msra.mxu1 %v6565_v30 }
 0x550   :  { %4270 = vmatprep.subr.bf16.mxu1 %v7789_v7 }
 0x553   :  { %4271 = vmatpush1.bf16.msra.mxu1 %v6570_v31 }
 0x554   :  { %4272 = vmatprep.subr.bf16.mxu1 %v7789_v7 }
 0x557   :  { %4273 = vmatpush1.bf16.msra.mxu1 %v6575_v32 }
 0x558   :  { %4274 = vmatprep.subr.bf16.mxu1 %v7789_v7 }
 0x55b   :  { %4275 = vmatpush1.bf16.msra.mxu1 %v6580_v33 }
 0x55c   :  { %4276 = vmatprep.subr.bf16.mxu1 %v7789_v7 }
 0x55f   :  { %4277 = vmatpush1.bf16.msra.mxu1 %v6585_v34 }
 0x560   :  { %4278 = vmatprep.subr.bf16.mxu1 %v7789_v7 }
 0x563   :  { %4279 = vmatpush1.bf16.msra.mxu1 %v6590_v35 }
 0x564   :  { %4280 = vmatprep.subr.bf16.mxu1 %v7789_v7 }
 0x567   :  { %4281 = vmatpush1.bf16.msra.mxu1 %v6595_v36 }
 0x568   :  { %4282 = vmatprep.subr.bf16.mxu1 %v7789_v7 }
 0x56b   :  { %4283 = vmatpush1.bf16.msra.mxu1 %v6600_v37  ;;  %v7803_v37 = vld [vmem:[#allocation22_spill] sm:$0xff] }
 0x56c   :  { %4284 = vmatprep.subr.bf16.mxu1 %v7789_v7 }
 0x56f   :  { %4285 = vmatpush1.bf16.msra.mxu1 %v6605_v38  ;;  %v7804_v38 = vld [vmem:[#allocation23_spill] sm:$0xff] }
 0x570   :  { %4286 = vmatprep.subr.bf16.mxu1 %v7789_v7 }
 0x573   :  { %4287 = vmatpush1.bf16.msra.mxu1 %v6610_v39  ;;  %v7805_v39 = vld [vmem:[#allocation24_spill] sm:$0xff] }
 0x574   :  { %4288 = vmatprep.subr.bf16.mxu1 %v7789_v7 }
 0x577   :  { %4289 = vmatpush1.bf16.msra.mxu1 %v6615_v40  ;;  %v7806_v40 = vld [vmem:[#allocation25_spill] sm:$0xff] }
 0x578   :  { %4290 = vmatprep.subr.bf16.mxu1 %v7789_v7 }
 0x57b   :  { %4291 = vmatpush1.bf16.msra.mxu1 %v6620_v41  ;;  %v7807_v41 = vld [vmem:[#allocation26_spill] sm:$0xff] }
 0x57c   :  { %4292 = vmatprep.subr.bf16.mxu1 %v7789_v7 }
 0x57f   :  { %4293 = vmatpush1.bf16.msra.mxu1 %v6625_v42  ;;  %v7808_v42 = vld [vmem:[#allocation27_spill] sm:$0xff] }
 0x580   :  { %4309 = vmatprep.subr.bf16.mxu1 %v7789_v7 }
 0x61d   :  { %v4217_v29 = vpop.f32.mrb[76].mxu1 }
 0x61e   :  { %v4219_v30 = vpop.f32.mrb[77].mxu1 }
 0x61f   :  { %v4221_v31 = vpop.f32.mrb[78].mxu1 }
 0x620   :  { %v7542_v32 = vpack.c.bf16 %v4221_v31, %v4217_v29  ;;  %v4223_v33 = vpop.f32.mrb[79].mxu1  ;;  %v5575_v31 = vld [vmem:[%s7733_s7 + $0x28] sm:$0xff]  }
 0x621   :  { %v7544_v34 = vpack.c.bf16 %v4223_v33, %v4219_v30  ;;  %v5574_v30 = vld [vmem:[%s7733_s7 + $0x20] sm:$0xff]  }
 0x622   :  { %v4259_v36 = vrot.slane %v7542_v32, 4  ;;  %v4364_v63 = vrot.slane %v7542_v32, 1  ;;  %v4426_v53 = vrot.slane %v7542_v32, 5  ;;  %v4488_v29 = vrot.slane %v7542_v32, 2 }
 0x623   :  { %v4260_v35 = vrot.slane %v7544_v34, 4  ;;  %v4427_v47 = vrot.slane %v7544_v34, 5  ;;  %v4489_v13 = vrot.slane %v7544_v34, 2 }
 0x625   :  { %5057 = vmatprep.mubr.msk.bf16.mxu1 %vm4262_vm9, %v4260_v35 }
 0x626   :  { %4299 = vmatmul.mubr.bf16.vlgmr.msra.gmra.mrb[80].mxu1 %v4259_v36  ;;  %v5576_v36 = vld [vmem:[%s7733_s7 + $0x30] sm:$0xff]  }
 0x627   :  { %4310 = vmatpush1.bf16.msra.mxu1 %v6490_v15  ;;  %5058 = vmatprep.mubr.msk.bf16.mxu1 %vm4262_vm9, %v7544_v34  ;;  %v7793_v15 = vld [vmem:[#allocation12_spill] sm:$0xff] }
 0x628   :  { %4311 = vmatprep.subr.bf16.mxu1 %v7789_v7 }
 0x62b   :  { %4312 = vmatpush1.bf16.msra.mxu1 %v6495_v16  ;;  %v7794_v16 = vld [vmem:[#allocation13_spill] sm:$0xff] }
 0x62c   :  { %4313 = vmatprep.subr.bf16.mxu1 %v7789_v7 }
 0x62f   :  { %4314 = vmatpush1.bf16.msra.mxu1 %v6500_v17  ;;  %v7795_v17 = vld [vmem:[#allocation14_spill] sm:$0xff] }
 0x630   :  { %4315 = vmatprep.subr.bf16.mxu1 %v7789_v7 }
 0x633   :  { %4316 = vmatpush1.bf16.msra.mxu1 %v6505_v18  ;;  %v4365_v18 = vrot.slane %v7544_v34, 1 }
 0x634   :  { %4317 = vmatprep.subr.bf16.mxu1 %v7789_v7 }
 0x637   :  { %4318 = vmatpush1.bf16.msra.mxu1 %v6510_v19  ;;  %v7796_v19 = vld [vmem:[#allocation15_spill] sm:$0xff] }
 0x638   :  { %4319 = vmatprep.subr.bf16.mxu1 %v7789_v7 }
 0x63b   :  { %4320 = vmatpush1.bf16.msra.mxu1 %v6515_v20  ;;  %v7797_v20 = vld [vmem:[#allocation16_spill] sm:$0xff] }
 0x63c   :  { %4321 = vmatprep.subr.bf16.mxu1 %v7789_v7 }
 0x63f   :  { %4322 = vmatpush1.bf16.msra.mxu1 %v6520_v21  ;;  %v7798_v21 = vld [vmem:[#allocation17_spill] sm:$0xff] }
 0x640   :  { %4323 = vmatprep.subr.bf16.mxu1 %v7789_v7 }
 0x643   :  { %4324 = vmatpush1.bf16.msra.mxu1 %v6525_v22  ;;  %v7799_v22 = vld [vmem:[#allocation18_spill] sm:$0xff] }
 0x644   :  { %4325 = vmatprep.subr.bf16.mxu1 %v7789_v7 }
 0x647   :  { %4326 = vmatpush1.bf16.msra.mxu1 %v6530_v23  ;;  %v7800_v23 = vld [vmem:[#allocation19_spill] sm:$0xff] }
 0x648   :  { %4327 = vmatprep.subr.bf16.mxu1 %v7789_v7 }
 0x64b   :  { %4328 = vmatpush1.bf16.msra.mxu1 %v6535_v24  ;;  %v7801_v24 = vld [vmem:[#allocation20_spill] sm:$0xff] }
 0x64c   :  { %4329 = vmatprep.subr.bf16.mxu1 %v7789_v7 }
 0x64f   :  { %4330 = vmatpush1.bf16.msra.mxu1 %v6540_v25  ;;  %v7802_v25 = vld [vmem:[#allocation21_spill] sm:$0xff] }
 0x650   :  { %4331 = vmatprep.subr.bf16.mxu1 %v7789_v7 }
 0x653   :  { %4332 = vmatpush1.bf16.msra.mxu1 %v7793_v15  ;;  %v5577_v15 = vld [vmem:[%s7733_s7 + $0x38] sm:$0xff]  }
 0x654   :  { %4333 = vmatprep.subr.bf16.mxu1 %v7789_v7 }
 0x657   :  { %4334 = vmatpush1.bf16.msra.mxu1 %v7794_v16 }
 0x658   :  { %4335 = vmatprep.subr.bf16.mxu1 %v7789_v7 }
 0x65b   :  { %4336 = vmatpush1.bf16.msra.mxu1 %v7795_v17 }
 0x65c   :  { %4370 = vmatprep.subr.bf16.mxu1 %v7789_v7 }
 0x65e   :  { %4342 = vmatmul.mubr.bf16.vlgmr.msra.gmra.mrb[84].mxu1 %v7542_v32 }
 0x65f   :  { %4371 = vmatpush1.bf16.msra.mxu1 %v7796_v19  ;;  %5059 = vmatprep.mubr.msk.bf16.mxu1 %vm4262_vm9, %v4365_v18 }
 0x660   :  { %4372 = vmatprep.subr.bf16.mxu1 %v7789_v7 }
 0x663   :  { %4373 = vmatpush1.bf16.msra.mxu1 %v7797_v20 }
 0x664   :  { %4374 = vmatprep.subr.bf16.mxu1 %v7789_v7 }
 0x667   :  { %4375 = vmatpush1.bf16.msra.mxu1 %v7798_v21 }
 0x668   :  { %4376 = vmatprep.subr.bf16.mxu1 %v7789_v7 }
 0x66b   :  { %4377 = vmatpush1.bf16.msra.mxu1 %v7799_v22 }
 0x66c   :  { %4378 = vmatprep.subr.bf16.mxu1 %v7789_v7 }
 0x66f   :  { %4379 = vmatpush1.bf16.msra.mxu1 %v7800_v23 }
 0x670   :  { %4380 = vmatprep.subr.bf16.mxu1 %v7789_v7 }
 0x673   :  { %4381 = vmatpush1.bf16.msra.mxu1 %v7801_v24 }
 0x674   :  { %4382 = vmatprep.subr.bf16.mxu1 %v7789_v7 }
 0x677   :  { %4383 = vmatpush1.bf16.msra.mxu1 %v7802_v25 }
 0x678   :  { %4384 = vmatprep.subr.bf16.mxu1 %v7789_v7 }
 0x67b   :  { %4385 = vmatpush1.bf16.msra.mxu1 %v7803_v37 }
 0x67c   :  { %4386 = vmatprep.subr.bf16.mxu1 %v7789_v7 }
 0x67f   :  { %4387 = vmatpush1.bf16.msra.mxu1 %v7804_v38  ;;  %v5062_v38 = vld [vmem:[%s7732_s6] ss:$0 sm:$0xff] }
 0x680   :  { %4388 = vmatprep.subr.bf16.mxu1 %v7789_v7 }
 0x683   :  { %4389 = vmatpush1.bf16.msra.mxu1 %v7805_v39 }
 0x684   :  { %4390 = vmatprep.subr.bf16.mxu1 %v7789_v7 }
 0x687   :  { %4391 = vmatpush1.bf16.msra.mxu1 %v7806_v40 }
 0x688   :  { %4392 = vmatprep.subr.bf16.mxu1 %v7789_v7 }
 0x68b   :  { %4393 = vmatpush1.bf16.msra.mxu1 %v7807_v41 }
 0x68c   :  { %4394 = vmatprep.subr.bf16.mxu1 %v7789_v7 }
 0x68f   :  { %4395 = vmatpush1.bf16.msra.mxu1 %v7808_v42 }
 0x690   :  { %4396 = vmatprep.subr.bf16.mxu1 %v7789_v7 }
 0x693   :  { %4397 = vmatpush1.bf16.msra.mxu1 %v7809_v48 }
 0x694   :  { %4432 = vmatprep.subr.bf16.mxu1 %v7789_v7 }
 0x696   :  { %4403 = vmatmul.mubr.bf16.vlgmr.msra.gmra.mrb[88].mxu1 %v4364_v63 }
 0x697   :  { %4433 = vmatpush1.bf16.msra.mxu1 %v7810_v45  ;;  %5060 = vmatprep.mubr.msk.bf16.mxu1 %vm4262_vm9, %v4427_v47  ;;  %v5578_v45 = vld [vmem:[%s7733_s7] sm:$0xff]  }
 0x698   :  { %4434 = vmatprep.subr.bf16.mxu1 %v7789_v7 }
 0x69b   :  { %4435 = vmatpush1.bf16.msra.mxu1 %v7811_v46 }
 0x69c   :  { %4436 = vmatprep.subr.bf16.mxu1 %v7789_v7 }
 0x69f   :  { %4437 = vmatpush1.bf16.msra.mxu1 %v7812_v26  ;;  %v5579_v26 = vld [vmem:[%s7733_s7 + $0x8] sm:$0xff]  }
 0x6a0   :  { %4438 = vmatprep.subr.bf16.mxu1 %v7789_v7 }
 0x6a3   :  { %4439 = vmatpush1.bf16.msra.mxu1 %v7813_v27  ;;  %v5580_v27 = vld [vmem:[%s7733_s7 + $0x10] sm:$0xff]  }
 0x6a4   :  { %4440 = vmatprep.subr.bf16.mxu1 %v7789_v7 }
 0x6a7   :  { %4441 = vmatpush1.bf16.msra.mxu1 %v7814_v4  ;;  %v5581_v4 = vld [vmem:[%s7733_s7 + $0x18] sm:$0xff]   ;;  %s5582_s7 = scalar_lea.vmem %s4716_s10, 32 }
 0x6a8   :  { %4442 = vmatprep.subr.bf16.mxu1 %v7789_v7  ;;  %p5583_p0 = scmp.ne.s32.totalorder %s4716_s10, %s5582_s7  ;;  %p5588_p2 = scmp.lt.s32.totalorder %s5582_s7, %s5582_s7 }
 0x6aa   :  { %p5589_p3 = por %p5588_p2, %p5587_p1 }
 0x6ab   :  { %4443 = vmatpush1.bf16.msra.mxu1 %v7815_v61 }
 0x6ac   :  { %4444 = vmatprep.subr.bf16.mxu1 %v7789_v7  ;;  %p5590_p4 = pnand %p5589_p3, %p5583_p0 }
 0x6af   :  { %4445 = vmatpush1.bf16.msra.mxu1 %v7816_v9 }
 0x6b0   :  { %4446 = vmatprep.subr.bf16.mxu1 %v7789_v7 }
 0x6b3   :  { %4447 = vmatpush1.bf16.msra.mxu1 %v7817_v57 }
 0x6b4   :  { %4448 = vmatprep.subr.bf16.mxu1 %v7789_v7 }
 0x6b7   :  { %4449 = vmatpush1.bf16.msra.mxu1 %v7818_v44 }
 0x6b8   :  { %4450 = vmatprep.subr.bf16.mxu1 %v7789_v7 }
 0x6bb   :  { %4451 = vmatpush1.bf16.msra.mxu1 %v7819_v6 }
 0x6bc   :  { %4452 = vmatprep.subr.bf16.mxu1 %v7789_v7 }
 0x6bf   :  { %4453 = vmatpush1.bf16.msra.mxu1 %v7820_v62  ;;  %v5081_v62 = vld [vmem:[%s7734_s8] ss:$0 sm:$0xff] }
 0x6c0   :  { %4454 = vmatprep.subr.bf16.mxu1 %v7789_v7 }
 0x6c3   :  { %4455 = vmatpush1.bf16.msra.mxu1 %v7821_v28 }
 0x6c4   :  { %4456 = vmatprep.subr.bf16.mxu1 %v7789_v7 }
 0x6c7   :  { %4457 = vmatpush1.bf16.msra.mxu1 %v7822_v60 }
 0x6c8   :  { %4458 = vmatprep.subr.bf16.mxu1 %v7789_v7 }
 0x6cb   :  { %4459 = vmatpush1.bf16.msra.mxu1 %v7823_v8 }
 0x6cc   :  { %4494 = vmatprep.subr.bf16.mxu1 %v7789_v7 }
 0x6ce   :  { %4465 = vmatmul.mubr.bf16.vlgmr.msra.gmra.mrb[92].mxu1 %v4426_v53 }
 0x6cf   :  { %4495 = vmatpush1.bf16.msra.mxu1 %v7824_v11  ;;  %5061 = vmatprep.mubr.msk.bf16.mxu1 %vm4262_vm9, %v4489_v13 }
 0x6d0   :  { %4496 = vmatprep.subr.bf16.mxu1 %v7789_v7 }
 0x6d3   :  { %4497 = vmatpush1.bf16.msra.mxu1 %v7825_v5 }
 0x6d4   :  { %4498 = vmatprep.subr.bf16.mxu1 %v7789_v7 }
 0x6d7   :  { %4499 = vmatpush1.bf16.msra.mxu1 %v7826_v55 }
 0x6d8   :  { %4500 = vmatprep.subr.bf16.mxu1 %v7789_v7 }
 0x6db   :  { %4501 = vmatpush1.bf16.msra.mxu1 %v7827_v49 }
 0x6dc   :  { %4502 = vmatprep.subr.bf16.mxu1 %v7789_v7 }
 0x6df   :  { %4503 = vmatpush1.bf16.msra.mxu1 %v7828_v52 }
 0x6e0   :  { %4504 = vmatprep.subr.bf16.mxu1 %v7789_v7 }
 0x6e3   :  { %4505 = vmatpush1.bf16.msra.mxu1 %v7829_v50 }
 0x6e4   :  { %4506 = vmatprep.subr.bf16.mxu1 %v7789_v7 }
 0x6e7   :  { %4507 = vmatpush1.bf16.msra.mxu1 %v7830_v56 }
 0x6e8   :  { %4508 = vmatprep.subr.bf16.mxu1 %v7789_v7 }
 0x6eb   :  { %4509 = vmatpush1.bf16.msra.mxu1 %v7831_v59 }
 0x6ec   :  { %4510 = vmatprep.subr.bf16.mxu1 %v7789_v7 }
 0x6ef   :  { %4511 = vmatpush1.bf16.msra.mxu1 %v7832_v54 }
 0x6f0   :  { %4512 = vmatprep.subr.bf16.mxu1 %v7789_v7 }
 0x6f3   :  { %4513 = vmatpush1.bf16.msra.mxu1 %v7833_v58 }
 0x6f4   :  { %4514 = vmatprep.subr.bf16.mxu1 %v7789_v7 }
 0x6f7   :  { %4515 = vmatpush1.bf16.msra.mxu1 %v7834_v14 }
 0x6f8   :  { %4516 = vmatprep.subr.bf16.mxu1 %v7789_v7 }
 0x6f9   :  { %v4300_v12 = vpop.f32.mrb[80].mxu1 }
 0x6fa   :  { %v4302_v3 = vpop.f32.mrb[81].mxu1 }
 0x6fb   :  { %4517 = vmatpush1.bf16.msra.mxu1 %v7835_v2  ;;  %v4303_v51 = vpop.f32.mrb[82].mxu1 }
 0x6fc   :  { %v4304_v0 = vpop.f32.mrb[83].mxu1  ;;  %4518 = vmatprep.subr.bf16.mxu1 %v7789_v7 }
 0x6ff   :  { %4519 = vmatpush1.bf16.msra.mxu1 %v7836_v10 }
 0x700   :  { %4520 = vmatprep.subr.bf16.mxu1 %v7789_v7 }
 0x703   :  { %4521 = vmatpush1.bf16.msra.mxu1 %v7837_v43 }
 0x704   :  { %5313 = vmatprep.subr.bf16.mxu1 %v7790_v1 }
 0x706   :  { %4527 = vmatmul.mubr.bf16.vlgmr.msra.gmra.mrb[96].mxu1 %v4488_v29 }
 0x707   :  { %5321 = vmatprep.mubr.msk.bf16.mxu1 %vm5611_vm0, %v7790_v1  ;;  %5314 = vmatpush3.bf16.msra.mxu1 %v5574_v30 }
 0x708   :  { %5315 = vmatprep.subr.bf16.mxu1 %v7790_v1 }
 0x70b   :  { %5316 = vmatpush3.bf16.msra.mxu1 %v5575_v31 }
 0x70c   :  { %5317 = vmatprep.subr.bf16.mxu1 %v7790_v1 }
 0x70f   :  { %5318 = vmatpush3.bf16.msra.mxu1 %v5576_v36 }
 0x710   :  { %5319 = vmatprep.subr.bf16.mxu1 %v7790_v1 }
 0x713   :  { %5320 = vmatpush3.bf16.msra.mxu1 %v5577_v15 }
 0x714   :  { %5325 = vmatprep.subr.bf16.mxu1 %v7790_v1 }
 0x731   :  { %v4343_v7 = vpop.f32.mrb[84].mxu1 }
 0x732   :  { %v4344_v32 = vadd.f32 %v4343_v7, %v4300_v12  ;;  %v4345_v33 = vpop.f32.mrb[85].mxu1 }
 0x733   :  { %v4346_v34 = vpop.f32.mrb[86].mxu1 }
 0x734   :  { %v4347_v35 = vpop.f32.mrb[87].mxu1 }
 0x769   :  { %v4404_v16 = vpop.f32.mrb[88].mxu1 }
 0x76a   :  { %v4410_v17 = vadd.f32 %v4404_v16, %v4344_v32  ;;  %v4406_v18 = vpop.f32.mrb[89].mxu1 }
 0x76b   :  { %v4407_v19 = vpop.f32.mrb[90].mxu1 }
 0x76c   :  { %v4408_v20 = vpop.f32.mrb[91].mxu1 }
 0x7a1   :  { %v4466_v21 = vpop.f32.mrb[92].mxu1 }
 0x7a2   :  { %v4472_v22 = vadd.f32 %v4466_v21, %v4410_v17  ;;  %v4468_v23 = vpop.f32.mrb[93].mxu1 }
 0x7a3   :  { %v4469_v24 = vpop.f32.mrb[94].mxu1 }
 0x7a4   :  { %v4470_v25 = vpop.f32.mrb[95].mxu1 }
 0x7d9   :  { %v4528_v37 = vpop.f32.mrb[96].mxu1 }
 0x7da   :  { %v4534_v39 = vadd.f32 %v4528_v37, %v4472_v22  ;;  %v4530_v40 = vpop.f32.mrb[97].mxu1 }
 0x7db   :  { %v4531_v41 = vpop.f32.mrb[98].mxu1 }
 0x7dc   :  { %v4542_v42 = vadd.f32 %v5062_v38, %v4534_v39  ;;  %v4532_v48 = vpop.f32.mrb[99].mxu1 }
 0x7de   :  { %v4543_v63 = vmax.f32 %v4542_v42, 0.0 }
 0x7e0   :  { %v4544_v47 = vpack.c.bf16 %v4543_v63, %v4543_v63 }
 0x7e2   :  { %v4563_v46 = vrot.slane %v4544_v47, 1 }
 0x7e4   :  { %5322 = vmatmul.mubr.msk.bf16.vlgmr.msra.gmra.mrb[100].mxu1 %vm4588_vm10, %v4563_v46 }
 0x7e5   :  { %5326 = vmatpush3.bf16.msra.mxu1 %v5578_v45  ;;  %5333 = vmatprep.mubr.msk.bf16.mxu1 %vm5611_vm0, %v7790_v1 }
 0x7e6   :  { %5327 = vmatprep.subr.bf16.mxu1 %v7790_v1 }
 0x7e9   :  { %5328 = vmatpush3.bf16.msra.mxu1 %v5579_v26 }
 0x7ea   :  { %5329 = vmatprep.subr.bf16.mxu1 %v7790_v1 }
 0x7ed   :  { %5330 = vmatpush3.bf16.msra.mxu1 %v5580_v27 }
 0x7ee   :  { %5331 = vmatprep.subr.bf16.mxu1 %v7790_v1 }
 0x7f1   :  { %5332 = vmatpush3.bf16.msra.mxu1 %v5581_v4 }
 0x7f4   :  { %5334 = vmatmul.mubr.msk.bf16.vlgmr.msra.gmra.mrb[104].mxu1 %vm4588_vm10, %v4544_v47 }
 0x8b7   :  { %v4626_v61 = vpop.f32.mrb[100].mxu1 }
 0x8b8   :  { %v5323_v9 = vpop.f32.mrb[101].mxu1 }
 0x8b9   :  { %v4629_v57 = vpop.f32.mrb[102].mxu1 }
 0x8ba   :  { %v5324_v44 = vpop.f32.mrb[103].mxu1 }
 0x8c7   :  { %v4693_v6 = vpop.f32.mrb[104].mxu1 }
 0x8c8   :  { %v4694_v28 = vadd.f32 %v4693_v6, %v4626_v61  ;;  %v5335_v60 = vpop.f32.mrb[105].mxu1 }
 0x8c9   :  { %v4696_v8 = vpop.f32.mrb[106].mxu1 }
 0x8ca   :  { %v4706_v53 = vadd.f32 %v5081_v62, %v4694_v28  ;;  %v5336_v13 = vpop.f32.mrb[107].mxu1 }
 0x8cc   :  { %4708 = vst.msk [vmem:[#allocation5] sm:$0x3] %vm4707_vm11, %v4706_v53 }
 0x8cd   :  { %5593 = shalt.err (!%p5590_p4)
}
 0x8ce   :  { %s5594_s8 = scalar_lea.hbm %s7737_s11, 32 }
 0x8cf   :  { %p5595_p5 = scmp.ne.s32.totalorder %s7737_s11, %s5594_s8  ;;  %p5598_p6 = scmp.lt.u32.totalorder %s5594_s8, %s7737_s11 }
 0x8d1   :  { %p5600_p7 = pnand %p5598_p6, %p5595_p5 }
 0x8d3   :  { %5603 = shalt.err (!%p5600_p7)
}
 0x8d4   :  { %4718 = dma.vmem_to_hbm [thread:$0]  %s4716_s10, 32, %s7737_s11, [#allocation6]  }
 0x8d5   :  { %5608 = dma.done.wait [#allocation6], 32  }
 0x8d6   :  { %5609 = vsyncadd [#allocation6], 4294967264 }
 0x8d7   :  { %4722 = vsyncpa [#allocation6], 1 }
 0x8d8   :  { %4723 = vsyncmov [#allocation4] }
 0x8db   :  { %s4724_s18 = vpop.sfrf %4723 }
 0x8dc   :  { %p5082_p8 = scmp.ne.s32.totalorder %s4724_s18, 0 }
 0x8de   :  { %4728 = shalt.err (%p5082_p8)  }
 0x8df   :  { %4730 = vsyncmov [#allocation4 + $0x1] }
 0x8e2   :  { %s4731_s19 = vpop.sfrf %4730 }
 0x8e3   :  { %p5083_p9 = scmp.ne.s32.totalorder %s4731_s19, 0 }
 0x8e5   :  { %4735 = shalt.err (%p5083_p9)  }

</bundles_post_ra>
